<compile_context>
chip_gen: v6e
topology: v6e:2x2x1
jax: 0.10.0
libtpu: 0.0.40
codegen_flags: <defaults>
</compile_context>

<pallas_src>
import jax
import jax.numpy as jnp
from jax import lax
from jax.experimental import pallas as pl
from jax.experimental.pallas import tpu as pltpu


def _round_up(n, m):
    return ((n + m - 1) // m) * m


def _lstm_seq_kernel(x_ref,       # (T, Bp, D)     bf16, time-major padded sequence
                     wih1_ref,    # (D, 4*Hp)      bf16
                     b1_ref,      # (1, 4*Hp)      f32  (b_ih1 + b_hh1)
                     wbig_ref,    # (2*Hp, 8*Hp)   bf16 skewed block weight
                     b2_ref,      # (1, 4*Hp)      f32  (b_ih2 + b_hh2)
                     h2_out_ref,  # (Bp, Hp)       f32  final layer-2 hidden state
                     ):
    T, Bp, D = x_ref.shape
    Hp = h2_out_ref.shape[1]

    # Loop-invariant fused RHS weight (held in VMEM; single load).
    wbig = wbig_ref[...]                                   # (2Hp, 8Hp) bf16

    # Hoisted layer-1 input projection over ALL timesteps: one big MXU matmul,
    # bias folded in once.  (T*Bp, D) @ (D, 4Hp) -> f32.
    xg1 = jnp.dot(x_ref[...].reshape(T * Bp, D), wih1_ref[...],
                  preferred_element_type=jnp.float32)
    xg1 = (xg1 + b1_ref[...]).reshape(T, Bp, 4 * Hp)       # (T, Bp, 4Hp)

    # Hoisted bias broadcast for layer 2 (JAX does not CSE broadcast_in_dim).
    b2 = jnp.broadcast_to(b2_ref[...], (Bp, 4 * Hp))

    def gate_update(gates, c):
        # Hp is a multiple of 128 -> all four slices are lane-aligned blocks.
        i = jax.nn.sigmoid(gates[:, 0 * Hp:1 * Hp])
        f = jax.nn.sigmoid(gates[:, 1 * Hp:2 * Hp])
        g = jnp.tanh(gates[:, 2 * Hp:3 * Hp])
        o = jax.nn.sigmoid(gates[:, 3 * Hp:4 * Hp])
        c_new = f * c + i * g
        h_new = o * jnp.tanh(c_new)
        return h_new, c_new

    z = jnp.zeros((Bp, Hp), jnp.float32)
    c1, h2, c2 = z, z, z

    # Prologue: layer-1 step 0 (h1_{-1} = 0, so gates = x_0 @ wih1 + b1 only).
    h1, c1 = gate_update(xg1[0], c1)

    # Skewed steady state (fully unrolled, T is a Python int):
    # one fused (Bp, 2Hp) @ (2Hp, 8Hp) dot per step yields
    #   left  4Hp cols -> layer-1 recurrent gates for step t+1  (h1 @ whh1)
    #   right 4Hp cols -> layer-2 gates for step t       (h1 @ wih2 + h2 @ whh2)
    for t in range(T - 1):
        hcat = jnp.concatenate([h1, h2], axis=1).astype(jnp.bfloat16)
        fused = jnp.dot(hcat, wbig, preferred_element_type=jnp.float32)
        # layer 2, step t      (independent of the layer-1 update below)
        h2, c2 = gate_update(fused[:, 4 * Hp:] + b2, c2)
        # layer 1, step t+1
        h1, c1 = gate_update(xg1[t + 1] + fused[:, :4 * Hp], c1)

    # Epilogue: layer-2 step T-1 (uses h1_{T-1}, h2_{T-2}).  The layer-1 half
    # of the fused product is computed and discarded (negligible extra work).
    hcat = jnp.concatenate([h1, h2], axis=1).astype(jnp.bfloat16)
    fused = jnp.dot(hcat, wbig, preferred_element_type=jnp.float32)
    h2, _ = gate_update(fused[:, 4 * Hp:] + b2, c2)

    h2_out_ref[...] = h2


@jax.jit
def lstm_model_forward(x, params):
    """x: (B, T, D) float32 (batch_first, like the PyTorch module)."""
    B, T, D = x.shape
    H = params["whh1"].shape[0]

    Bp = _round_up(max(B, 8), 8)        # pad batch to f32 sublane granularity
    Hp = _round_up(H, 128)              # pad hidden to lane granularity

    def pad_gate_cols(w):
        # (R, 4H) -> (R, 4Hp): pad each gate's H columns to Hp with zeros.
        r = w.shape[0]
        w4 = w.reshape(r, 4, H)
        w4 = jnp.pad(w4, ((0, 0), (0, 0), (0, Hp - H)))
        return w4.reshape(r, 4 * Hp)

    def pad_rows(w):
        return jnp.pad(w, ((0, Hp - w.shape[0]), (0, 0)))

    wih1_p = pad_gate_cols(params["wih1"]).astype(jnp.bfloat16)      # (D, 4Hp)
    whh1_p = pad_rows(pad_gate_cols(params["whh1"]))                 # (Hp, 4Hp)
    wih2_p = pad_rows(pad_gate_cols(params["wih2"]))                 # (Hp, 4Hp)
    whh2_p = pad_rows(pad_gate_cols(params["whh2"]))                 # (Hp, 4Hp)

    # Skewed block weight for [h1_t | h2_{t-1}] @ [[whh1, wih2], [0, whh2]].
    top = jnp.concatenate([whh1_p, wih2_p], axis=1)                  # (Hp, 8Hp)
    bot = jnp.concatenate([jnp.zeros_like(whh2_p), whh2_p], axis=1)  # (Hp, 8Hp)
    wbig = jnp.concatenate([top, bot], axis=0).astype(jnp.bfloat16)  # (2Hp, 8Hp)

    b1_p = pad_gate_cols(params["b1"])                               # (1, 4Hp) f32
    b2_p = pad_gate_cols(params["b2"])                               # (1, 4Hp) f32

    # Time-major + batch pad: (B, T, D) -> (T, Bp, D); the per-step leading-axis
    # index in the kernel is then a tile-aligned, zero-cost view.
    x_tm = jnp.transpose(x, (1, 0, 2))
    x_p = jnp.pad(x_tm, ((0, 0), (0, Bp - B), (0, 0))).astype(jnp.bfloat16)

    full = lambda shape: pl.BlockSpec(shape, lambda i: tuple(0 for _ in shape))

    # TODO(synk): on v7x (2 TCs/chip) split independent sequences over a
    # leading "parallel" grid axis; with one tiny batch here grid=(1,) is fine.
    h2_pad = pl.pallas_call(
        _lstm_seq_kernel,
        out_shape=jax.ShapeDtypeStruct((Bp, Hp), jnp.float32),
        grid_spec=pltpu.PrefetchScalarGridSpec(
            num_scalar_prefetch=0,
            grid=(1,),
            in_specs=[
                full((T, Bp, D)),        # x (time-major)
                full((D, 4 * Hp)),       # wih1
                full((1, 4 * Hp)),       # b1
                full((2 * Hp, 8 * Hp)),  # skewed [[whh1, wih2], [0, whh2]]
                full((1, 4 * Hp)),       # b2
            ],
            out_specs=pl.BlockSpec((Bp, Hp), lambda i: (0, 0)),
        ),
        compiler_params=pltpu.CompilerParams(
            dimension_semantics=("arbitrary",)),
    )(x_p, wih1_p, b1_p, wbig, b2_p)

    # Tiny (H, 1) head + sigmoid in the wrapper (keeps kernel output lane-dense).
    h2 = h2_pad[:B, :H]
    return jax.nn.sigmoid(h2 @ params["wlin"] + params["blin"])


def make_params(key, input_dim, hidden_dim):
    """Deterministic init mimicking torch.nn.LSTM/Linear uniform(-k, k)."""
    H = hidden_dim
    k_lstm = 1.0 / jnp.sqrt(H)
    keys = jax.random.split(key, 9)
    u = lambda kk, shape, bound: jax.random.uniform(
        kk, shape, jnp.float32, -bound, bound)
    params = {
        # layer 1
        "wih1": u(keys[0], (input_dim, 4 * H), k_lstm),
        "whh1": u(keys[1], (H, 4 * H), k_lstm),
        "b1":   u(keys[2], (1, 4 * H), k_lstm),   # = b_ih + b_hh pre-summed
        # layer 2 (input is h1, size H)
        "wih2": u(keys[3], (H, 4 * H), k_lstm),
        "whh2": u(keys[4], (H, 4 * H), k_lstm),
        "b2":   u(keys[5], (1, 4 * H), k_lstm),
        # linear head
        "wlin": u(keys[6], (H, 1), 1.0 / jnp.sqrt(H)),
        "blin": u(keys[7], (1, 1), 1.0 / jnp.sqrt(H)),
    }
    return params


def lstm_model_reference(x, params):
    """Pure-JAX f32 reference (lax.scan) for correctness checking."""
    B, T, D = x.shape
    H = params["whh1"].shape[0]

    def cell(x_in, h, c, wih, whh, b):
        gates = x_in @ wih + h @ whh + b
        i = jax.nn.sigmoid(gates[:, 0 * H:1 * H])
        f = jax.nn.sigmoid(gates[:, 1 * H:2 * H])
        g = jnp.tanh(gates[:, 2 * H:3 * H])
        o = jax.nn.sigmoid(gates[:, 3 * H:4 * H])
        c_new = f * c + i * g
        h_new = o * jnp.tanh(c_new)
        return h_new, c_new

    def step(carry, x_t):
        h1, c1, h2, c2 = carry
        h1, c1 = cell(x_t, h1, c1, params["wih1"], params["whh1"], params["b1"])
        h2, c2 = cell(h1, h2, c2, params["wih2"], params["whh2"], params["b2"])
        return (h1, c1, h2, c2), None

    z = jnp.zeros((B, H), jnp.float32)
    (_, _, h2, _), _ = lax.scan(step, (z, z, z, z),
                                jnp.transpose(x, (1, 0, 2)))
    return jax.nn.sigmoid(h2 @ params["wlin"] + params["blin"])


if __name__ == "__main__":
    B, T, D, H = 2, 8, 16, 32

    key = jax.random.PRNGKey(0)
    k_x, k_p = jax.random.split(key)
    x = jax.random.normal(k_x, (B, T, D), dtype=jnp.float32)
    params = make_params(k_p, D, H)

    y = lstm_model_forward(x, params)
    y = jax.block_until_ready(y)

    y_ref = lstm_model_reference(x, params)
    assert y.shape == (B, 1)
    # Kernel feeds the MXU in bf16 (f32 accumulation); tolerance loosened vs the
    # pure-f32 reference accordingly.
    assert jnp.allclose(y, y_ref, atol=2e-2, rtol=0), (y, y_ref)

    print("KERNEL_OK")
</pallas_src>

<mosaic_0001>
module attributes {stable_mosaic.version = 11 : i64} {
  func.func @_lstm_seq_kernel(%arg0: i32, %arg1: memref<8x8x16xbf16, #tpu.memory_space<vmem>>, %arg2: memref<16x512xbf16, #tpu.memory_space<vmem>>, %arg3: memref<1x512xf32, #tpu.memory_space<vmem>>, %arg4: memref<256x1024xbf16, #tpu.memory_space<vmem>>, %arg5: memref<1x512xf32, #tpu.memory_space<vmem>>, %arg6: memref<8x128xf32, #tpu.memory_space<vmem>>) attributes {dimension_semantics = [#tpu.dimension_semantics<arbitrary>], iteration_bounds = array<i64: 1>, scalar_prefetch = 0 : i64, scratch_operands = 0 : i64, tpu.core_type = #tpu.core_type<tc>, window_params = [{pipeline_mode = #tpu.pipeline_mode<synchronous>, transform_indices = @transform_0, window_bounds = array<i64: 8, 8, 16>}, {pipeline_mode = #tpu.pipeline_mode<synchronous>, transform_indices = @transform_1, window_bounds = array<i64: 16, 512>}, {pipeline_mode = #tpu.pipeline_mode<synchronous>, transform_indices = @transform_2, window_bounds = array<i64: 1, 512>}, {pipeline_mode = #tpu.pipeline_mode<synchronous>, transform_indices = @transform_3, window_bounds = array<i64: 256, 1024>}, {pipeline_mode = #tpu.pipeline_mode<synchronous>, transform_indices = @transform_4, window_bounds = array<i64: 1, 512>}, {pipeline_mode = #tpu.pipeline_mode<synchronous>, transform_indices = @transform_5, window_bounds = array<i64: 8, 128>}]} {
    %c0 = arith.constant 0 : index
    %c0_0 = arith.constant 0 : index
    %0 = vector.load %arg4[%c0, %c0_0] : memref<256x1024xbf16, #tpu.memory_space<vmem>>, vector<256x1024xbf16>
    %c0_1 = arith.constant 0 : index
    %c0_2 = arith.constant 0 : index
    %c0_3 = arith.constant 0 : index
    %1 = vector.load %arg1[%c0_1, %c0_2, %c0_3] : memref<8x8x16xbf16, #tpu.memory_space<vmem>>, vector<8x8x16xbf16>
    %2 = vector.shape_cast %1 : vector<8x8x16xbf16> to vector<64x16xbf16>
    %c0_4 = arith.constant 0 : index
    %c0_5 = arith.constant 0 : index
    %3 = vector.load %arg2[%c0_4, %c0_5] : memref<16x512xbf16, #tpu.memory_space<vmem>>, vector<16x512xbf16>
    %cst = arith.constant dense<0.000000e+00> : vector<64x512xf32>
    %4 = tpu.matmul %2, %3, %cst {dimension_numbers = #tpu.dot_dimension_numbers<[1], [0], [0], [1], [0, 0, 1, 1], [], []>} : vector<64x16xbf16>, vector<16x512xbf16>, vector<64x512xf32> -> vector<64x512xf32>
    %c0_6 = arith.constant 0 : index
    %c0_7 = arith.constant 0 : index
    %5 = vector.load %arg3[%c0_6, %c0_7] : memref<1x512xf32, #tpu.memory_space<vmem>>, vector<1x512xf32>
    %6 = vector.broadcast %5 : vector<1x512xf32> to vector<64x512xf32>
    %7 = arith.addf %4, %6 : vector<64x512xf32>
    %8 = vector.shape_cast %7 : vector<64x512xf32> to vector<8x8x512xf32>
    %c0_8 = arith.constant 0 : index
    %c0_9 = arith.constant 0 : index
    %9 = vector.load %arg5[%c0_8, %c0_9] : memref<1x512xf32, #tpu.memory_space<vmem>>, vector<1x512xf32>
    %10 = vector.shape_cast %9 : vector<1x512xf32> to vector<1x512xf32>
    %11 = vector.broadcast %10 : vector<1x512xf32> to vector<8x512xf32>
    %cst_10 = arith.constant 0.000000e+00 : f32
    %12 = vector.broadcast %cst_10 : f32 to vector<8x128xf32>
    %13 = vector.extract_strided_slice %8 {offsets = [0, 0, 0], sizes = [1, 8, 512], strides = [1, 1, 1]} : vector<8x8x512xf32> to vector<1x8x512xf32>
    %14 = vector.shape_cast %13 : vector<1x8x512xf32> to vector<8x512xf32>
    %15 = vector.extract_strided_slice %14 {offsets = [0, 0], sizes = [8, 128], strides = [1, 1]} : vector<8x512xf32> to vector<8x128xf32>
    %16 = arith.negf %15 : vector<8x128xf32>
    %17 = math.exp %16 : vector<8x128xf32>
    %cst_11 = arith.constant 1.000000e+00 : f32
    %18 = vector.broadcast %cst_11 : f32 to vector<8x128xf32>
    %19 = arith.addf %18, %17 : vector<8x128xf32>
    %20 = arith.divf %18, %19 : vector<8x128xf32>
    %21 = vector.extract_strided_slice %14 {offsets = [0, 128], sizes = [8, 128], strides = [1, 1]} : vector<8x512xf32> to vector<8x128xf32>
    %22 = arith.negf %21 : vector<8x128xf32>
    %23 = math.exp %22 : vector<8x128xf32>
    %cst_12 = arith.constant 1.000000e+00 : f32
    %24 = vector.broadcast %cst_12 : f32 to vector<8x128xf32>
    %25 = arith.addf %24, %23 : vector<8x128xf32>
    %26 = arith.divf %24, %25 : vector<8x128xf32>
    %27 = vector.extract_strided_slice %14 {offsets = [0, 256], sizes = [8, 128], strides = [1, 1]} : vector<8x512xf32> to vector<8x128xf32>
    %28 = math.tanh %27 : vector<8x128xf32>
    %29 = vector.extract_strided_slice %14 {offsets = [0, 384], sizes = [8, 128], strides = [1, 1]} : vector<8x512xf32> to vector<8x128xf32>
    %30 = arith.negf %29 : vector<8x128xf32>
    %31 = math.exp %30 : vector<8x128xf32>
    %cst_13 = arith.constant 1.000000e+00 : f32
    %32 = vector.broadcast %cst_13 : f32 to vector<8x128xf32>
    %33 = arith.addf %32, %31 : vector<8x128xf32>
    %34 = arith.divf %32, %33 : vector<8x128xf32>
    %35 = arith.mulf %26, %12 : vector<8x128xf32>
    %36 = arith.mulf %20, %28 : vector<8x128xf32>
    %37 = arith.addf %35, %36 : vector<8x128xf32>
    %38 = math.tanh %37 : vector<8x128xf32>
    %39 = arith.mulf %34, %38 : vector<8x128xf32>
    %40 = tpu.concatenate %39, %12 in 1 : vector<8x128xf32>, vector<8x128xf32> -> vector<8x256xf32>
    %41 = arith.truncf %40 : vector<8x256xf32> to vector<8x256xbf16>
    %cst_14 = arith.constant dense<0.000000e+00> : vector<8x1024xf32>
    %42 = tpu.matmul %41, %0, %cst_14 {dimension_numbers = #tpu.dot_dimension_numbers<[1], [0], [0], [1], [0, 0, 1, 1], [], []>} : vector<8x256xbf16>, vector<256x1024xbf16>, vector<8x1024xf32> -> vector<8x1024xf32>
    %43 = vector.extract_strided_slice %42 {offsets = [0, 512], sizes = [8, 512], strides = [1, 1]} : vector<8x1024xf32> to vector<8x512xf32>
    %44 = arith.addf %43, %11 : vector<8x512xf32>
    %45 = vector.extract_strided_slice %44 {offsets = [0, 0], sizes = [8, 128], strides = [1, 1]} : vector<8x512xf32> to vector<8x128xf32>
    %46 = arith.negf %45 : vector<8x128xf32>
    %47 = math.exp %46 : vector<8x128xf32>
    %cst_15 = arith.constant 1.000000e+00 : f32
    %48 = vector.broadcast %cst_15 : f32 to vector<8x128xf32>
    %49 = arith.addf %48, %47 : vector<8x128xf32>
    %50 = arith.divf %48, %49 : vector<8x128xf32>
    %51 = vector.extract_strided_slice %44 {offsets = [0, 128], sizes = [8, 128], strides = [1, 1]} : vector<8x512xf32> to vector<8x128xf32>
    %52 = arith.negf %51 : vector<8x128xf32>
    %53 = math.exp %52 : vector<8x128xf32>
    %cst_16 = arith.constant 1.000000e+00 : f32
    %54 = vector.broadcast %cst_16 : f32 to vector<8x128xf32>
    %55 = arith.addf %54, %53 : vector<8x128xf32>
    %56 = arith.divf %54, %55 : vector<8x128xf32>
    %57 = vector.extract_strided_slice %44 {offsets = [0, 256], sizes = [8, 128], strides = [1, 1]} : vector<8x512xf32> to vector<8x128xf32>
    %58 = math.tanh %57 : vector<8x128xf32>
    %59 = vector.extract_strided_slice %44 {offsets = [0, 384], sizes = [8, 128], strides = [1, 1]} : vector<8x512xf32> to vector<8x128xf32>
    %60 = arith.negf %59 : vector<8x128xf32>
    %61 = math.exp %60 : vector<8x128xf32>
    %cst_17 = arith.constant 1.000000e+00 : f32
    %62 = vector.broadcast %cst_17 : f32 to vector<8x128xf32>
    %63 = arith.addf %62, %61 : vector<8x128xf32>
    %64 = arith.divf %62, %63 : vector<8x128xf32>
    %65 = arith.mulf %56, %12 : vector<8x128xf32>
    %66 = arith.mulf %50, %58 : vector<8x128xf32>
    %67 = arith.addf %65, %66 : vector<8x128xf32>
    %68 = math.tanh %67 : vector<8x128xf32>
    %69 = arith.mulf %64, %68 : vector<8x128xf32>
    %70 = vector.extract_strided_slice %8 {offsets = [1, 0, 0], sizes = [1, 8, 512], strides = [1, 1, 1]} : vector<8x8x512xf32> to vector<1x8x512xf32>
    %71 = vector.shape_cast %70 : vector<1x8x512xf32> to vector<8x512xf32>
    %72 = vector.extract_strided_slice %42 {offsets = [0, 0], sizes = [8, 512], strides = [1, 1]} : vector<8x1024xf32> to vector<8x512xf32>
    %73 = arith.addf %71, %72 : vector<8x512xf32>
    %74 = vector.extract_strided_slice %73 {offsets = [0, 0], sizes = [8, 128], strides = [1, 1]} : vector<8x512xf32> to vector<8x128xf32>
    %75 = arith.negf %74 : vector<8x128xf32>
    %76 = math.exp %75 : vector<8x128xf32>
    %cst_18 = arith.constant 1.000000e+00 : f32
    %77 = vector.broadcast %cst_18 : f32 to vector<8x128xf32>
    %78 = arith.addf %77, %76 : vector<8x128xf32>
    %79 = arith.divf %77, %78 : vector<8x128xf32>
    %80 = vector.extract_strided_slice %73 {offsets = [0, 128], sizes = [8, 128], strides = [1, 1]} : vector<8x512xf32> to vector<8x128xf32>
    %81 = arith.negf %80 : vector<8x128xf32>
    %82 = math.exp %81 : vector<8x128xf32>
    %cst_19 = arith.constant 1.000000e+00 : f32
    %83 = vector.broadcast %cst_19 : f32 to vector<8x128xf32>
    %84 = arith.addf %83, %82 : vector<8x128xf32>
    %85 = arith.divf %83, %84 : vector<8x128xf32>
    %86 = vector.extract_strided_slice %73 {offsets = [0, 256], sizes = [8, 128], strides = [1, 1]} : vector<8x512xf32> to vector<8x128xf32>
    %87 = math.tanh %86 : vector<8x128xf32>
    %88 = vector.extract_strided_slice %73 {offsets = [0, 384], sizes = [8, 128], strides = [1, 1]} : vector<8x512xf32> to vector<8x128xf32>
    %89 = arith.negf %88 : vector<8x128xf32>
    %90 = math.exp %89 : vector<8x128xf32>
    %cst_20 = arith.constant 1.000000e+00 : f32
    %91 = vector.broadcast %cst_20 : f32 to vector<8x128xf32>
    %92 = arith.addf %91, %90 : vector<8x128xf32>
    %93 = arith.divf %91, %92 : vector<8x128xf32>
    %94 = arith.mulf %85, %37 : vector<8x128xf32>
    %95 = arith.mulf %79, %87 : vector<8x128xf32>
    %96 = arith.addf %94, %95 : vector<8x128xf32>
    %97 = math.tanh %96 : vector<8x128xf32>
    %98 = arith.mulf %93, %97 : vector<8x128xf32>
    %99 = tpu.concatenate %98, %69 in 1 : vector<8x128xf32>, vector<8x128xf32> -> vector<8x256xf32>
    %100 = arith.truncf %99 : vector<8x256xf32> to vector<8x256xbf16>
    %cst_21 = arith.constant dense<0.000000e+00> : vector<8x1024xf32>
    %101 = tpu.matmul %100, %0, %cst_21 {dimension_numbers = #tpu.dot_dimension_numbers<[1], [0], [0], [1], [0, 0, 1, 1], [], []>} : vector<8x256xbf16>, vector<256x1024xbf16>, vector<8x1024xf32> -> vector<8x1024xf32>
    %102 = vector.extract_strided_slice %101 {offsets = [0, 512], sizes = [8, 512], strides = [1, 1]} : vector<8x1024xf32> to vector<8x512xf32>
    %103 = arith.addf %102, %11 : vector<8x512xf32>
    %104 = vector.extract_strided_slice %103 {offsets = [0, 0], sizes = [8, 128], strides = [1, 1]} : vector<8x512xf32> to vector<8x128xf32>
    %105 = arith.negf %104 : vector<8x128xf32>
    %106 = math.exp %105 : vector<8x128xf32>
    %cst_22 = arith.constant 1.000000e+00 : f32
    %107 = vector.broadcast %cst_22 : f32 to vector<8x128xf32>
    %108 = arith.addf %107, %106 : vector<8x128xf32>
    %109 = arith.divf %107, %108 : vector<8x128xf32>
    %110 = vector.extract_strided_slice %103 {offsets = [0, 128], sizes = [8, 128], strides = [1, 1]} : vector<8x512xf32> to vector<8x128xf32>
    %111 = arith.negf %110 : vector<8x128xf32>
    %112 = math.exp %111 : vector<8x128xf32>
    %cst_23 = arith.constant 1.000000e+00 : f32
    %113 = vector.broadcast %cst_23 : f32 to vector<8x128xf32>
    %114 = arith.addf %113, %112 : vector<8x128xf32>
    %115 = arith.divf %113, %114 : vector<8x128xf32>
    %116 = vector.extract_strided_slice %103 {offsets = [0, 256], sizes = [8, 128], strides = [1, 1]} : vector<8x512xf32> to vector<8x128xf32>
    %117 = math.tanh %116 : vector<8x128xf32>
    %118 = vector.extract_strided_slice %103 {offsets = [0, 384], sizes = [8, 128], strides = [1, 1]} : vector<8x512xf32> to vector<8x128xf32>
    %119 = arith.negf %118 : vector<8x128xf32>
    %120 = math.exp %119 : vector<8x128xf32>
    %cst_24 = arith.constant 1.000000e+00 : f32
    %121 = vector.broadcast %cst_24 : f32 to vector<8x128xf32>
    %122 = arith.addf %121, %120 : vector<8x128xf32>
    %123 = arith.divf %121, %122 : vector<8x128xf32>
    %124 = arith.mulf %115, %67 : vector<8x128xf32>
    %125 = arith.mulf %109, %117 : vector<8x128xf32>
    %126 = arith.addf %124, %125 : vector<8x128xf32>
    %127 = math.tanh %126 : vector<8x128xf32>
    %128 = arith.mulf %123, %127 : vector<8x128xf32>
    %129 = vector.extract_strided_slice %8 {offsets = [2, 0, 0], sizes = [1, 8, 512], strides = [1, 1, 1]} : vector<8x8x512xf32> to vector<1x8x512xf32>
    %130 = vector.shape_cast %129 : vector<1x8x512xf32> to vector<8x512xf32>
    %131 = vector.extract_strided_slice %101 {offsets = [0, 0], sizes = [8, 512], strides = [1, 1]} : vector<8x1024xf32> to vector<8x512xf32>
    %132 = arith.addf %130, %131 : vector<8x512xf32>
    %133 = vector.extract_strided_slice %132 {offsets = [0, 0], sizes = [8, 128], strides = [1, 1]} : vector<8x512xf32> to vector<8x128xf32>
    %134 = arith.negf %133 : vector<8x128xf32>
    %135 = math.exp %134 : vector<8x128xf32>
    %cst_25 = arith.constant 1.000000e+00 : f32
    %136 = vector.broadcast %cst_25 : f32 to vector<8x128xf32>
    %137 = arith.addf %136, %135 : vector<8x128xf32>
    %138 = arith.divf %136, %137 : vector<8x128xf32>
    %139 = vector.extract_strided_slice %132 {offsets = [0, 128], sizes = [8, 128], strides = [1, 1]} : vector<8x512xf32> to vector<8x128xf32>
    %140 = arith.negf %139 : vector<8x128xf32>
    %141 = math.exp %140 : vector<8x128xf32>
    %cst_26 = arith.constant 1.000000e+00 : f32
    %142 = vector.broadcast %cst_26 : f32 to vector<8x128xf32>
    %143 = arith.addf %142, %141 : vector<8x128xf32>
    %144 = arith.divf %142, %143 : vector<8x128xf32>
    %145 = vector.extract_strided_slice %132 {offsets = [0, 256], sizes = [8, 128], strides = [1, 1]} : vector<8x512xf32> to vector<8x128xf32>
    %146 = math.tanh %145 : vector<8x128xf32>
    %147 = vector.extract_strided_slice %132 {offsets = [0, 384], sizes = [8, 128], strides = [1, 1]} : vector<8x512xf32> to vector<8x128xf32>
    %148 = arith.negf %147 : vector<8x128xf32>
    %149 = math.exp %148 : vector<8x128xf32>
    %cst_27 = arith.constant 1.000000e+00 : f32
    %150 = vector.broadcast %cst_27 : f32 to vector<8x128xf32>
    %151 = arith.addf %150, %149 : vector<8x128xf32>
    %152 = arith.divf %150, %151 : vector<8x128xf32>
    %153 = arith.mulf %144, %96 : vector<8x128xf32>
    %154 = arith.mulf %138, %146 : vector<8x128xf32>
    %155 = arith.addf %153, %154 : vector<8x128xf32>
    %156 = math.tanh %155 : vector<8x128xf32>
    %157 = arith.mulf %152, %156 : vector<8x128xf32>
    %158 = tpu.concatenate %157, %128 in 1 : vector<8x128xf32>, vector<8x128xf32> -> vector<8x256xf32>
    %159 = arith.truncf %158 : vector<8x256xf32> to vector<8x256xbf16>
    %cst_28 = arith.constant dense<0.000000e+00> : vector<8x1024xf32>
    %160 = tpu.matmul %159, %0, %cst_28 {dimension_numbers = #tpu.dot_dimension_numbers<[1], [0], [0], [1], [0, 0, 1, 1], [], []>} : vector<8x256xbf16>, vector<256x1024xbf16>, vector<8x1024xf32> -> vector<8x1024xf32>
    %161 = vector.extract_strided_slice %160 {offsets = [0, 512], sizes = [8, 512], strides = [1, 1]} : vector<8x1024xf32> to vector<8x512xf32>
    %162 = arith.addf %161, %11 : vector<8x512xf32>
    %163 = vector.extract_strided_slice %162 {offsets = [0, 0], sizes = [8, 128], strides = [1, 1]} : vector<8x512xf32> to vector<8x128xf32>
    %164 = arith.negf %163 : vector<8x128xf32>
    %165 = math.exp %164 : vector<8x128xf32>
    %cst_29 = arith.constant 1.000000e+00 : f32
    %166 = vector.broadcast %cst_29 : f32 to vector<8x128xf32>
    %167 = arith.addf %166, %165 : vector<8x128xf32>
    %168 = arith.divf %166, %167 : vector<8x128xf32>
    %169 = vector.extract_strided_slice %162 {offsets = [0, 128], sizes = [8, 128], strides = [1, 1]} : vector<8x512xf32> to vector<8x128xf32>
    %170 = arith.negf %169 : vector<8x128xf32>
    %171 = math.exp %170 : vector<8x128xf32>
    %cst_30 = arith.constant 1.000000e+00 : f32
    %172 = vector.broadcast %cst_30 : f32 to vector<8x128xf32>
    %173 = arith.addf %172, %171 : vector<8x128xf32>
    %174 = arith.divf %172, %173 : vector<8x128xf32>
    %175 = vector.extract_strided_slice %162 {offsets = [0, 256], sizes = [8, 128], strides = [1, 1]} : vector<8x512xf32> to vector<8x128xf32>
    %176 = math.tanh %175 : vector<8x128xf32>
    %177 = vector.extract_strided_slice %162 {offsets = [0, 384], sizes = [8, 128], strides = [1, 1]} : vector<8x512xf32> to vector<8x128xf32>
    %178 = arith.negf %177 : vector<8x128xf32>
    %179 = math.exp %178 : vector<8x128xf32>
    %cst_31 = arith.constant 1.000000e+00 : f32
    %180 = vector.broadcast %cst_31 : f32 to vector<8x128xf32>
    %181 = arith.addf %180, %179 : vector<8x128xf32>
    %182 = arith.divf %180, %181 : vector<8x128xf32>
    %183 = arith.mulf %174, %126 : vector<8x128xf32>
    %184 = arith.mulf %168, %176 : vector<8x128xf32>
    %185 = arith.addf %183, %184 : vector<8x128xf32>
    %186 = math.tanh %185 : vector<8x128xf32>
    %187 = arith.mulf %182, %186 : vector<8x128xf32>
    %188 = vector.extract_strided_slice %8 {offsets = [3, 0, 0], sizes = [1, 8, 512], strides = [1, 1, 1]} : vector<8x8x512xf32> to vector<1x8x512xf32>
    %189 = vector.shape_cast %188 : vector<1x8x512xf32> to vector<8x512xf32>
    %190 = vector.extract_strided_slice %160 {offsets = [0, 0], sizes = [8, 512], strides = [1, 1]} : vector<8x1024xf32> to vector<8x512xf32>
    %191 = arith.addf %189, %190 : vector<8x512xf32>
    %192 = vector.extract_strided_slice %191 {offsets = [0, 0], sizes = [8, 128], strides = [1, 1]} : vector<8x512xf32> to vector<8x128xf32>
    %193 = arith.negf %192 : vector<8x128xf32>
    %194 = math.exp %193 : vector<8x128xf32>
    %cst_32 = arith.constant 1.000000e+00 : f32
    %195 = vector.broadcast %cst_32 : f32 to vector<8x128xf32>
    %196 = arith.addf %195, %194 : vector<8x128xf32>
    %197 = arith.divf %195, %196 : vector<8x128xf32>
    %198 = vector.extract_strided_slice %191 {offsets = [0, 128], sizes = [8, 128], strides = [1, 1]} : vector<8x512xf32> to vector<8x128xf32>
    %199 = arith.negf %198 : vector<8x128xf32>
    %200 = math.exp %199 : vector<8x128xf32>
    %cst_33 = arith.constant 1.000000e+00 : f32
    %201 = vector.broadcast %cst_33 : f32 to vector<8x128xf32>
    %202 = arith.addf %201, %200 : vector<8x128xf32>
    %203 = arith.divf %201, %202 : vector<8x128xf32>
    %204 = vector.extract_strided_slice %191 {offsets = [0, 256], sizes = [8, 128], strides = [1, 1]} : vector<8x512xf32> to vector<8x128xf32>
    %205 = math.tanh %204 : vector<8x128xf32>
    %206 = vector.extract_strided_slice %191 {offsets = [0, 384], sizes = [8, 128], strides = [1, 1]} : vector<8x512xf32> to vector<8x128xf32>
    %207 = arith.negf %206 : vector<8x128xf32>
    %208 = math.exp %207 : vector<8x128xf32>
    %cst_34 = arith.constant 1.000000e+00 : f32
    %209 = vector.broadcast %cst_34 : f32 to vector<8x128xf32>
    %210 = arith.addf %209, %208 : vector<8x128xf32>
    %211 = arith.divf %209, %210 : vector<8x128xf32>
    %212 = arith.mulf %203, %155 : vector<8x128xf32>
    %213 = arith.mulf %197, %205 : vector<8x128xf32>
    %214 = arith.addf %212, %213 : vector<8x128xf32>
    %215 = math.tanh %214 : vector<8x128xf32>
    %216 = arith.mulf %211, %215 : vector<8x128xf32>
    %217 = tpu.concatenate %216, %187 in 1 : vector<8x128xf32>, vector<8x128xf32> -> vector<8x256xf32>
    %218 = arith.truncf %217 : vector<8x256xf32> to vector<8x256xbf16>
    %cst_35 = arith.constant dense<0.000000e+00> : vector<8x1024xf32>
    %219 = tpu.matmul %218, %0, %cst_35 {dimension_numbers = #tpu.dot_dimension_numbers<[1], [0], [0], [1], [0, 0, 1, 1], [], []>} : vector<8x256xbf16>, vector<256x1024xbf16>, vector<8x1024xf32> -> vector<8x1024xf32>
    %220 = vector.extract_strided_slice %219 {offsets = [0, 512], sizes = [8, 512], strides = [1, 1]} : vector<8x1024xf32> to vector<8x512xf32>
    %221 = arith.addf %220, %11 : vector<8x512xf32>
    %222 = vector.extract_strided_slice %221 {offsets = [0, 0], sizes = [8, 128], strides = [1, 1]} : vector<8x512xf32> to vector<8x128xf32>
    %223 = arith.negf %222 : vector<8x128xf32>
    %224 = math.exp %223 : vector<8x128xf32>
    %cst_36 = arith.constant 1.000000e+00 : f32
    %225 = vector.broadcast %cst_36 : f32 to vector<8x128xf32>
    %226 = arith.addf %225, %224 : vector<8x128xf32>
    %227 = arith.divf %225, %226 : vector<8x128xf32>
    %228 = vector.extract_strided_slice %221 {offsets = [0, 128], sizes = [8, 128], strides = [1, 1]} : vector<8x512xf32> to vector<8x128xf32>
    %229 = arith.negf %228 : vector<8x128xf32>
    %230 = math.exp %229 : vector<8x128xf32>
    %cst_37 = arith.constant 1.000000e+00 : f32
    %231 = vector.broadcast %cst_37 : f32 to vector<8x128xf32>
    %232 = arith.addf %231, %230 : vector<8x128xf32>
    %233 = arith.divf %231, %232 : vector<8x128xf32>
    %234 = vector.extract_strided_slice %221 {offsets = [0, 256], sizes = [8, 128], strides = [1, 1]} : vector<8x512xf32> to vector<8x128xf32>
    %235 = math.tanh %234 : vector<8x128xf32>
    %236 = vector.extract_strided_slice %221 {offsets = [0, 384], sizes = [8, 128], strides = [1, 1]} : vector<8x512xf32> to vector<8x128xf32>
    %237 = arith.negf %236 : vector<8x128xf32>
    %238 = math.exp %237 : vector<8x128xf32>
    %cst_38 = arith.constant 1.000000e+00 : f32
    %239 = vector.broadcast %cst_38 : f32 to vector<8x128xf32>
    %240 = arith.addf %239, %238 : vector<8x128xf32>
    %241 = arith.divf %239, %240 : vector<8x128xf32>
    %242 = arith.mulf %233, %185 : vector<8x128xf32>
    %243 = arith.mulf %227, %235 : vector<8x128xf32>
    %244 = arith.addf %242, %243 : vector<8x128xf32>
    %245 = math.tanh %244 : vector<8x128xf32>
    %246 = arith.mulf %241, %245 : vector<8x128xf32>
    %247 = vector.extract_strided_slice %8 {offsets = [4, 0, 0], sizes = [1, 8, 512], strides = [1, 1, 1]} : vector<8x8x512xf32> to vector<1x8x512xf32>
    %248 = vector.shape_cast %247 : vector<1x8x512xf32> to vector<8x512xf32>
    %249 = vector.extract_strided_slice %219 {offsets = [0, 0], sizes = [8, 512], strides = [1, 1]} : vector<8x1024xf32> to vector<8x512xf32>
    %250 = arith.addf %248, %249 : vector<8x512xf32>
    %251 = vector.extract_strided_slice %250 {offsets = [0, 0], sizes = [8, 128], strides = [1, 1]} : vector<8x512xf32> to vector<8x128xf32>
    %252 = arith.negf %251 : vector<8x128xf32>
    %253 = math.exp %252 : vector<8x128xf32>
    %cst_39 = arith.constant 1.000000e+00 : f32
    %254 = vector.broadcast %cst_39 : f32 to vector<8x128xf32>
    %255 = arith.addf %254, %253 : vector<8x128xf32>
    %256 = arith.divf %254, %255 : vector<8x128xf32>
    %257 = vector.extract_strided_slice %250 {offsets = [0, 128], sizes = [8, 128], strides = [1, 1]} : vector<8x512xf32> to vector<8x128xf32>
    %258 = arith.negf %257 : vector<8x128xf32>
    %259 = math.exp %258 : vector<8x128xf32>
    %cst_40 = arith.constant 1.000000e+00 : f32
    %260 = vector.broadcast %cst_40 : f32 to vector<8x128xf32>
    %261 = arith.addf %260, %259 : vector<8x128xf32>
    %262 = arith.divf %260, %261 : vector<8x128xf32>
    %263 = vector.extract_strided_slice %250 {offsets = [0, 256], sizes = [8, 128], strides = [1, 1]} : vector<8x512xf32> to vector<8x128xf32>
    %264 = math.tanh %263 : vector<8x128xf32>
    %265 = vector.extract_strided_slice %250 {offsets = [0, 384], sizes = [8, 128], strides = [1, 1]} : vector<8x512xf32> to vector<8x128xf32>
    %266 = arith.negf %265 : vector<8x128xf32>
    %267 = math.exp %266 : vector<8x128xf32>
    %cst_41 = arith.constant 1.000000e+00 : f32
    %268 = vector.broadcast %cst_41 : f32 to vector<8x128xf32>
    %269 = arith.addf %268, %267 : vector<8x128xf32>
    %270 = arith.divf %268, %269 : vector<8x128xf32>
    %271 = arith.mulf %262, %214 : vector<8x128xf32>
    %272 = arith.mulf %256, %264 : vector<8x128xf32>
    %273 = arith.addf %271, %272 : vector<8x128xf32>
    %274 = math.tanh %273 : vector<8x128xf32>
    %275 = arith.mulf %270, %274 : vector<8x128xf32>
    %276 = tpu.concatenate %275, %246 in 1 : vector<8x128xf32>, vector<8x128xf32> -> vector<8x256xf32>
    %277 = arith.truncf %276 : vector<8x256xf32> to vector<8x256xbf16>
    %cst_42 = arith.constant dense<0.000000e+00> : vector<8x1024xf32>
    %278 = tpu.matmul %277, %0, %cst_42 {dimension_numbers = #tpu.dot_dimension_numbers<[1], [0], [0], [1], [0, 0, 1, 1], [], []>} : vector<8x256xbf16>, vector<256x1024xbf16>, vector<8x1024xf32> -> vector<8x1024xf32>
    %279 = vector.extract_strided_slice %278 {offsets = [0, 512], sizes = [8, 512], strides = [1, 1]} : vector<8x1024xf32> to vector<8x512xf32>
    %280 = arith.addf %279, %11 : vector<8x512xf32>
    %281 = vector.extract_strided_slice %280 {offsets = [0, 0], sizes = [8, 128], strides = [1, 1]} : vector<8x512xf32> to vector<8x128xf32>
    %282 = arith.negf %281 : vector<8x128xf32>
    %283 = math.exp %282 : vector<8x128xf32>
    %cst_43 = arith.constant 1.000000e+00 : f32
    %284 = vector.broadcast %cst_43 : f32 to vector<8x128xf32>
    %285 = arith.addf %284, %283 : vector<8x128xf32>
    %286 = arith.divf %284, %285 : vector<8x128xf32>
    %287 = vector.extract_strided_slice %280 {offsets = [0, 128], sizes = [8, 128], strides = [1, 1]} : vector<8x512xf32> to vector<8x128xf32>
    %288 = arith.negf %287 : vector<8x128xf32>
    %289 = math.exp %288 : vector<8x128xf32>
    %cst_44 = arith.constant 1.000000e+00 : f32
    %290 = vector.broadcast %cst_44 : f32 to vector<8x128xf32>
    %291 = arith.addf %290, %289 : vector<8x128xf32>
    %292 = arith.divf %290, %291 : vector<8x128xf32>
    %293 = vector.extract_strided_slice %280 {offsets = [0, 256], sizes = [8, 128], strides = [1, 1]} : vector<8x512xf32> to vector<8x128xf32>
    %294 = math.tanh %293 : vector<8x128xf32>
    %295 = vector.extract_strided_slice %280 {offsets = [0, 384], sizes = [8, 128], strides = [1, 1]} : vector<8x512xf32> to vector<8x128xf32>
    %296 = arith.negf %295 : vector<8x128xf32>
    %297 = math.exp %296 : vector<8x128xf32>
    %cst_45 = arith.constant 1.000000e+00 : f32
    %298 = vector.broadcast %cst_45 : f32 to vector<8x128xf32>
    %299 = arith.addf %298, %297 : vector<8x128xf32>
    %300 = arith.divf %298, %299 : vector<8x128xf32>
    %301 = arith.mulf %292, %244 : vector<8x128xf32>
    %302 = arith.mulf %286, %294 : vector<8x128xf32>
    %303 = arith.addf %301, %302 : vector<8x128xf32>
    %304 = math.tanh %303 : vector<8x128xf32>
    %305 = arith.mulf %300, %304 : vector<8x128xf32>
    %306 = vector.extract_strided_slice %8 {offsets = [5, 0, 0], sizes = [1, 8, 512], strides = [1, 1, 1]} : vector<8x8x512xf32> to vector<1x8x512xf32>
    %307 = vector.shape_cast %306 : vector<1x8x512xf32> to vector<8x512xf32>
    %308 = vector.extract_strided_slice %278 {offsets = [0, 0], sizes = [8, 512], strides = [1, 1]} : vector<8x1024xf32> to vector<8x512xf32>
    %309 = arith.addf %307, %308 : vector<8x512xf32>
    %310 = vector.extract_strided_slice %309 {offsets = [0, 0], sizes = [8, 128], strides = [1, 1]} : vector<8x512xf32> to vector<8x128xf32>
    %311 = arith.negf %310 : vector<8x128xf32>
    %312 = math.exp %311 : vector<8x128xf32>
    %cst_46 = arith.constant 1.000000e+00 : f32
    %313 = vector.broadcast %cst_46 : f32 to vector<8x128xf32>
    %314 = arith.addf %313, %312 : vector<8x128xf32>
    %315 = arith.divf %313, %314 : vector<8x128xf32>
    %316 = vector.extract_strided_slice %309 {offsets = [0, 128], sizes = [8, 128], strides = [1, 1]} : vector<8x512xf32> to vector<8x128xf32>
    %317 = arith.negf %316 : vector<8x128xf32>
    %318 = math.exp %317 : vector<8x128xf32>
    %cst_47 = arith.constant 1.000000e+00 : f32
    %319 = vector.broadcast %cst_47 : f32 to vector<8x128xf32>
    %320 = arith.addf %319, %318 : vector<8x128xf32>
    %321 = arith.divf %319, %320 : vector<8x128xf32>
    %322 = vector.extract_strided_slice %309 {offsets = [0, 256], sizes = [8, 128], strides = [1, 1]} : vector<8x512xf32> to vector<8x128xf32>
    %323 = math.tanh %322 : vector<8x128xf32>
    %324 = vector.extract_strided_slice %309 {offsets = [0, 384], sizes = [8, 128], strides = [1, 1]} : vector<8x512xf32> to vector<8x128xf32>
    %325 = arith.negf %324 : vector<8x128xf32>
    %326 = math.exp %325 : vector<8x128xf32>
    %cst_48 = arith.constant 1.000000e+00 : f32
    %327 = vector.broadcast %cst_48 : f32 to vector<8x128xf32>
    %328 = arith.addf %327, %326 : vector<8x128xf32>
    %329 = arith.divf %327, %328 : vector<8x128xf32>
    %330 = arith.mulf %321, %273 : vector<8x128xf32>
    %331 = arith.mulf %315, %323 : vector<8x128xf32>
    %332 = arith.addf %330, %331 : vector<8x128xf32>
    %333 = math.tanh %332 : vector<8x128xf32>
    %334 = arith.mulf %329, %333 : vector<8x128xf32>
    %335 = tpu.concatenate %334, %305 in 1 : vector<8x128xf32>, vector<8x128xf32> -> vector<8x256xf32>
    %336 = arith.truncf %335 : vector<8x256xf32> to vector<8x256xbf16>
    %cst_49 = arith.constant dense<0.000000e+00> : vector<8x1024xf32>
    %337 = tpu.matmul %336, %0, %cst_49 {dimension_numbers = #tpu.dot_dimension_numbers<[1], [0], [0], [1], [0, 0, 1, 1], [], []>} : vector<8x256xbf16>, vector<256x1024xbf16>, vector<8x1024xf32> -> vector<8x1024xf32>
    %338 = vector.extract_strided_slice %337 {offsets = [0, 512], sizes = [8, 512], strides = [1, 1]} : vector<8x1024xf32> to vector<8x512xf32>
    %339 = arith.addf %338, %11 : vector<8x512xf32>
    %340 = vector.extract_strided_slice %339 {offsets = [0, 0], sizes = [8, 128], strides = [1, 1]} : vector<8x512xf32> to vector<8x128xf32>
    %341 = arith.negf %340 : vector<8x128xf32>
    %342 = math.exp %341 : vector<8x128xf32>
    %cst_50 = arith.constant 1.000000e+00 : f32
    %343 = vector.broadcast %cst_50 : f32 to vector<8x128xf32>
    %344 = arith.addf %343, %342 : vector<8x128xf32>
    %345 = arith.divf %343, %344 : vector<8x128xf32>
    %346 = vector.extract_strided_slice %339 {offsets = [0, 128], sizes = [8, 128], strides = [1, 1]} : vector<8x512xf32> to vector<8x128xf32>
    %347 = arith.negf %346 : vector<8x128xf32>
    %348 = math.exp %347 : vector<8x128xf32>
    %cst_51 = arith.constant 1.000000e+00 : f32
    %349 = vector.broadcast %cst_51 : f32 to vector<8x128xf32>
    %350 = arith.addf %349, %348 : vector<8x128xf32>
    %351 = arith.divf %349, %350 : vector<8x128xf32>
    %352 = vector.extract_strided_slice %339 {offsets = [0, 256], sizes = [8, 128], strides = [1, 1]} : vector<8x512xf32> to vector<8x128xf32>
    %353 = math.tanh %352 : vector<8x128xf32>
    %354 = vector.extract_strided_slice %339 {offsets = [0, 384], sizes = [8, 128], strides = [1, 1]} : vector<8x512xf32> to vector<8x128xf32>
    %355 = arith.negf %354 : vector<8x128xf32>
    %356 = math.exp %355 : vector<8x128xf32>
    %cst_52 = arith.constant 1.000000e+00 : f32
    %357 = vector.broadcast %cst_52 : f32 to vector<8x128xf32>
    %358 = arith.addf %357, %356 : vector<8x128xf32>
    %359 = arith.divf %357, %358 : vector<8x128xf32>
    %360 = arith.mulf %351, %303 : vector<8x128xf32>
    %361 = arith.mulf %345, %353 : vector<8x128xf32>
    %362 = arith.addf %360, %361 : vector<8x128xf32>
    %363 = math.tanh %362 : vector<8x128xf32>
    %364 = arith.mulf %359, %363 : vector<8x128xf32>
    %365 = vector.extract_strided_slice %8 {offsets = [6, 0, 0], sizes = [1, 8, 512], strides = [1, 1, 1]} : vector<8x8x512xf32> to vector<1x8x512xf32>
    %366 = vector.shape_cast %365 : vector<1x8x512xf32> to vector<8x512xf32>
    %367 = vector.extract_strided_slice %337 {offsets = [0, 0], sizes = [8, 512], strides = [1, 1]} : vector<8x1024xf32> to vector<8x512xf32>
    %368 = arith.addf %366, %367 : vector<8x512xf32>
    %369 = vector.extract_strided_slice %368 {offsets = [0, 0], sizes = [8, 128], strides = [1, 1]} : vector<8x512xf32> to vector<8x128xf32>
    %370 = arith.negf %369 : vector<8x128xf32>
    %371 = math.exp %370 : vector<8x128xf32>
    %cst_53 = arith.constant 1.000000e+00 : f32
    %372 = vector.broadcast %cst_53 : f32 to vector<8x128xf32>
    %373 = arith.addf %372, %371 : vector<8x128xf32>
    %374 = arith.divf %372, %373 : vector<8x128xf32>
    %375 = vector.extract_strided_slice %368 {offsets = [0, 128], sizes = [8, 128], strides = [1, 1]} : vector<8x512xf32> to vector<8x128xf32>
    %376 = arith.negf %375 : vector<8x128xf32>
    %377 = math.exp %376 : vector<8x128xf32>
    %cst_54 = arith.constant 1.000000e+00 : f32
    %378 = vector.broadcast %cst_54 : f32 to vector<8x128xf32>
    %379 = arith.addf %378, %377 : vector<8x128xf32>
    %380 = arith.divf %378, %379 : vector<8x128xf32>
    %381 = vector.extract_strided_slice %368 {offsets = [0, 256], sizes = [8, 128], strides = [1, 1]} : vector<8x512xf32> to vector<8x128xf32>
    %382 = math.tanh %381 : vector<8x128xf32>
    %383 = vector.extract_strided_slice %368 {offsets = [0, 384], sizes = [8, 128], strides = [1, 1]} : vector<8x512xf32> to vector<8x128xf32>
    %384 = arith.negf %383 : vector<8x128xf32>
    %385 = math.exp %384 : vector<8x128xf32>
    %cst_55 = arith.constant 1.000000e+00 : f32
    %386 = vector.broadcast %cst_55 : f32 to vector<8x128xf32>
    %387 = arith.addf %386, %385 : vector<8x128xf32>
    %388 = arith.divf %386, %387 : vector<8x128xf32>
    %389 = arith.mulf %380, %332 : vector<8x128xf32>
    %390 = arith.mulf %374, %382 : vector<8x128xf32>
    %391 = arith.addf %389, %390 : vector<8x128xf32>
    %392 = math.tanh %391 : vector<8x128xf32>
    %393 = arith.mulf %388, %392 : vector<8x128xf32>
    %394 = tpu.concatenate %393, %364 in 1 : vector<8x128xf32>, vector<8x128xf32> -> vector<8x256xf32>
    %395 = arith.truncf %394 : vector<8x256xf32> to vector<8x256xbf16>
    %cst_56 = arith.constant dense<0.000000e+00> : vector<8x1024xf32>
    %396 = tpu.matmul %395, %0, %cst_56 {dimension_numbers = #tpu.dot_dimension_numbers<[1], [0], [0], [1], [0, 0, 1, 1], [], []>} : vector<8x256xbf16>, vector<256x1024xbf16>, vector<8x1024xf32> -> vector<8x1024xf32>
    %397 = vector.extract_strided_slice %396 {offsets = [0, 512], sizes = [8, 512], strides = [1, 1]} : vector<8x1024xf32> to vector<8x512xf32>
    %398 = arith.addf %397, %11 : vector<8x512xf32>
    %399 = vector.extract_strided_slice %398 {offsets = [0, 0], sizes = [8, 128], strides = [1, 1]} : vector<8x512xf32> to vector<8x128xf32>
    %400 = arith.negf %399 : vector<8x128xf32>
    %401 = math.exp %400 : vector<8x128xf32>
    %cst_57 = arith.constant 1.000000e+00 : f32
    %402 = vector.broadcast %cst_57 : f32 to vector<8x128xf32>
    %403 = arith.addf %402, %401 : vector<8x128xf32>
    %404 = arith.divf %402, %403 : vector<8x128xf32>
    %405 = vector.extract_strided_slice %398 {offsets = [0, 128], sizes = [8, 128], strides = [1, 1]} : vector<8x512xf32> to vector<8x128xf32>
    %406 = arith.negf %405 : vector<8x128xf32>
    %407 = math.exp %406 : vector<8x128xf32>
    %cst_58 = arith.constant 1.000000e+00 : f32
    %408 = vector.broadcast %cst_58 : f32 to vector<8x128xf32>
    %409 = arith.addf %408, %407 : vector<8x128xf32>
    %410 = arith.divf %408, %409 : vector<8x128xf32>
    %411 = vector.extract_strided_slice %398 {offsets = [0, 256], sizes = [8, 128], strides = [1, 1]} : vector<8x512xf32> to vector<8x128xf32>
    %412 = math.tanh %411 : vector<8x128xf32>
    %413 = vector.extract_strided_slice %398 {offsets = [0, 384], sizes = [8, 128], strides = [1, 1]} : vector<8x512xf32> to vector<8x128xf32>
    %414 = arith.negf %413 : vector<8x128xf32>
    %415 = math.exp %414 : vector<8x128xf32>
    %cst_59 = arith.constant 1.000000e+00 : f32
    %416 = vector.broadcast %cst_59 : f32 to vector<8x128xf32>
    %417 = arith.addf %416, %415 : vector<8x128xf32>
    %418 = arith.divf %416, %417 : vector<8x128xf32>
    %419 = arith.mulf %410, %362 : vector<8x128xf32>
    %420 = arith.mulf %404, %412 : vector<8x128xf32>
    %421 = arith.addf %419, %420 : vector<8x128xf32>
    %422 = math.tanh %421 : vector<8x128xf32>
    %423 = arith.mulf %418, %422 : vector<8x128xf32>
    %424 = vector.extract_strided_slice %8 {offsets = [7, 0, 0], sizes = [1, 8, 512], strides = [1, 1, 1]} : vector<8x8x512xf32> to vector<1x8x512xf32>
    %425 = vector.shape_cast %424 : vector<1x8x512xf32> to vector<8x512xf32>
    %426 = vector.extract_strided_slice %396 {offsets = [0, 0], sizes = [8, 512], strides = [1, 1]} : vector<8x1024xf32> to vector<8x512xf32>
    %427 = arith.addf %425, %426 : vector<8x512xf32>
    %428 = vector.extract_strided_slice %427 {offsets = [0, 0], sizes = [8, 128], strides = [1, 1]} : vector<8x512xf32> to vector<8x128xf32>
    %429 = arith.negf %428 : vector<8x128xf32>
    %430 = math.exp %429 : vector<8x128xf32>
    %cst_60 = arith.constant 1.000000e+00 : f32
    %431 = vector.broadcast %cst_60 : f32 to vector<8x128xf32>
    %432 = arith.addf %431, %430 : vector<8x128xf32>
    %433 = arith.divf %431, %432 : vector<8x128xf32>
    %434 = vector.extract_strided_slice %427 {offsets = [0, 128], sizes = [8, 128], strides = [1, 1]} : vector<8x512xf32> to vector<8x128xf32>
    %435 = arith.negf %434 : vector<8x128xf32>
    %436 = math.exp %435 : vector<8x128xf32>
    %cst_61 = arith.constant 1.000000e+00 : f32
    %437 = vector.broadcast %cst_61 : f32 to vector<8x128xf32>
    %438 = arith.addf %437, %436 : vector<8x128xf32>
    %439 = arith.divf %437, %438 : vector<8x128xf32>
    %440 = vector.extract_strided_slice %427 {offsets = [0, 256], sizes = [8, 128], strides = [1, 1]} : vector<8x512xf32> to vector<8x128xf32>
    %441 = math.tanh %440 : vector<8x128xf32>
    %442 = vector.extract_strided_slice %427 {offsets = [0, 384], sizes = [8, 128], strides = [1, 1]} : vector<8x512xf32> to vector<8x128xf32>
    %443 = arith.negf %442 : vector<8x128xf32>
    %444 = math.exp %443 : vector<8x128xf32>
    %cst_62 = arith.constant 1.000000e+00 : f32
    %445 = vector.broadcast %cst_62 : f32 to vector<8x128xf32>
    %446 = arith.addf %445, %444 : vector<8x128xf32>
    %447 = arith.divf %445, %446 : vector<8x128xf32>
    %448 = arith.mulf %439, %391 : vector<8x128xf32>
    %449 = arith.mulf %433, %441 : vector<8x128xf32>
    %450 = arith.addf %448, %449 : vector<8x128xf32>
    %451 = math.tanh %450 : vector<8x128xf32>
    %452 = arith.mulf %447, %451 : vector<8x128xf32>
    %453 = tpu.concatenate %452, %423 in 1 : vector<8x128xf32>, vector<8x128xf32> -> vector<8x256xf32>
    %454 = arith.truncf %453 : vector<8x256xf32> to vector<8x256xbf16>
    %cst_63 = arith.constant dense<0.000000e+00> : vector<8x1024xf32>
    %455 = tpu.matmul %454, %0, %cst_63 {dimension_numbers = #tpu.dot_dimension_numbers<[1], [0], [0], [1], [0, 0, 1, 1], [], []>} : vector<8x256xbf16>, vector<256x1024xbf16>, vector<8x1024xf32> -> vector<8x1024xf32>
    %456 = vector.extract_strided_slice %455 {offsets = [0, 512], sizes = [8, 512], strides = [1, 1]} : vector<8x1024xf32> to vector<8x512xf32>
    %457 = arith.addf %456, %11 : vector<8x512xf32>
    %458 = vector.extract_strided_slice %457 {offsets = [0, 0], sizes = [8, 128], strides = [1, 1]} : vector<8x512xf32> to vector<8x128xf32>
    %459 = arith.negf %458 : vector<8x128xf32>
    %460 = math.exp %459 : vector<8x128xf32>
    %cst_64 = arith.constant 1.000000e+00 : f32
    %461 = vector.broadcast %cst_64 : f32 to vector<8x128xf32>
    %462 = arith.addf %461, %460 : vector<8x128xf32>
    %463 = arith.divf %461, %462 : vector<8x128xf32>
    %464 = vector.extract_strided_slice %457 {offsets = [0, 128], sizes = [8, 128], strides = [1, 1]} : vector<8x512xf32> to vector<8x128xf32>
    %465 = arith.negf %464 : vector<8x128xf32>
    %466 = math.exp %465 : vector<8x128xf32>
    %cst_65 = arith.constant 1.000000e+00 : f32
    %467 = vector.broadcast %cst_65 : f32 to vector<8x128xf32>
    %468 = arith.addf %467, %466 : vector<8x128xf32>
    %469 = arith.divf %467, %468 : vector<8x128xf32>
    %470 = vector.extract_strided_slice %457 {offsets = [0, 256], sizes = [8, 128], strides = [1, 1]} : vector<8x512xf32> to vector<8x128xf32>
    %471 = math.tanh %470 : vector<8x128xf32>
    %472 = vector.extract_strided_slice %457 {offsets = [0, 384], sizes = [8, 128], strides = [1, 1]} : vector<8x512xf32> to vector<8x128xf32>
    %473 = arith.negf %472 : vector<8x128xf32>
    %474 = math.exp %473 : vector<8x128xf32>
    %cst_66 = arith.constant 1.000000e+00 : f32
    %475 = vector.broadcast %cst_66 : f32 to vector<8x128xf32>
    %476 = arith.addf %475, %474 : vector<8x128xf32>
    %477 = arith.divf %475, %476 : vector<8x128xf32>
    %478 = arith.mulf %469, %421 : vector<8x128xf32>
    %479 = arith.mulf %463, %471 : vector<8x128xf32>
    %480 = arith.addf %478, %479 : vector<8x128xf32>
    %481 = math.tanh %480 : vector<8x128xf32>
    %482 = arith.mulf %477, %481 : vector<8x128xf32>
    %c0_67 = arith.constant 0 : index
    %c0_68 = arith.constant 0 : index
    %483 = vector.load %arg6[%c0_67, %c0_68] : memref<8x128xf32, #tpu.memory_space<vmem>>, vector<8x128xf32>
    tpu.vector_store %arg6[%c0_67, %c0_68], %482 {strides = array<i32>} : memref<8x128xf32, #tpu.memory_space<vmem>>, vector<8x128xf32>,
    return
  }
  func.func @transform_0(%arg0: i32) -> (i32, i32, i32) {
    %c0_i32 = arith.constant 0 : i32
    %c0_i32_0 = arith.constant 0 : i32
    %c0_i32_1 = arith.constant 0 : i32
    %c0_i32_2 = arith.constant 0 : i32
    return %c0_i32, %c0_i32_0, %c0_i32_1 : i32, i32, i32
  }
  func.func @transform_1(%arg0: i32) -> (i32, i32) {
    %c0_i32 = arith.constant 0 : i32
    %c0_i32_0 = arith.constant 0 : i32
    %c0_i32_1 = arith.constant 0 : i32
    return %c0_i32, %c0_i32_0 : i32, i32
  }
  func.func @transform_2(%arg0: i32) -> (i32, i32) {
    %c0_i32 = arith.constant 0 : i32
    %c0_i32_0 = arith.constant 0 : i32
    %c0_i32_1 = arith.constant 0 : i32
    return %c0_i32, %c0_i32_0 : i32, i32
  }
  func.func @transform_3(%arg0: i32) -> (i32, i32) {
    %c0_i32 = arith.constant 0 : i32
    %c0_i32_0 = arith.constant 0 : i32
    %c0_i32_1 = arith.constant 0 : i32
    return %c0_i32, %c0_i32_0 : i32, i32
  }
  func.func @transform_4(%arg0: i32) -> (i32, i32) {
    %c0_i32 = arith.constant 0 : i32
    %c0_i32_0 = arith.constant 0 : i32
    %c0_i32_1 = arith.constant 0 : i32
    return %c0_i32, %c0_i32_0 : i32, i32
  }
  func.func @transform_5(%arg0: i32) -> (i32, i32) {
    %c0_i32 = arith.constant 0 : i32
    %c0_i32_0 = arith.constant 0 : i32
    %c0_i32_1 = arith.constant 0 : i32
    return %c0_i32, %c0_i32_0 : i32, i32
  }
}

</mosaic_0001>

<bundles_post_ra>
// kernel: lstm_model_forward.1
= control target key start
LH: loop header
LB: loop body
LE: loop exit
PB: predicated region body
PF: predicated region fallthrough
CT: control target
= control target key end

     0   :  { %v3199_v1 = vmov 0   ;;  %vm223_vm0 = vcmask 130048   ;;  %s5155_s1 = inlined_call_operand.vmem [shape: bf16[16,512], index: 1, kind: input, shape index: {}]   ;;  %s5156_s0 = inlined_call_operand.vmem [shape: bf16[8,8,16], index: 0, kind: input, shape index: {}]   ;;  %s5157_s3 = inlined_call_operand.vmem [shape: bf16[256,1024], index: 3, kind: input, shape index: {}]   ;;  %s5158_s2 = inlined_call_operand.vmem [shape: f32[1,512], index: 2, kind: input, shape index: {}]   ;;  %s5159_s4 = inlined_call_operand.vmem [shape: f32[1,512], index: 4, kind: input, shape index: {}]   ;;  %s5160_s5 = inlined_call_operand.vmem [shape: f32[8,128], index: 5, kind: output, shape index: {}]  }
   0x1   :  { %v2933_v0 = vld [vmem:[%s5155_s1 + $0x4] ss:$16 sps:$4 sm:$0xff]   ;;  %268 = vmatprep.mubr.bf16.mxu0 %v3199_v1  ;;  %341 = vmatprep.mubr.bf16.mxu1 %v3199_v1  ;;  %v2935_v2 = vld [vmem:[%s5155_s1] ss:$16 sps:$4 sm:$0xff]   ;;  %v2937_v4 = vld [vmem:[%s5155_s1 + $0xc] ss:$16 sps:$4 sm:$0xff]  }
   0x2   :  { %250 = vmatprep.subr.bf16.mxu0 %v2933_v0  ;;  %v2936_v3 = vld [vmem:[%s5156_s0] sm:$0xff]   ;;  %v2939_v5 = vld [vmem:[%s5155_s1 + $0x8] ss:$16 sps:$4 sm:$0xff]   ;;  %323 = vmatprep.subr.bf16.mxu1 %v2937_v4 }
   0x3   :  { %251 = vmatpush1.bf16.msra.mxu0 %v2935_v2  ;;  %v77_v6 = vld [vmem:[%s5157_s3 + $0x1c0] sm:$0xff]  ;;  %v78_v8 = vld [vmem:[%s5157_s3 + $0x1c8] sm:$0xff]  ;;  %324 = vmatpush1.bf16.msra.mxu1 %v2939_v5 }
   0x4   :  { %v81_v7 = vld [vmem:[%s5157_s3 + $0x1e0] sm:$0xff]  ;;  %v82_v9 = vld [vmem:[%s5157_s3 + $0x1e8] sm:$0xff] }
   0x5   :  { %v3260_v10 = vcombine.high %v77_v6, %v81_v7  ;;  %v3262_v11 = vcombine.high %v78_v8, %v82_v9  ;;  %v3264_v12 = vcombine.low %v77_v6, %v81_v7  ;;  %v69_v13 = vld [vmem:[%s5157_s3 + $0x180] sm:$0xff]  ;;  %v70_v15 = vld [vmem:[%s5157_s3 + $0x188] sm:$0xff]  ;;  %v3276_v16 = vcombine.low %v78_v8, %v82_v9 }
   0x6   :  { %v73_v14 = vld [vmem:[%s5157_s3 + $0x1a0] sm:$0xff]  ;;  %2747 = vmatmul.mubr.msk.bf16.vlgmr.msra.gmra.mxu0 %vm223_vm0, %v2936_v3  ;;  %v74_v18 = vld [vmem:[%s5157_s3 + $0x1a8] sm:$0xff]  ;;  %2751 = vmatmul.mubr.msk.bf16.vlgmr.msra.gmra.mxu1 %vm223_vm0, %v2936_v3 }
   0x7   :  { %5462 = vst [vmem:[#allocation2_spill] sm:$0xff] %v3260_v10  ;;  %5463 = vst [vmem:[#allocation3_spill] sm:$0xff] %v3262_v11  ;;  %v3278_v17 = vcombine.high %v69_v13, %v73_v14  ;;  %1070 = vmatprep.subr.bf16.mxu0 %v3260_v10  ;;  %1111 = vmatprep.subr.bf16.mxu1 %v3262_v11  ;;  %v3285_v19 = vcombine.high %v70_v15, %v74_v18  ;;  %v61_v22 = vld [vmem:[%s5157_s3 + $0x140] sm:$0xff]  ;;  %v62_v24 = vld [vmem:[%s5157_s3 + $0x148] sm:$0xff] }
   0x8   :  { %5464 = vst [vmem:[#allocation4_spill] sm:$0xff] %v3264_v12  ;;  %5465 = vst [vmem:[#allocation5_spill] sm:$0xff] %v3276_v16  ;;  %1071 = vmatpush1.bf16.msra.mxu0 %v3264_v12  ;;  %v3288_v20 = vcombine.low %v69_v13, %v73_v14  ;;  %278 = vmatprep.mubr.bf16.mxu0 %v3199_v1  ;;  %v3294_v21 = vcombine.low %v70_v15, %v74_v18  ;;  %v65_v23 = vld [vmem:[%s5157_s3 + $0x160] sm:$0xff]  ;;  %v66_v26 = vld [vmem:[%s5157_s3 + $0x168] sm:$0xff] }
   0x9   :  { %5466 = vst [vmem:[#allocation6_spill] sm:$0xff] %v3278_v17  ;;  %5467 = vst [vmem:[#allocation7_spill] sm:$0xff] %v3285_v19  ;;  %1072 = vmatprep.subr.bf16.mxu0 %v3278_v17  ;;  %1112 = vmatpush1.bf16.msra.mxu1 %v3276_v16  ;;  %v3309_v25 = vcombine.high %v61_v22, %v65_v23  ;;  %v3314_v27 = vcombine.high %v62_v24, %v66_v26  ;;  %v53_v30 = vld [vmem:[%s5157_s3 + $0x100] sm:$0xff]  ;;  %v54_v32 = vld [vmem:[%s5157_s3 + $0x108] sm:$0xff] }
   0xa   :  { %5468 = vst [vmem:[#allocation8_spill] sm:$0xff] %v3288_v20  ;;  %5469 = vst [vmem:[#allocation9_spill] sm:$0xff] %v3294_v21  ;;  %351 = vmatprep.mubr.bf16.mxu1 %v3199_v1  ;;  %1113 = vmatprep.subr.bf16.mxu1 %v3285_v19  ;;  %v3316_v28 = vcombine.low %v61_v22, %v65_v23  ;;  %v3318_v29 = vcombine.low %v62_v24, %v66_v26  ;;  %v57_v31 = vld [vmem:[%s5157_s3 + $0x120] sm:$0xff]  ;;  %v58_v34 = vld [vmem:[%s5157_s3 + $0x128] sm:$0xff] }
   0xb   :  { %5470 = vst [vmem:[#allocation10_spill] sm:$0xff] %v3309_v25  ;;  %5471 = vst [vmem:[#allocation11_spill] sm:$0xff] %v3314_v27  ;;  %v3333_v33 = vcombine.high %v53_v30, %v57_v31  ;;  %v3338_v35 = vcombine.high %v54_v32, %v58_v34  ;;  %v3340_v36 = vcombine.low %v53_v30, %v57_v31  ;;  %v45_v38 = vld [vmem:[%s5157_s3 + $0xc0] sm:$0xff]  ;;  %v46_v40 = vld [vmem:[%s5157_s3 + $0xc8] sm:$0xff] }
   0xc   :  { %1073 = vmatpush1.bf16.msra.mxu0 %v3288_v20  ;;  %5472 = vst [vmem:[#allocation12_spill] sm:$0xff] %v3316_v28  ;;  %5473 = vst [vmem:[#allocation13_spill] sm:$0xff] %v3318_v29  ;;  %v3342_v37 = vcombine.low %v54_v32, %v58_v34  ;;  %v49_v39 = vld [vmem:[%s5157_s3 + $0xe0] sm:$0xff]  ;;  %v50_v42 = vld [vmem:[%s5157_s3 + $0xe8] sm:$0xff] }
   0xd   :  { %1114 = vmatpush1.bf16.msra.mxu1 %v3294_v21  ;;  %1074 = vmatprep.subr.bf16.mxu0 %v3309_v25  ;;  %5474 = vst [vmem:[#allocation14_spill] sm:$0xff] %v3333_v33  ;;  %5475 = vst [vmem:[#allocation15_spill] sm:$0xff] %v3338_v35  ;;  %v3357_v41 = vcombine.high %v45_v38, %v49_v39  ;;  %v3362_v43 = vcombine.high %v46_v40, %v50_v42  ;;  %v37_v46 = vld [vmem:[%s5157_s3 + $0x80] sm:$0xff]  ;;  %v38_v48 = vld [vmem:[%s5157_s3 + $0x88] sm:$0xff] }
   0xe   :  { %1115 = vmatprep.subr.bf16.mxu1 %v3314_v27  ;;  %5476 = vst [vmem:[#allocation16_spill] sm:$0xff] %v3340_v36  ;;  %5477 = vst [vmem:[#allocation17_spill] sm:$0xff] %v3342_v37  ;;  %v3364_v44 = vcombine.low %v45_v38, %v49_v39  ;;  %v3366_v45 = vcombine.low %v46_v40, %v50_v42  ;;  %v41_v47 = vld [vmem:[%s5157_s3 + $0xa0] sm:$0xff]  ;;  %v42_v50 = vld [vmem:[%s5157_s3 + $0xa8] sm:$0xff] }
   0xf   :  { %5478 = vst [vmem:[#allocation18_spill] sm:$0xff] %v3357_v41  ;;  %5479 = vst [vmem:[#allocation19_spill] sm:$0xff] %v3362_v43  ;;  %v3381_v49 = vcombine.high %v37_v46, %v41_v47  ;;  %v3386_v51 = vcombine.high %v38_v48, %v42_v50  ;;  %v3388_v52 = vcombine.low %v37_v46, %v41_v47  ;;  %v29_v54 = vld [vmem:[%s5157_s3 + $0x40] sm:$0xff]  ;;  %v30_v56 = vld [vmem:[%s5157_s3 + $0x48] sm:$0xff] }
  0x10   :  { %1075 = vmatpush1.bf16.msra.mxu0 %v3316_v28  ;;  %5480 = vst [vmem:[#allocation20_spill] sm:$0xff] %v3364_v44  ;;  %5481 = vst [vmem:[#allocation21_spill] sm:$0xff] %v3366_v45  ;;  %v3390_v53 = vcombine.low %v38_v48, %v42_v50  ;;  %v33_v55 = vld [vmem:[%s5157_s3 + $0x60] sm:$0xff]  ;;  %v34_v58 = vld [vmem:[%s5157_s3 + $0x68] sm:$0xff] }
  0x11   :  { %1116 = vmatpush1.bf16.msra.mxu1 %v3318_v29  ;;  %1076 = vmatprep.subr.bf16.mxu0 %v3333_v33  ;;  %5482 = vst [vmem:[#allocation22_spill] sm:$0xff] %v3381_v49  ;;  %5483 = vst [vmem:[#allocation23_spill] sm:$0xff] %v3386_v51  ;;  %v3405_v57 = vcombine.high %v29_v54, %v33_v55  ;;  %v3410_v59 = vcombine.high %v30_v56, %v34_v58  ;;  %v21_v62 = vld [vmem:[%s5157_s3] sm:$0xff]  ;;  %v22_v0 = vld [vmem:[%s5157_s3 + $0x8] sm:$0xff] }
  0x12   :  { %1117 = vmatprep.subr.bf16.mxu1 %v3338_v35  ;;  %5484 = vst [vmem:[#allocation24_spill] sm:$0xff] %v3388_v52  ;;  %5485 = vst [vmem:[#allocation25_spill] sm:$0xff] %v3390_v53  ;;  %v3412_v60 = vcombine.low %v29_v54, %v33_v55  ;;  %v3415_v61 = vcombine.low %v30_v56, %v34_v58  ;;  %v25_v63 = vld [vmem:[%s5157_s3 + $0x20] sm:$0xff]  ;;  %v26_v3 = vld [vmem:[%s5157_s3 + $0x28] sm:$0xff] }
  0x13   :  { %5486 = vst [vmem:[#allocation26_spill] sm:$0xff] %v3405_v57  ;;  %5487 = vst [vmem:[#allocation27_spill] sm:$0xff] %v3410_v59  ;;  %v3429_v2 = vcombine.high %v21_v62, %v25_v63  ;;  %v3434_v4 = vcombine.high %v22_v0, %v26_v3  ;;  %v3436_v5 = vcombine.low %v21_v62, %v25_v63  ;;  %v141_v7 = vld [vmem:[%s5157_s3 + $0x3c0] sm:$0xff]  ;;  %v142_v9 = vld [vmem:[%s5157_s3 + $0x3c8] sm:$0xff] }
  0x14   :  { %1077 = vmatpush1.bf16.msra.mxu0 %v3340_v36  ;;  %5488 = vst [vmem:[#allocation28_spill] sm:$0xff] %v3412_v60  ;;  %5489 = vst [vmem:[#allocation29_spill] sm:$0xff] %v3415_v61  ;;  %v3438_v6 = vcombine.low %v22_v0, %v26_v3  ;;  %v145_v8 = vld [vmem:[%s5157_s3 + $0x3e0] sm:$0xff]  ;;  %v146_v14 = vld [vmem:[%s5157_s3 + $0x3e8] sm:$0xff] }
  0x15   :  { %1118 = vmatpush1.bf16.msra.mxu1 %v3342_v37  ;;  %1078 = vmatprep.subr.bf16.mxu0 %v3357_v41  ;;  %5490 = vst [vmem:[#allocation30_spill] sm:$0xff] %v3429_v2  ;;  %5491 = vst [vmem:[#allocation31_spill] sm:$0xff] %v3434_v4  ;;  %v3453_v13 = vcombine.high %v141_v7, %v145_v8  ;;  %v3458_v15 = vcombine.high %v142_v9, %v146_v14  ;;  %v2940_v23 = vld [vmem:[%s5156_s0 + $0x8] sm:$0xff]   ;;  %v133_v24 = vld [vmem:[%s5157_s3 + $0x380] sm:$0xff] }
  0x16   :  { %1119 = vmatprep.subr.bf16.mxu1 %v3362_v43  ;;  %5492 = vst [vmem:[#allocation32_spill] sm:$0xff] %v3436_v5  ;;  %5493 = vst [vmem:[#allocation33_spill] sm:$0xff] %v3438_v6  ;;  %v3460_v18 = vcombine.low %v141_v7, %v145_v8  ;;  %v3462_v22 = vcombine.low %v142_v9, %v146_v14  ;;  %v137_v26 = vld [vmem:[%s5157_s3 + $0x3a0] sm:$0xff]  ;;  %v134_v31 = vld [vmem:[%s5157_s3 + $0x388] sm:$0xff]  ;;  %2748 = vmatmul.mubr.msk.bf16.gmra.mxu0 %vm223_vm0, %v2940_v23 }
  0x17   :  { %5494 = vst [vmem:[#allocation34_spill] sm:$0xff] %v3453_v13  ;;  %5495 = vst [vmem:[#allocation35_spill] sm:$0xff] %v3458_v15  ;;  %v3477_v30 = vcombine.high %v133_v24, %v137_v26  ;;  %v138_v32 = vld [vmem:[%s5157_s3 + $0x3a8] sm:$0xff]  ;;  %v3488_v38 = vcombine.low %v133_v24, %v137_v26  ;;  %2752 = vmatmul.mubr.msk.bf16.gmra.mxu1 %vm223_vm0, %v2940_v23  ;;  %288 = vmatprep.mubr.bf16.mxu0 %v3199_v1  ;;  %v125_v40 = vld [vmem:[%s5157_s3 + $0x340] sm:$0xff] }
  0x18   :  { %1079 = vmatpush1.bf16.msra.mxu0 %v3364_v44  ;;  %5496 = vst [vmem:[#allocation36_spill] sm:$0xff] %v3460_v18  ;;  %5497 = vst [vmem:[#allocation37_spill] sm:$0xff] %v3462_v22  ;;  %v3486_v34 = vcombine.high %v134_v31, %v138_v32  ;;  %v3490_v39 = vcombine.low %v134_v31, %v138_v32  ;;  %v129_v42 = vld [vmem:[%s5157_s3 + $0x360] sm:$0xff]  ;;  %v126_v46 = vld [vmem:[%s5157_s3 + $0x348] sm:$0xff]  ;;  %361 = vmatprep.mubr.bf16.mxu1 %v3199_v1 }
  0x19   :  { %1120 = vmatpush1.bf16.msra.mxu1 %v3366_v45  ;;  %1080 = vmatprep.subr.bf16.mxu0 %v3381_v49  ;;  %5498 = vst [vmem:[#allocation38_spill] sm:$0xff] %v3477_v30  ;;  %5500 = vst [vmem:[#allocation40_spill] sm:$0xff] %v3488_v38  ;;  %v3507_v47 = vcombine.high %v125_v40, %v129_v42  ;;  %v130_v48 = vld [vmem:[%s5157_s3 + $0x368] sm:$0xff]  ;;  %v3515_v54 = vcombine.low %v125_v40, %v129_v42  ;;  %v2941_v56 = vld [vmem:[%s5156_s0 + $0x10] sm:$0xff]  }
  0x1a   :  { %1121 = vmatprep.subr.bf16.mxu1 %v3386_v51  ;;  %5499 = vst [vmem:[#allocation39_spill] sm:$0xff] %v3486_v34  ;;  %5501 = vst [vmem:[#allocation41_spill] sm:$0xff] %v3490_v39  ;;  %v3513_v50 = vcombine.high %v126_v46, %v130_v48  ;;  %v3517_v55 = vcombine.low %v126_v46, %v130_v48  ;;  %v117_v58 = vld [vmem:[%s5157_s3 + $0x300] sm:$0xff]  ;;  %v118_v0 = vld [vmem:[%s5157_s3 + $0x308] sm:$0xff] }
  0x1b   :  { %5502 = vst [vmem:[#allocation42_spill] sm:$0xff] %v3507_v47  ;;  %5504 = vst [vmem:[#allocation44_spill] sm:$0xff] %v3515_v54  ;;  %v121_v62 = vld [vmem:[%s5157_s3 + $0x320] sm:$0xff]  ;;  %v122_v3 = vld [vmem:[%s5157_s3 + $0x328] sm:$0xff] }
  0x1c   :  { %1081 = vmatpush1.bf16.msra.mxu0 %v3388_v52  ;;  %5503 = vst [vmem:[#allocation43_spill] sm:$0xff] %v3513_v50  ;;  %5505 = vst [vmem:[#allocation45_spill] sm:$0xff] %v3517_v55  ;;  %v3532_v63 = vcombine.high %v117_v58, %v121_v62  ;;  %v3541_v7 = vcombine.high %v118_v0, %v122_v3  ;;  %v3543_v8 = vcombine.low %v117_v58, %v121_v62  ;;  %v109_v14 = vld [vmem:[%s5157_s3 + $0x2c0] sm:$0xff]  ;;  %v110_v24 = vld [vmem:[%s5157_s3 + $0x2c8] sm:$0xff] }
  0x1d   :  { %1122 = vmatpush1.bf16.msra.mxu1 %v3390_v53  ;;  %1082 = vmatprep.subr.bf16.mxu0 %v3405_v57  ;;  %v3545_v9 = vcombine.low %v118_v0, %v122_v3  ;;  %v113_v23 = vld [vmem:[%s5157_s3 + $0x2e0] sm:$0xff]  ;;  %v114_v31 = vld [vmem:[%s5157_s3 + $0x2e8] sm:$0xff]  ;;  %v2942_v46 = vld [vmem:[%s5156_s0 + $0x18] sm:$0xff]  }
  0x1e   :  { %1123 = vmatprep.subr.bf16.mxu1 %v3410_v59  ;;  %5506 = vst [vmem:[#allocation46_spill] sm:$0xff] %v3532_v63  ;;  %2749 = vmatmul.mubr.msk.bf16.gmra.mxu0 %vm223_vm0, %v2941_v56  ;;  %5507 = vst [vmem:[#allocation47_spill] sm:$0xff] %v3541_v7  ;;  %v3562_v26 = vcombine.high %v109_v14, %v113_v23  ;;  %v3568_v32 = vcombine.high %v110_v24, %v114_v31  ;;  %v101_v48 = vld [vmem:[%s5157_s3 + $0x280] sm:$0xff]  ;;  %v102_v58 = vld [vmem:[%s5157_s3 + $0x288] sm:$0xff] }
  0x1f   :  { %5508 = vst [vmem:[#allocation48_spill] sm:$0xff] %v3543_v8  ;;  %5509 = vst [vmem:[#allocation49_spill] sm:$0xff] %v3545_v9  ;;  %2753 = vmatmul.mubr.msk.bf16.gmra.mxu1 %vm223_vm0, %v2941_v56  ;;  %298 = vmatprep.mubr.bf16.mxu0 %v3199_v1  ;;  %v3570_v40 = vcombine.low %v109_v14, %v113_v23  ;;  %v3572_v42 = vcombine.low %v110_v24, %v114_v31  ;;  %v105_v56 = vld [vmem:[%s5157_s3 + $0x2a0] sm:$0xff]  ;;  %v106_v62 = vld [vmem:[%s5157_s3 + $0x2a8] sm:$0xff] }
  0x20   :  { %1083 = vmatpush1.bf16.msra.mxu0 %v3412_v60  ;;  %5510 = vst [vmem:[#allocation50_spill] sm:$0xff] %v3562_v26  ;;  %371 = vmatprep.mubr.bf16.mxu1 %v3199_v1  ;;  %5511 = vst [vmem:[#allocation51_spill] sm:$0xff] %v3568_v32  ;;  %v3584_v1 = vcombine.high %v101_v48, %v105_v56  ;;  %v93_v0 = vld [vmem:[%s5157_s3 + $0x240] sm:$0xff]  ;;  %v3597_v3 = vcombine.high %v102_v58, %v106_v62  ;;  %v94_v24 = vld [vmem:[%s5157_s3 + $0x248] sm:$0xff] }
  0x21   :  { %1124 = vmatpush1.bf16.msra.mxu1 %v3415_v61  ;;  %1084 = vmatprep.subr.bf16.mxu0 %v3429_v2  ;;  %5512 = vst [vmem:[#allocation52_spill] sm:$0xff] %v3570_v40  ;;  %5513 = vst [vmem:[#allocation53_spill] sm:$0xff] %v3572_v42  ;;  %v3599_v14 = vcombine.low %v101_v48, %v105_v56  ;;  %v97_v23 = vld [vmem:[%s5157_s3 + $0x260] sm:$0xff]  ;;  %v98_v31 = vld [vmem:[%s5157_s3 + $0x268] sm:$0xff] }
  0x22   :  { %1125 = vmatprep.subr.bf16.mxu1 %v3434_v4  ;;  %5514 = vst [vmem:[#allocation54_spill] sm:$0xff] %v3584_v1  ;;  %5515 = vst [vmem:[#allocation55_spill] sm:$0xff] %v3597_v3  ;;  %v3614_v48 = vcombine.high %v93_v0, %v97_v23  ;;  %v3618_v56 = vcombine.high %v94_v24, %v98_v31 }
  0x23   :  { %5516 = vst [vmem:[#allocation56_spill] sm:$0xff] %v3599_v14 }
  0x24   :  { %1085 = vmatpush1.bf16.msra.mxu0 %v3436_v5  ;;  %5518 = vst [vmem:[#allocation58_spill] sm:$0xff] %v3614_v48  ;;  %5519 = vst [vmem:[#allocation59_spill] sm:$0xff] %v3618_v56 }
  0x25   :  { %1126 = vmatpush1.bf16.msra.mxu1 %v3438_v6  ;;  %1086 = vmatprep.subr.bf16.mxu0 %v3453_v13 }
  0x26   :  { %1127 = vmatprep.subr.bf16.mxu1 %v3458_v15  ;;  %2750 = vmatmul.mubr.msk.bf16.gmra.mxu0 %vm223_vm0, %v2942_v46 }
  0x27   :  { %2754 = vmatmul.mubr.msk.bf16.gmra.mxu1 %vm223_vm0, %v2942_v46  ;;  %v3640_v46 = vcombine.low %v94_v24, %v98_v31  ;;  %v84_v24 = vld [vmem:[%s5157_s3 + $0x1f8] sm:$0xff] }
  0x28   :  { %1087 = vmatpush2.bf16.msra.mxu0 %v3460_v18 }
  0x29   :  { %1128 = vmatpush2.bf16.msra.mxu1 %v3462_v22  ;;  %1088 = vmatprep.subr.bf16.mxu0 %v3477_v30  ;;  %5521 = vst [vmem:[#allocation61_spill] sm:$0xff] %v3640_v46 }
  0x2a   :  { %1129 = vmatprep.subr.bf16.mxu1 %v3486_v34 }
  0x2c   :  { %1089 = vmatpush2.bf16.msra.mxu0 %v3488_v38 }
  0x2d   :  { %1130 = vmatpush2.bf16.msra.mxu1 %v3490_v39  ;;  %1090 = vmatprep.subr.bf16.mxu0 %v3507_v47 }
  0x2e   :  { %1131 = vmatprep.subr.bf16.mxu1 %v3513_v50 }
  0x30   :  { %1091 = vmatpush2.bf16.msra.mxu0 %v3515_v54 }
  0x31   :  { %1132 = vmatpush2.bf16.msra.mxu1 %v3517_v55  ;;  %1092 = vmatprep.subr.bf16.mxu0 %v3532_v63 }
  0x32   :  { %1133 = vmatprep.subr.bf16.mxu1 %v3541_v7 }
  0x34   :  { %1093 = vmatpush2.bf16.msra.mxu0 %v3543_v8 }
  0x35   :  { %1134 = vmatpush2.bf16.msra.mxu1 %v3545_v9  ;;  %1094 = vmatprep.subr.bf16.mxu0 %v3562_v26 }
  0x36   :  { %1135 = vmatprep.subr.bf16.mxu1 %v3568_v32  ;;  %v85_v32 = vld [vmem:[%s5157_s3 + $0x200] sm:$0xff] }
  0x38   :  { %1095 = vmatpush2.bf16.msra.mxu0 %v3570_v40  ;;  %v3612_v40 = vcombine.low %v102_v58, %v106_v62  ;;  %v86_v58 = vld [vmem:[%s5157_s3 + $0x208] sm:$0xff] }
  0x39   :  { %1136 = vmatpush2.bf16.msra.mxu1 %v3572_v42  ;;  %1096 = vmatprep.subr.bf16.mxu0 %v3584_v1  ;;  %v89_v42 = vld [vmem:[%s5157_s3 + $0x220] sm:$0xff]  ;;  %v90_v62 = vld [vmem:[%s5157_s3 + $0x228] sm:$0xff]  ;;  %v3635_v1 = vcombine.low %v93_v0, %v97_v23  ;;  %v83_v0 = vld [vmem:[%s5157_s3 + $0x1f0] sm:$0xff] }
  0x3a   :  { %5517 = vst [vmem:[#allocation57_spill] sm:$0xff] %v3612_v40  ;;  %1137 = vmatprep.subr.bf16.mxu1 %v3597_v3  ;;  %v5177_v3 = vmov 0.0|0.0   ;;  %v3642_v26 = vcombine.high %v85_v32, %v89_v42  ;;  %v3645_v9 = vcombine.high %v86_v58, %v90_v62  ;;  %v80_v23 = vld [vmem:[%s5157_s3 + $0x1d8] sm:$0xff]  ;;  %v3660_v31 = vcombine.low %v85_v32, %v89_v42 }
  0x3b   :  { %1102 = vmatprep.mubr.bf16.mxu0 %v5177_v3  ;;  %5520 = vst [vmem:[#allocation60_spill] sm:$0xff] %v3635_v1  ;;  %1143 = vmatprep.mubr.bf16.mxu1 %v5177_v3  ;;  %v3664_v3 = vcombine.low %v86_v58, %v90_v62  ;;  %v3677_v42 = vcombine.low %v80_v23, %v84_v24  ;;  %v163_v58 = vlaneseq }
  0x3c   :  { %1097 = vmatpush2.bf16.msra.mxu0 %v3599_v14  ;;  %5522 = vst [vmem:[#allocation62_spill] sm:$0xff] %v3642_v26  ;;  %5523 = vst [vmem:[#allocation63_spill] sm:$0xff] %v3645_v9  ;;  %v79_v14 = vld [vmem:[%s5157_s3 + $0x1d0] sm:$0xff] }
  0x3d   :  { %1138 = vmatpush2.bf16.msra.mxu1 %v3612_v40  ;;  %1098 = vmatprep.subr.bf16.mxu0 %v3614_v48  ;;  %5524 = vst [vmem:[#allocation64_spill] sm:$0xff] %v3660_v31  ;;  %5525 = vst [vmem:[#allocation65_spill] sm:$0xff] %v3664_v3  ;;  %v3669_v48 = vcombine.high %v80_v23, %v84_v24  ;;  %v3675_v32 = vcombine.low %v79_v14, %v83_v0  ;;  %v3679_v62 = vshrl.u32 %v163_v58, 7 }
  0x3e   :  { %1139 = vmatprep.subr.bf16.mxu1 %v3618_v56  ;;  %v3666_v56 = vcombine.high %v79_v14, %v83_v0  ;;  %5529 = vst [vmem:[#allocation69_spill] sm:$0xff] %v3677_v42 }
  0x3f   :  { %5527 = vst [vmem:[#allocation67_spill] sm:$0xff] %v3669_v48  ;;  %5528 = vst [vmem:[#allocation68_spill] sm:$0xff] %v3675_v32 }
  0x40   :  { %1099 = vmatpush2.bf16.msra.mxu0 %v3635_v1  ;;  %5526 = vst [vmem:[#allocation66_spill] sm:$0xff] %v3666_v56  ;;  %5530 = vst [vmem:[#allocation70_spill] sm:$0xff] %v3679_v62  ;;  %v5214_v1 = vsub.s32 2, %v3679_v62 }
  0x41   :  { %1140 = vmatpush2.bf16.msra.mxu1 %v3640_v46  ;;  %1100 = vmatprep.subr.bf16.mxu0 %v3642_v26  ;;  %v5199_v26 = vsub.s32 0, %v3679_v62 }
  0x42   :  { %1141 = vmatprep.subr.bf16.mxu1 %v3645_v9  ;;  %v161_v9 = vld [vmem:[%s5158_s2] sm:$0xf] }
  0x44   :  { %1101 = vmatpush2.bf16.msra.mxu0 %v3660_v31  ;;  %v5202_v31 = vsub.s32 1, %v3679_v62 }
  0x45   :  { %1142 = vmatpush2.bf16.msra.mxu1 %v3664_v3  ;;  %1152 = vmatprep.subr.bf16.mxu0 %v3666_v56  ;;  %v3688_v56 = vrot.slane %v161_v9, %v5199_v26  ;;  %v5207_v3 = vsub.s32 3, %v3679_v62 }
  0x46   :  { %1193 = vmatprep.subr.bf16.mxu1 %v3669_v48  ;;  %v3692_v14 = vrot.slane %v161_v9, %v5202_v31  ;;  %v3704_v31 = vrot.slane %v161_v9, %v5214_v1 }
  0x47   :  { %5531 = vst [vmem:[#allocation71_spill] sm:$0xff] %v3688_v56  ;;  %v3700_v40 = vrot.slane %v161_v9, %v5207_v3 }
  0x48   :  { %5532 = vst [vmem:[#allocation72_spill] sm:$0xff] %v3692_v14  ;;  %5534 = vst [vmem:[#allocation74_spill] sm:$0xff] %v3704_v31 }
  0x49   :  { %5533 = vst [vmem:[#allocation73_spill] sm:$0xff] %v3700_v40 }
  0xc6   :  { %v270_v0 = vpop.f32.mrf.mxu0  ;;  %v343_v26 = vpop.f32.mrf.mxu1 }
  0xc7   :  { %v271_v23 = vadd.f32 %v270_v0, %v3688_v56 }
  0xc8   :  { %v272_v24 = vpop.f32.mrf.mxu0  ;;  %v345_v0 = vpop.f32.mrf.mxu1 }
  0xc9   :  { %v2755_v58 = vmul.f32 -1.442695, %v271_v23  ;;  %v273_v48 = vadd.f32 %v272_v24, %v3692_v14  ;;  %v346_v23 = vadd.f32 %v345_v0, %v3700_v40  ;;  %v344_v24 = vadd.f32 %v343_v26, %v3704_v31 }
  0xcb   :  { %2943 = vpow2.f32 %v2755_v58  ;;  %v2756_v46 = vmul.f32 -1.442695, %v273_v48  ;;  %v2757_v14 = vmul.f32 -1.442695, %v346_v23  ;;  %v63_v23 = vld [vmem:[%s5157_s3 + $0x150] sm:$0xff] }
  0xcd   :  { %2945 = vpow2.f32 %v2756_v46 }
  0xce   :  { %2947 = vtanh.f32 %v344_v24  ;;  %v67_v24 = vld [vmem:[%s5157_s3 + $0x170] sm:$0xff] }
  0xcf   :  { %2949 = vpow2.f32 %v2757_v14  ;;  %v71_v14 = vld [vmem:[%s5157_s3 + $0x190] sm:$0xff] }
  0xd8   :  { %v2944_v58 = vpop.eup %2943 }
  0xd9   :  { %v407_v48 = vadd.f32 1.0, %v2944_v58  ;;  %v64_v58 = vld [vmem:[%s5157_s3 + $0x158] sm:$0xff] }
  0xda   :  { %v2946_v46 = vpop.eup %2945 }
  0xdb   :  { %2951 = vrcp.f32 %v407_v48  ;;  %v413_v56 = vadd.f32 1.0, %v2946_v46  ;;  %v2948_v3 = vpop.eup %2947  ;;  %v68_v48 = vld [vmem:[%s5157_s3 + $0x178] sm:$0xff] }
  0xdc   :  { %v2950_v8 = vpop.eup %2949 }
  0xdd   :  { %2953 = vrcp.f32 %v413_v56  ;;  %v420_v9 = vadd.f32 1.0, %v2950_v8  ;;  %v75_v56 = vld [vmem:[%s5157_s3 + $0x1b0] sm:$0xff]  ;;  %v72_v8 = vld [vmem:[%s5157_s3 + $0x198] sm:$0xff] }
  0xde   :  { %v3745_v46 = vcombine.low %v71_v14, %v75_v56 }
  0xdf   :  { %2955 = vrcp.f32 %v420_v9 }
  0xe0   :  { %5537 = vst [vmem:[#allocation77_spill] sm:$0xff] %v3745_v46 }
  0xe8   :  { %v2952_v7 = vpop.eup %2951 }
  0xe9   :  { %v424_v63 = vmul.f32 %v2952_v7, %v2948_v3  ;;  %v3725_v3 = vcombine.high %v71_v14, %v75_v56  ;;  %v56_v14 = vld [vmem:[%s5157_s3 + $0x118] sm:$0xff] }
  0xea   :  { %v2954_v62 = vpop.eup %2953  ;;  %v60_v56 = vld [vmem:[%s5157_s3 + $0x138] sm:$0xff] }
  0xeb   :  { %v423_v1 = vmul.f32 0.0, %v2954_v62  ;;  %5535 = vst [vmem:[#allocation75_spill] sm:$0xff] %v3725_v3 }
  0xec   :  { %v2956_v26 = vpop.eup %2955 }
  0xed   :  { %v3708_v55 = vadd.f32 %v424_v63, %v423_v1  ;;  %v76_v63 = vld [vmem:[%s5157_s3 + $0x1b8] sm:$0xff] }
  0xee   :  { %v3727_v62 = vcombine.high %v72_v8, %v76_v63  ;;  %v3747_v9 = vcombine.low %v72_v8, %v76_v63  ;;  %v5541_v8 = vmov 0.0|0.0   ;;  %v3771_v63 = vcombine.low %v63_v23, %v67_v24 }
  0xef   :  { %2957 = vtanh.f32 %v3708_v55 }
  0xf0   :  { %5536 = vst [vmem:[#allocation76_spill] sm:$0xff] %v3727_v62  ;;  %5538 = vst [vmem:[#allocation78_spill] sm:$0xff] %v3747_v9 }
  0xf1   :  { %5542 = vst [vmem:[#allocation81_spill] sm:$0xff] %v3771_v63 }
  0xfc   :  { %v2958_v0 = vpop.eup %2957 }
  0xfd   :  { %v427_v7 = vmul.f32 %v2958_v0, %v2956_v26  ;;  %v3751_v26 = vcombine.high %v63_v23, %v67_v24  ;;  %v3753_v0 = vcombine.high %v64_v58, %v68_v48  ;;  %v48_v23 = vld [vmem:[%s5157_s3 + $0xd8] sm:$0xff] }
  0xfe   :  { %v52_v24 = vld [vmem:[%s5157_s3 + $0xf8] sm:$0xff] }
  0xff   :  { %v3723_v1 = vpack.c.bf16 %v427_v7, %v427_v7  ;;  %5539 = vst [vmem:[#allocation79_spill] sm:$0xff] %v3751_v26  ;;  %5540 = vst [vmem:[#allocation80_spill] sm:$0xff] %v3753_v0  ;;  %v55_v7 = vld [vmem:[%s5157_s3 + $0x110] sm:$0xff] }
 0x101   :  { %1103 = vmatmul.mubr.bf16.vlgmr.msra.gmra.mxu0 %v3723_v1  ;;  %1144 = vmatmul.mubr.bf16.vlgmr.msra.gmra.mxu1 %v3723_v1 }
 0x102   :  { %1153 = vmatpush1.bf16.msra.mxu0 %v3675_v32  ;;  %1194 = vmatpush1.bf16.msra.mxu1 %v3677_v42  ;;  %v59_v42 = vld [vmem:[%s5157_s3 + $0x130] sm:$0xff]  ;;  %v3779_v32 = vcombine.high %v56_v14, %v60_v56 }
 0x103   :  { %1154 = vmatprep.subr.bf16.mxu0 %v3725_v3  ;;  %1195 = vmatprep.subr.bf16.mxu1 %v3727_v62  ;;  %v3773_v62 = vcombine.low %v64_v58, %v68_v48  ;;  %v3777_v3 = vcombine.high %v55_v7, %v59_v42  ;;  %v3795_v58 = vcombine.low %v55_v7, %v59_v42  ;;  %v40_v42 = vld [vmem:[%s5157_s3 + $0x98] sm:$0xff] }
 0x104   :  { %1184 = vmatprep.mubr.bf16.mxu0 %v5541_v8  ;;  %1225 = vmatprep.mubr.bf16.mxu1 %v5541_v8  ;;  %5545 = vst [vmem:[#allocation84_spill] sm:$0xff] %v3779_v32  ;;  %v47_v8 = vld [vmem:[%s5157_s3 + $0xd0] sm:$0xff]  ;;  %v3797_v48 = vcombine.low %v56_v14, %v60_v56  ;;  %v44_v7 = vld [vmem:[%s5157_s3 + $0xb8] sm:$0xff]  ;;  %v3821_v56 = vcombine.low %v48_v23, %v52_v24 }
 0x105   :  { %5543 = vst [vmem:[#allocation82_spill] sm:$0xff] %v3773_v62  ;;  %5544 = vst [vmem:[#allocation83_spill] sm:$0xff] %v3777_v3 }
 0x106   :  { %1155 = vmatpush1.bf16.msra.mxu0 %v3745_v46  ;;  %1196 = vmatpush1.bf16.msra.mxu1 %v3747_v9  ;;  %v51_v9 = vld [vmem:[%s5157_s3 + $0xf0] sm:$0xff]  ;;  %5546 = vst [vmem:[#allocation85_spill] sm:$0xff] %v3795_v58  ;;  %5547 = vst [vmem:[#allocation86_spill] sm:$0xff] %v3797_v48 }
 0x107   :  { %1156 = vmatprep.subr.bf16.mxu0 %v3751_v26  ;;  %1197 = vmatprep.subr.bf16.mxu1 %v3753_v0  ;;  %v3801_v0 = vcombine.high %v47_v8, %v51_v9  ;;  %v3803_v26 = vcombine.high %v48_v23, %v52_v24  ;;  %v39_v46 = vld [vmem:[%s5157_s3 + $0x90] sm:$0xff]  ;;  %v3819_v14 = vcombine.low %v47_v8, %v51_v9  ;;  %v32_v9 = vld [vmem:[%s5157_s3 + $0x58] sm:$0xff] }
 0x108   :  { %5551 = vst [vmem:[#allocation90_spill] sm:$0xff] %v3821_v56  ;;  %v36_v8 = vld [vmem:[%s5157_s3 + $0x78] sm:$0xff]  ;;  %v3845_v24 = vcombine.low %v40_v42, %v44_v7 }
 0x109   :  { %5548 = vst [vmem:[#allocation87_spill] sm:$0xff] %v3801_v0  ;;  %5549 = vst [vmem:[#allocation88_spill] sm:$0xff] %v3803_v26 }
 0x10a   :  { %1157 = vmatpush1.bf16.msra.mxu0 %v3771_v63  ;;  %1198 = vmatpush1.bf16.msra.mxu1 %v3773_v62  ;;  %v43_v62 = vld [vmem:[%s5157_s3 + $0xb0] sm:$0xff]  ;;  %5550 = vst [vmem:[#allocation89_spill] sm:$0xff] %v3819_v14  ;;  %5555 = vst [vmem:[#allocation94_spill] sm:$0xff] %v3845_v24 }
 0x10b   :  { %1158 = vmatprep.subr.bf16.mxu0 %v3777_v3  ;;  %1199 = vmatprep.subr.bf16.mxu1 %v3779_v32  ;;  %v3825_v32 = vcombine.high %v39_v46, %v43_v62  ;;  %v3827_v3 = vcombine.high %v40_v42, %v44_v7  ;;  %v31_v63 = vld [vmem:[%s5157_s3 + $0x50] sm:$0xff]  ;;  %v3843_v23 = vcombine.low %v39_v46, %v43_v62  ;;  %v24_v62 = vld [vmem:[%s5157_s3 + $0x18] sm:$0xff] }
 0x10c   :  { %v28_v46 = vld [vmem:[%s5157_s3 + $0x38] sm:$0xff]  ;;  %v3869_v7 = vcombine.low %v32_v9, %v36_v8 }
 0x10d   :  { %5552 = vst [vmem:[#allocation91_spill] sm:$0xff] %v3825_v32  ;;  %5553 = vst [vmem:[#allocation92_spill] sm:$0xff] %v3827_v3 }
 0x10e   :  { %1159 = vmatpush1.bf16.msra.mxu0 %v3795_v58  ;;  %1200 = vmatpush1.bf16.msra.mxu1 %v3797_v48  ;;  %v35_v48 = vld [vmem:[%s5157_s3 + $0x70] sm:$0xff]  ;;  %5554 = vst [vmem:[#allocation93_spill] sm:$0xff] %v3843_v23  ;;  %5559 = vst [vmem:[#allocation98_spill] sm:$0xff] %v3869_v7 }
 0x10f   :  { %1160 = vmatprep.subr.bf16.mxu0 %v3801_v0  ;;  %1201 = vmatprep.subr.bf16.mxu1 %v3803_v26  ;;  %v3849_v26 = vcombine.high %v31_v63, %v35_v48  ;;  %v3851_v0 = vcombine.high %v32_v9, %v36_v8  ;;  %v23_v58 = vld [vmem:[%s5157_s3 + $0x10] sm:$0xff]  ;;  %v3867_v42 = vcombine.low %v31_v63, %v35_v48  ;;  %v144_v63 = vld [vmem:[%s5157_s3 + $0x3d8] sm:$0xff] }
 0x110   :  { %v148_v48 = vld [vmem:[%s5157_s3 + $0x3f8] sm:$0xff]  ;;  %v3893_v8 = vcombine.low %v24_v62, %v28_v46 }
 0x111   :  { %5556 = vst [vmem:[#allocation95_spill] sm:$0xff] %v3849_v26  ;;  %5557 = vst [vmem:[#allocation96_spill] sm:$0xff] %v3851_v0 }
 0x112   :  { %1161 = vmatpush1.bf16.msra.mxu0 %v3819_v14  ;;  %1202 = vmatpush1.bf16.msra.mxu1 %v3821_v56  ;;  %v27_v56 = vld [vmem:[%s5157_s3 + $0x30] sm:$0xff]  ;;  %5558 = vst [vmem:[#allocation97_spill] sm:$0xff] %v3867_v42  ;;  %5563 = vst [vmem:[#allocation102_spill] sm:$0xff] %v3893_v8 }
 0x113   :  { %1162 = vmatprep.subr.bf16.mxu0 %v3825_v32  ;;  %1203 = vmatprep.subr.bf16.mxu1 %v3827_v3  ;;  %v3873_v3 = vcombine.high %v23_v58, %v27_v56  ;;  %v3875_v32 = vcombine.high %v24_v62, %v28_v46  ;;  %v143_v14 = vld [vmem:[%s5157_s3 + $0x3d0] sm:$0xff]  ;;  %v3891_v9 = vcombine.low %v23_v58, %v27_v56  ;;  %v136_v58 = vld [vmem:[%s5157_s3 + $0x398] sm:$0xff] }
 0x114   :  { %v140_v56 = vld [vmem:[%s5157_s3 + $0x3b8] sm:$0xff]  ;;  %v3917_v46 = vcombine.low %v144_v63, %v148_v48 }
 0x115   :  { %5560 = vst [vmem:[#allocation99_spill] sm:$0xff] %v3873_v3  ;;  %5561 = vst [vmem:[#allocation100_spill] sm:$0xff] %v3875_v32 }
 0x116   :  { %1163 = vmatpush1.bf16.msra.mxu0 %v3843_v23  ;;  %1204 = vmatpush1.bf16.msra.mxu1 %v3845_v24  ;;  %v147_v24 = vld [vmem:[%s5157_s3 + $0x3f0] sm:$0xff]  ;;  %5562 = vst [vmem:[#allocation101_spill] sm:$0xff] %v3891_v9  ;;  %5567 = vst [vmem:[#allocation106_spill] sm:$0xff] %v3917_v46 }
 0x117   :  { %1164 = vmatprep.subr.bf16.mxu0 %v3849_v26  ;;  %1205 = vmatprep.subr.bf16.mxu1 %v3851_v0  ;;  %v3897_v0 = vcombine.high %v143_v14, %v147_v24  ;;  %v3899_v26 = vcombine.high %v144_v63, %v148_v48  ;;  %v135_v23 = vld [vmem:[%s5157_s3 + $0x390] sm:$0xff]  ;;  %v3915_v62 = vcombine.low %v143_v14, %v147_v24  ;;  %v128_v14 = vld [vmem:[%s5157_s3 + $0x358] sm:$0xff] }
 0x118   :  { %v132_v24 = vld [vmem:[%s5157_s3 + $0x378] sm:$0xff]  ;;  %v3941_v48 = vcombine.low %v136_v58, %v140_v56 }
 0x119   :  { %5564 = vst [vmem:[#allocation103_spill] sm:$0xff] %v3897_v0  ;;  %5565 = vst [vmem:[#allocation104_spill] sm:$0xff] %v3899_v26 }
 0x11a   :  { %1165 = vmatpush1.bf16.msra.mxu0 %v3867_v42  ;;  %1206 = vmatpush1.bf16.msra.mxu1 %v3869_v7  ;;  %v139_v7 = vld [vmem:[%s5157_s3 + $0x3b0] sm:$0xff]  ;;  %5566 = vst [vmem:[#allocation105_spill] sm:$0xff] %v3915_v62  ;;  %5571 = vst [vmem:[#allocation110_spill] sm:$0xff] %v3941_v48 }
 0x11b   :  { %1166 = vmatprep.subr.bf16.mxu0 %v3873_v3  ;;  %1207 = vmatprep.subr.bf16.mxu1 %v3875_v32  ;;  %v3921_v32 = vcombine.high %v135_v23, %v139_v7  ;;  %v3923_v3 = vcombine.high %v136_v58, %v140_v56  ;;  %v127_v42 = vld [vmem:[%s5157_s3 + $0x350] sm:$0xff]  ;;  %v3939_v63 = vcombine.low %v135_v23, %v139_v7  ;;  %v120_v23 = vld [vmem:[%s5157_s3 + $0x318] sm:$0xff] }
 0x11c   :  { %v124_v7 = vld [vmem:[%s5157_s3 + $0x338] sm:$0xff]  ;;  %v3965_v56 = vcombine.low %v128_v14, %v132_v24 }
 0x11d   :  { %5568 = vst [vmem:[#allocation107_spill] sm:$0xff] %v3921_v32  ;;  %5569 = vst [vmem:[#allocation108_spill] sm:$0xff] %v3923_v3 }
 0x11e   :  { %1167 = vmatpush1.bf16.msra.mxu0 %v3891_v9  ;;  %1208 = vmatpush1.bf16.msra.mxu1 %v3893_v8  ;;  %v131_v8 = vld [vmem:[%s5157_s3 + $0x370] sm:$0xff]  ;;  %5570 = vst [vmem:[#allocation109_spill] sm:$0xff] %v3939_v63  ;;  %5575 = vst [vmem:[#allocation114_spill] sm:$0xff] %v3965_v56 }
 0x11f   :  { %1168 = vmatprep.subr.bf16.mxu0 %v3897_v0  ;;  %1209 = vmatprep.subr.bf16.mxu1 %v3899_v26  ;;  %v3945_v26 = vcombine.high %v127_v42, %v131_v8  ;;  %v3947_v0 = vcombine.high %v128_v14, %v132_v24  ;;  %v119_v9 = vld [vmem:[%s5157_s3 + $0x310] sm:$0xff]  ;;  %v3963_v58 = vcombine.low %v127_v42, %v131_v8  ;;  %v112_v42 = vld [vmem:[%s5157_s3 + $0x2d8] sm:$0xff] }
 0x120   :  { %v116_v8 = vld [vmem:[%s5157_s3 + $0x2f8] sm:$0xff]  ;;  %v3989_v24 = vcombine.low %v120_v23, %v124_v7 }
 0x121   :  { %5572 = vst [vmem:[#allocation111_spill] sm:$0xff] %v3945_v26  ;;  %5573 = vst [vmem:[#allocation112_spill] sm:$0xff] %v3947_v0 }
 0x122   :  { %1169 = vmatpush2.bf16.msra.mxu0 %v3915_v62  ;;  %1210 = vmatpush2.bf16.msra.mxu1 %v3917_v46  ;;  %v123_v46 = vld [vmem:[%s5157_s3 + $0x330] sm:$0xff]  ;;  %5574 = vst [vmem:[#allocation113_spill] sm:$0xff] %v3963_v58  ;;  %5579 = vst [vmem:[#allocation118_spill] sm:$0xff] %v3989_v24 }
 0x123   :  { %1170 = vmatprep.subr.bf16.mxu0 %v3921_v32  ;;  %1211 = vmatprep.subr.bf16.mxu1 %v3923_v3  ;;  %v3969_v3 = vcombine.high %v119_v9, %v123_v46  ;;  %v3971_v32 = vcombine.high %v120_v23, %v124_v7  ;;  %v111_v62 = vld [vmem:[%s5157_s3 + $0x2d0] sm:$0xff]  ;;  %v3987_v14 = vcombine.low %v119_v9, %v123_v46  ;;  %v104_v9 = vld [vmem:[%s5157_s3 + $0x298] sm:$0xff] }
 0x124   :  { %v108_v46 = vld [vmem:[%s5157_s3 + $0x2b8] sm:$0xff]  ;;  %v4013_v7 = vcombine.low %v112_v42, %v116_v8 }
 0x125   :  { %5576 = vst [vmem:[#allocation115_spill] sm:$0xff] %v3969_v3  ;;  %5577 = vst [vmem:[#allocation116_spill] sm:$0xff] %v3971_v32 }
 0x126   :  { %1171 = vmatpush2.bf16.msra.mxu0 %v3939_v63  ;;  %1212 = vmatpush2.bf16.msra.mxu1 %v3941_v48  ;;  %v115_v48 = vld [vmem:[%s5157_s3 + $0x2f0] sm:$0xff]  ;;  %5578 = vst [vmem:[#allocation117_spill] sm:$0xff] %v3987_v14  ;;  %5583 = vst [vmem:[#allocation122_spill] sm:$0xff] %v4013_v7 }
 0x127   :  { %1172 = vmatprep.subr.bf16.mxu0 %v3945_v26  ;;  %1213 = vmatprep.subr.bf16.mxu1 %v3947_v0  ;;  %v3993_v0 = vcombine.high %v111_v62, %v115_v48  ;;  %v3995_v26 = vcombine.high %v112_v42, %v116_v8  ;;  %v103_v63 = vld [vmem:[%s5157_s3 + $0x290] sm:$0xff]  ;;  %v4011_v23 = vcombine.low %v111_v62, %v115_v48  ;;  %v96_v62 = vld [vmem:[%s5157_s3 + $0x258] sm:$0xff] }
 0x128   :  { %v100_v48 = vld [vmem:[%s5157_s3 + $0x278] sm:$0xff]  ;;  %v4037_v8 = vcombine.low %v104_v9, %v108_v46 }
 0x129   :  { %5580 = vst [vmem:[#allocation119_spill] sm:$0xff] %v3993_v0  ;;  %5581 = vst [vmem:[#allocation120_spill] sm:$0xff] %v3995_v26 }
 0x12a   :  { %1173 = vmatpush2.bf16.msra.mxu0 %v3963_v58  ;;  %1214 = vmatpush2.bf16.msra.mxu1 %v3965_v56  ;;  %v107_v56 = vld [vmem:[%s5157_s3 + $0x2b0] sm:$0xff]  ;;  %5582 = vst [vmem:[#allocation121_spill] sm:$0xff] %v4011_v23  ;;  %5587 = vst [vmem:[#allocation126_spill] sm:$0xff] %v4037_v8 }
 0x12b   :  { %1174 = vmatprep.subr.bf16.mxu0 %v3969_v3  ;;  %1215 = vmatprep.subr.bf16.mxu1 %v3971_v32  ;;  %v4017_v32 = vcombine.high %v103_v63, %v107_v56  ;;  %v4019_v3 = vcombine.high %v104_v9, %v108_v46  ;;  %v95_v58 = vld [vmem:[%s5157_s3 + $0x250] sm:$0xff]  ;;  %v4035_v42 = vcombine.low %v103_v63, %v107_v56  ;;  %v88_v63 = vld [vmem:[%s5157_s3 + $0x218] sm:$0xff] }
 0x12c   :  { %v92_v56 = vld [vmem:[%s5157_s3 + $0x238] sm:$0xff]  ;;  %v4061_v46 = vcombine.low %v96_v62, %v100_v48 }
 0x12d   :  { %5584 = vst [vmem:[#allocation123_spill] sm:$0xff] %v4017_v32  ;;  %5585 = vst [vmem:[#allocation124_spill] sm:$0xff] %v4019_v3 }
 0x12e   :  { %1175 = vmatpush2.bf16.msra.mxu0 %v3987_v14  ;;  %1216 = vmatpush2.bf16.msra.mxu1 %v3989_v24  ;;  %v99_v24 = vld [vmem:[%s5157_s3 + $0x270] sm:$0xff]  ;;  %5586 = vst [vmem:[#allocation125_spill] sm:$0xff] %v4035_v42  ;;  %5591 = vst [vmem:[#allocation130_spill] sm:$0xff] %v4061_v46 }
 0x12f   :  { %1176 = vmatprep.subr.bf16.mxu0 %v3993_v0  ;;  %1217 = vmatprep.subr.bf16.mxu1 %v3995_v26  ;;  %v4041_v26 = vcombine.high %v95_v58, %v99_v24  ;;  %v4043_v0 = vcombine.high %v96_v62, %v100_v48  ;;  %v87_v14 = vld [vmem:[%s5157_s3 + $0x210] sm:$0xff]  ;;  %v4059_v9 = vcombine.low %v95_v58, %v99_v24  ;;  %v5597_v58 = vld [vmem:[#allocation46_spill] sm:$0xff]  ;;  %v5602_v48 = vld [vmem:[#allocation51_spill] sm:$0xff] }
 0x130   :  { %v5599_v24 = vld [vmem:[#allocation48_spill] sm:$0xff]  ;;  %v5601_v62 = vld [vmem:[#allocation50_spill] sm:$0xff] }
 0x131   :  { %5588 = vst [vmem:[#allocation127_spill] sm:$0xff] %v4041_v26  ;;  %5589 = vst [vmem:[#allocation128_spill] sm:$0xff] %v4043_v0 }
 0x132   :  { %1177 = vmatpush2.bf16.msra.mxu0 %v4011_v23  ;;  %1218 = vmatpush2.bf16.msra.mxu1 %v4013_v7  ;;  %v91_v7 = vld [vmem:[%s5157_s3 + $0x230] sm:$0xff]  ;;  %5590 = vst [vmem:[#allocation129_spill] sm:$0xff] %v4059_v9 }
 0x133   :  { %1178 = vmatprep.subr.bf16.mxu0 %v4017_v32  ;;  %1219 = vmatprep.subr.bf16.mxu1 %v4019_v3  ;;  %v4065_v3 = vcombine.high %v87_v14, %v91_v7  ;;  %v4067_v32 = vcombine.high %v88_v63, %v92_v56  ;;  %v4071_v23 = vcombine.low %v87_v14, %v91_v7  ;;  %v5598_v14 = vld [vmem:[#allocation47_spill] sm:$0xff]  ;;  %v5600_v7 = vld [vmem:[#allocation49_spill] sm:$0xff] }
 0x135   :  { %5592 = vst [vmem:[#allocation131_spill] sm:$0xff] %v4065_v3  ;;  %5593 = vst [vmem:[#allocation132_spill] sm:$0xff] %v4067_v32 }
 0x136   :  { %1179 = vmatpush2.bf16.msra.mxu0 %v4035_v42  ;;  %1220 = vmatpush2.bf16.msra.mxu1 %v4037_v8  ;;  %5594 = vst [vmem:[#allocation133_spill] sm:$0xff] %v4071_v23  ;;  %v4073_v42 = vcombine.low %v88_v63, %v92_v56  ;;  %v5603_v63 = vld [vmem:[#allocation52_spill] sm:$0xff]  ;;  %v5604_v56 = vld [vmem:[#allocation53_spill] sm:$0xff] }
 0x137   :  { %1180 = vmatprep.subr.bf16.mxu0 %v4041_v26  ;;  %1221 = vmatprep.subr.bf16.mxu1 %v4043_v0 }
 0x138   :  { %5595 = vst [vmem:[#allocation134_spill] sm:$0xff] %v4073_v42 }
 0x13a   :  { %1181 = vmatpush2.bf16.msra.mxu0 %v4059_v9  ;;  %1222 = vmatpush2.bf16.msra.mxu1 %v4061_v46 }
 0x13b   :  { %1182 = vmatprep.subr.bf16.mxu0 %v4065_v3  ;;  %1223 = vmatprep.subr.bf16.mxu1 %v4067_v32 }
 0x13e   :  { %1183 = vmatpush2.bf16.msra.mxu0 %v4071_v23  ;;  %1224 = vmatpush2.bf16.msra.mxu1 %v4073_v42 }
 0x13f   :  { %1292 = vmatprep.subr.bf16.mxu0 %v3260_v10  ;;  %1333 = vmatprep.subr.bf16.mxu1 %v3262_v11 }
 0x141   :  { %1185 = vmatmul.mubr.bf16.vlgmr.msra.gmra.mxu0 %v3723_v1  ;;  %1226 = vmatmul.mubr.bf16.vlgmr.msra.gmra.mxu1 %v3723_v1  ;;  %v5596_v1 = vld [vmem:[#allocation45_spill] sm:$0xff] }
 0x142   :  { %1293 = vmatpush1.bf16.msra.mxu0 %v3264_v12  ;;  %1334 = vmatpush1.bf16.msra.mxu1 %v3276_v16 }
 0x143   :  { %1294 = vmatprep.subr.bf16.mxu0 %v3278_v17  ;;  %1335 = vmatprep.subr.bf16.mxu1 %v3285_v19 }
 0x146   :  { %1295 = vmatpush1.bf16.msra.mxu0 %v3288_v20  ;;  %1336 = vmatpush1.bf16.msra.mxu1 %v3294_v21 }
 0x147   :  { %1296 = vmatprep.subr.bf16.mxu0 %v3309_v25  ;;  %1337 = vmatprep.subr.bf16.mxu1 %v3314_v27 }
 0x14a   :  { %1297 = vmatpush1.bf16.msra.mxu0 %v3316_v28  ;;  %1338 = vmatpush1.bf16.msra.mxu1 %v3318_v29 }
 0x14b   :  { %1298 = vmatprep.subr.bf16.mxu0 %v3333_v33  ;;  %1339 = vmatprep.subr.bf16.mxu1 %v3338_v35 }
 0x14e   :  { %1299 = vmatpush1.bf16.msra.mxu0 %v3340_v36  ;;  %1340 = vmatpush1.bf16.msra.mxu1 %v3342_v37 }
 0x14f   :  { %1300 = vmatprep.subr.bf16.mxu0 %v3357_v41  ;;  %1341 = vmatprep.subr.bf16.mxu1 %v3362_v43 }
 0x152   :  { %1301 = vmatpush1.bf16.msra.mxu0 %v3364_v44  ;;  %1342 = vmatpush1.bf16.msra.mxu1 %v3366_v45 }
 0x153   :  { %1302 = vmatprep.subr.bf16.mxu0 %v3381_v49  ;;  %1343 = vmatprep.subr.bf16.mxu1 %v3386_v51 }
 0x156   :  { %1303 = vmatpush1.bf16.msra.mxu0 %v3388_v52  ;;  %1344 = vmatpush1.bf16.msra.mxu1 %v3390_v53 }
 0x157   :  { %1304 = vmatprep.subr.bf16.mxu0 %v3405_v57  ;;  %1345 = vmatprep.subr.bf16.mxu1 %v3410_v59 }
 0x15a   :  { %1305 = vmatpush1.bf16.msra.mxu0 %v3412_v60  ;;  %1346 = vmatpush1.bf16.msra.mxu1 %v3415_v61 }
 0x15b   :  { %1306 = vmatprep.subr.bf16.mxu0 %v3429_v2  ;;  %1347 = vmatprep.subr.bf16.mxu1 %v3434_v4 }
 0x15e   :  { %1307 = vmatpush1.bf16.msra.mxu0 %v3436_v5  ;;  %1348 = vmatpush1.bf16.msra.mxu1 %v3438_v6 }
 0x15f   :  { %1308 = vmatprep.subr.bf16.mxu0 %v3453_v13  ;;  %1349 = vmatprep.subr.bf16.mxu1 %v3458_v15 }
 0x162   :  { %1309 = vmatpush2.bf16.msra.mxu0 %v3460_v18  ;;  %1350 = vmatpush2.bf16.msra.mxu1 %v3462_v22  ;;  %v5644_v22 = vld [vmem:[#allocation72_spill] sm:$0xff] }
 0x163   :  { %1310 = vmatprep.subr.bf16.mxu0 %v3477_v30  ;;  %1351 = vmatprep.subr.bf16.mxu1 %v3486_v34 }
 0x166   :  { %1311 = vmatpush2.bf16.msra.mxu0 %v3488_v38  ;;  %1352 = vmatpush2.bf16.msra.mxu1 %v3490_v39 }
 0x167   :  { %1312 = vmatprep.subr.bf16.mxu0 %v3507_v47  ;;  %1353 = vmatprep.subr.bf16.mxu1 %v3513_v50  ;;  %v5605_v50 = vld [vmem:[#allocation54_spill] sm:$0xff] }
 0x16a   :  { %1313 = vmatpush2.bf16.msra.mxu0 %v3515_v54  ;;  %1354 = vmatpush2.bf16.msra.mxu1 %v5596_v1  ;;  %v5606_v54 = vld [vmem:[#allocation55_spill] sm:$0xff]  ;;  %v5607_v1 = vld [vmem:[#allocation56_spill] sm:$0xff] }
 0x16b   :  { %1314 = vmatprep.subr.bf16.mxu0 %v5597_v58  ;;  %1355 = vmatprep.subr.bf16.mxu1 %v5598_v14  ;;  %v5608_v58 = vld [vmem:[#allocation57_spill] sm:$0xff]  ;;  %v5609_v14 = vld [vmem:[#allocation58_spill] sm:$0xff] }
 0x16e   :  { %1315 = vmatpush2.bf16.msra.mxu0 %v5599_v24  ;;  %1356 = vmatpush2.bf16.msra.mxu1 %v5600_v7  ;;  %v5610_v24 = vld [vmem:[#allocation59_spill] sm:$0xff]  ;;  %v5611_v7 = vld [vmem:[#allocation60_spill] sm:$0xff] }
 0x16f   :  { %1316 = vmatprep.subr.bf16.mxu0 %v5601_v62  ;;  %1357 = vmatprep.subr.bf16.mxu1 %v5602_v48  ;;  %v5612_v62 = vld [vmem:[#allocation61_spill] sm:$0xff]  ;;  %v5613_v48 = vld [vmem:[#allocation62_spill] sm:$0xff] }
 0x172   :  { %1317 = vmatpush2.bf16.msra.mxu0 %v5603_v63  ;;  %1358 = vmatpush2.bf16.msra.mxu1 %v5604_v56  ;;  %v5614_v63 = vld [vmem:[#allocation63_spill] sm:$0xff]  ;;  %v5615_v56 = vld [vmem:[#allocation64_spill] sm:$0xff] }
 0x173   :  { %1318 = vmatprep.subr.bf16.mxu0 %v5605_v50  ;;  %1359 = vmatprep.subr.bf16.mxu1 %v5606_v54  ;;  %v5616_v50 = vld [vmem:[#allocation65_spill] sm:$0xff]  ;;  %v5617_v54 = vld [vmem:[#allocation66_spill] sm:$0xff] }
 0x176   :  { %1319 = vmatpush2.bf16.msra.mxu0 %v5607_v1  ;;  %1360 = vmatpush2.bf16.msra.mxu1 %v5608_v58  ;;  %v5618_v1 = vld [vmem:[#allocation67_spill] sm:$0xff]  ;;  %v347_v58 = vpop.f32.mrf.mxu1 }
 0x177   :  { %1320 = vmatprep.subr.bf16.mxu0 %v5609_v14  ;;  %1361 = vmatprep.subr.bf16.mxu1 %v5610_v24  ;;  %v274_v14 = vpop.f32.mrf.mxu0 }
 0x178   :  { %v4147_v47 = vpop.f32.mrf.mxu1 }
 0x179   :  { %v276_v24 = vpop.f32.mrf.mxu0 }
 0x17a   :  { %1321 = vmatpush2.bf16.msra.mxu0 %v5611_v7  ;;  %1362 = vmatpush2.bf16.msra.mxu1 %v5612_v62  ;;  %v4149_v7 = vpop.f32.mrf.mxu1 }
 0x17b   :  { %1322 = vmatprep.subr.bf16.mxu0 %v5613_v48  ;;  %1363 = vmatprep.subr.bf16.mxu1 %v5614_v63  ;;  %5619 = vst [vmem:[#allocation135_spill] sm:$0xff] %v4149_v7  ;;  %v4151_v62 = vpop.f32.mrf.mxu0 }
 0x17c   :  { %5620 = vst [vmem:[#allocation136_spill] sm:$0xff] %v4151_v62  ;;  %v4153_v48 = vpop.f32.mrf.mxu1 }
 0x17d   :  { %5621 = vst [vmem:[#allocation137_spill] sm:$0xff] %v4153_v48  ;;  %v4155_v63 = vpop.f32.mrf.mxu0 }
 0x17e   :  { %1323 = vmatpush2.bf16.msra.mxu0 %v5615_v56  ;;  %1364 = vmatpush2.bf16.msra.mxu1 %v5616_v50  ;;  %5622 = vst [vmem:[#allocation138_spill] sm:$0xff] %v4155_v63  ;;  %v4157_v56 = vpop.f32.mrf.mxu1 }
 0x17f   :  { %1374 = vmatprep.subr.bf16.mxu0 %v5617_v54  ;;  %1415 = vmatprep.subr.bf16.mxu1 %v5618_v1  ;;  %5623 = vst [vmem:[#allocation139_spill] sm:$0xff] %v4157_v56  ;;  %v4159_v50 = vpop.f32.mrf.mxu0 }
 0x180   :  { %5624 = vst [vmem:[#allocation140_spill] sm:$0xff] %v4159_v50  ;;  %v4161_v54 = vpop.f32.mrf.mxu1 }
 0x181   :  { %5625 = vst [vmem:[#allocation141_spill] sm:$0xff] %v4161_v54  ;;  %v4163_v1 = vpop.f32.mrf.mxu0 }
 0x182   :  { %5626 = vst [vmem:[#allocation142_spill] sm:$0xff] %v4163_v1  ;;  %v4165_v39 = vpop.f32.mrf.mxu1 }
 0x183   :  { %5627 = vst [vmem:[#allocation143_spill] sm:$0xff] %v4165_v39  ;;  %v4167_v38 = vpop.f32.mrf.mxu0 }
 0x184   :  { %5628 = vst [vmem:[#allocation144_spill] sm:$0xff] %v4167_v38  ;;  %v4169_v34 = vpop.f32.mrf.mxu1 }
 0x185   :  { %5629 = vst [vmem:[#allocation145_spill] sm:$0xff] %v4169_v34  ;;  %v4171_v7 = vpop.f32.mrf.mxu0 }
 0x186   :  { %5630 = vst [vmem:[#allocation146_spill] sm:$0xff] %v4171_v7  ;;  %v4173_v62 = vpop.f32.mrf.mxu1 }
 0x187   :  { %5631 = vst [vmem:[#allocation147_spill] sm:$0xff] %v4173_v62  ;;  %v4175_v48 = vpop.f32.mrf.mxu0 }
 0x188   :  { %5632 = vst [vmem:[#allocation148_spill] sm:$0xff] %v4175_v48  ;;  %v4177_v63 = vpop.f32.mrf.mxu1  ;;  %v5643_v48 = vld [vmem:[#allocation71_spill] sm:$0xff] }
 0x189   :  { %5633 = vst [vmem:[#allocation149_spill] sm:$0xff] %v4177_v63  ;;  %v4179_v56 = vpop.f32.mrf.mxu0  ;;  %v275_v63 = vadd.f32 %v274_v14, %v5643_v48 }
 0x18a   :  { %5634 = vst [vmem:[#allocation150_spill] sm:$0xff] %v4179_v56  ;;  %v4181_v50 = vpop.f32.mrf.mxu1  ;;  %v348_v56 = vadd.f32 %v347_v58, %v3704_v31 }
 0x18b   :  { %5635 = vst [vmem:[#allocation151_spill] sm:$0xff] %v4181_v50  ;;  %v4183_v54 = vpop.f32.mrf.mxu0 }
 0x18c   :  { %5636 = vst [vmem:[#allocation152_spill] sm:$0xff] %v4183_v54  ;;  %v4185_v1 = vpop.f32.mrf.mxu1  ;;  %v277_v54 = vadd.f32 %v276_v24, %v5644_v22 }
 0x18d   :  { %5637 = vst [vmem:[#allocation153_spill] sm:$0xff] %v4185_v1  ;;  %v4187_v39 = vpop.f32.mrf.mxu0 }
 0x18e   :  { %5638 = vst [vmem:[#allocation154_spill] sm:$0xff] %v4187_v39  ;;  %v4189_v38 = vpop.f32.mrf.mxu1 }
 0x18f   :  { %5639 = vst [vmem:[#allocation155_spill] sm:$0xff] %v4189_v38  ;;  %v4191_v34 = vpop.f32.mrf.mxu0 }
 0x190   :  { %5640 = vst [vmem:[#allocation156_spill] sm:$0xff] %v4191_v34  ;;  %v4193_v7 = vpop.f32.mrf.mxu1 }
 0x191   :  { %5641 = vst [vmem:[#allocation157_spill] sm:$0xff] %v4193_v7  ;;  %v4195_v62 = vpop.f32.mrf.mxu0 }
 0x192   :  { %5642 = vst [vmem:[#allocation158_spill] sm:$0xff] %v4195_v62 }
 0x1c1   :  { %v1104_v30 = vpop.f32.mrf.mxu0  ;;  %v1145_v50 = vpop.f32.mrf.mxu1 }
 0x1c2   :  { %v1262_v18 = vadd.f32 %v1104_v30, %v275_v63  ;;  %v1264_v1 = vadd.f32 %v1145_v50, %v348_v56 }
 0x1c3   :  { %v1106_v15 = vpop.f32.mrf.mxu0  ;;  %v1147_v39 = vpop.f32.mrf.mxu1 }
 0x1c4   :  { %v2889_v13 = vmul.f32 -1.442695, %v1262_v18  ;;  %v1263_v38 = vadd.f32 %v1106_v15, %v277_v54 }
 0x1c5   :  { %v1108_v6 = vpop.f32.mrf.mxu0  ;;  %v1149_v34 = vpop.f32.mrf.mxu1 }
 0x1c6   :  { %2959 = vpow2.f32 %v2889_v13  ;;  %v2890_v7 = vmul.f32 -1.442695, %v1263_v38  ;;  %v5645_v13 = vld [vmem:[#allocation70_spill] sm:$0xff] }
 0x1c7   :  { %v1109_v5 = vpop.f32.mrf.mxu0  ;;  %v1150_v62 = vpop.f32.mrf.mxu1  ;;  %v5646_v18 = vsub.s32 0, %v5645_v13  ;;  %v5648_v38 = vsub.s32 1, %v5645_v13 }
 0x1c8   :  { %2961 = vpow2.f32 %v2890_v7  ;;  %v382_v5 = vld [vmem:[%s5159_s4] sm:$0xf] }
 0x1c9   :  { %2963 = vtanh.f32 %v1264_v1  ;;  %v4208_v34 = vrot.slane %v382_v5, %v5646_v18  ;;  %v4212_v54 = vrot.slane %v382_v5, %v5648_v38  ;;  %v350_v18 = vadd.f32 %v4147_v47, %v3700_v40 }
 0x1cb   :  { %5647 = vst [vmem:[#allocation70_spill] sm:$0xff] %v4208_v34  ;;  %5649 = vst [vmem:[#allocation159_spill] sm:$0xff] %v4212_v54  ;;  %v1265_v38 = vadd.f32 %v1147_v39, %v350_v18 }
 0x1d3   :  { %v2960_v14 = vpop.eup %2959 }
 0x1d4   :  { %v1269_v48 = vadd.f32 1.0, %v2960_v14 }
 0x1d5   :  { %v2962_v58 = vpop.eup %2961 }
 0x1d6   :  { %2965 = vrcp.f32 %v1269_v48  ;;  %v1275_v31 = vadd.f32 1.0, %v2962_v58  ;;  %v2964_v30 = vpop.eup %2963 }
 0x1d8   :  { %2967 = vrcp.f32 %v1275_v31 }
 0x1e3   :  { %v2966_v50 = vpop.eup %2965 }
 0x1e4   :  { %v1286_v24 = vmul.f32 %v2966_v50, %v2964_v30 }
 0x1e5   :  { %v2968_v63 = vpop.eup %2967 }
 0x1e6   :  { %v1285_v15 = vmul.f32 %v2968_v63, %v3708_v55  ;;  %v5650_v63 = vsub.s32 3, %v5645_v13 }
 0x1e8   :  { %v4201_v6 = vadd.f32 %v1286_v24, %v1285_v15  ;;  %v4218_v15 = vrot.slane %v382_v5, %v5650_v63 }
 0x1ea   :  { %5651 = vst [vmem:[#allocation160_spill] sm:$0xff] %v4218_v15 }
 0x201   :  { %v1186_v31 = vpop.f32.mrf.mxu0  ;;  %v1227_v1 = vpop.f32.mrf.mxu1 }
 0x202   :  { %v1234_v7 = vadd.f32 %v1186_v31, %v4208_v34 }
 0x203   :  { %v1188_v62 = vpop.f32.mrf.mxu0  ;;  %v1229_v55 = vpop.f32.mrf.mxu1 }
 0x204   :  { %v2886_v48 = vmul.f32 -1.442695, %v1234_v7  ;;  %v1235_v56 = vadd.f32 %v1188_v62, %v4212_v54  ;;  %v1237_v31 = vadd.f32 %v1229_v55, %v4218_v15  ;;  %v5652_v7 = vsub.s32 2, %v5645_v13 }
 0x205   :  { %v1190_v14 = vpop.f32.mrf.mxu0  ;;  %v1231_v58 = vpop.f32.mrf.mxu1 }
 0x206   :  { %2969 = vpow2.f32 %v2886_v48  ;;  %v2887_v30 = vmul.f32 -1.442695, %v1235_v56  ;;  %v4225_v62 = vrot.slane %v382_v5, %v5652_v7  ;;  %v2891_v14 = vmul.f32 -1.442695, %v1265_v38 }
 0x207   :  { %v1191_v50 = vpop.f32.mrf.mxu0  ;;  %v1232_v24 = vpop.f32.mrf.mxu1  ;;  %v2888_v48 = vmul.f32 -1.442695, %v1237_v31 }
 0x208   :  { %2971 = vpow2.f32 %v2887_v30  ;;  %5653 = vst [vmem:[#allocation161_spill] sm:$0xff] %v4225_v62  ;;  %v1236_v58 = vadd.f32 %v1227_v1, %v4225_v62 }
 0x209   :  { %2973 = vpow2.f32 %v2891_v14 }
 0x20a   :  { %2975 = vpow2.f32 %v2888_v48 }
 0x213   :  { %v2970_v56 = vpop.eup %2969 }
 0x214   :  { %v1241_v30 = vadd.f32 1.0, %v2970_v56 }
 0x215   :  { %v2972_v50 = vpop.eup %2971 }
 0x216   :  { %2977 = vrcp.f32 %v1241_v30  ;;  %v1247_v24 = vadd.f32 1.0, %v2972_v50  ;;  %v2974_v39 = vpop.eup %2973 }
 0x217   :  { %2979 = vtanh.f32 %v1236_v58  ;;  %v2976_v47 = vpop.eup %2975  ;;  %v1282_v13 = vadd.f32 1.0, %v2974_v39  ;;  %v5654_v39 = vld [vmem:[#allocation68_spill] sm:$0xff] }
 0x218   :  { %2981 = vrcp.f32 %v1247_v24  ;;  %v1254_v18 = vadd.f32 1.0, %v2976_v47  ;;  %v5655_v47 = vld [vmem:[#allocation69_spill] sm:$0xff] }
 0x219   :  { %2983 = vtanh.f32 %v4201_v6 }
 0x21a   :  { %2985 = vrcp.f32 %v1282_v13  ;;  %v5658_v13 = vld [vmem:[#allocation77_spill] sm:$0xff] }
 0x21b   :  { %2987 = vrcp.f32 %v1254_v18  ;;  %v5660_v18 = vld [vmem:[#allocation79_spill] sm:$0xff] }
 0x223   :  { %v2978_v55 = vpop.eup %2977 }
 0x224   :  { %v2980_v63 = vpop.eup %2979 }
 0x225   :  { %v2982_v5 = vpop.eup %2981  ;;  %v1258_v31 = vmul.f32 %v2980_v63, %v2978_v55  ;;  %v5656_v55 = vld [vmem:[#allocation75_spill] sm:$0xff]  ;;  %v5657_v63 = vld [vmem:[#allocation76_spill] sm:$0xff] }
 0x226   :  { %v1257_v38 = vmul.f32 0.0, %v2982_v5  ;;  %v2984_v7 = vpop.eup %2983  ;;  %v5659_v5 = vld [vmem:[#allocation78_spill] sm:$0xff] }
 0x227   :  { %v2986_v14 = vpop.eup %2985 }
 0x228   :  { %v4229_v1 = vadd.f32 %v1258_v31, %v1257_v38  ;;  %v2988_v48 = vpop.eup %2987  ;;  %v1289_v58 = vmul.f32 %v2986_v14, %v2984_v7  ;;  %v5661_v38 = vld [vmem:[#allocation80_spill] sm:$0xff]  ;;  %v5662_v31 = vld [vmem:[#allocation81_spill] sm:$0xff]  ;;  %v5663_v7 = vld [vmem:[#allocation82_spill] sm:$0xff] }
 0x229   :  { %v5664_v14 = vld [vmem:[#allocation83_spill] sm:$0xff] }
 0x22a   :  { %2989 = vtanh.f32 %v4229_v1  ;;  %v4232_v24 = vpack.c.bf16 %v1289_v58, %v1289_v58  ;;  %v5667_v58 = vld [vmem:[#allocation86_spill] sm:$0xff] }
 0x237   :  { %v2990_v56 = vpop.eup %2989 }
 0x238   :  { %v1261_v30 = vmul.f32 %v2990_v56, %v2988_v48  ;;  %v5665_v48 = vld [vmem:[#allocation84_spill] sm:$0xff]  ;;  %v5666_v56 = vld [vmem:[#allocation85_spill] sm:$0xff] }
 0x23a   :  { %v1291_v50 = vpack.c.bf16 %v1261_v30, %v1261_v30  ;;  %v5668_v30 = vld [vmem:[#allocation87_spill] sm:$0xff] }
 0x23c   :  { %1324 = vmatprep.mubr.bf16.mxu0 %v1291_v50  ;;  %1365 = vmatprep.mubr.bf16.mxu1 %v1291_v50 }
 0x23d   :  { %1325 = vmatmul.mubr.bf16.vlgmr.msra.gmra.mxu0 %v4232_v24  ;;  %1366 = vmatmul.mubr.bf16.vlgmr.msra.gmra.mxu1 %v4232_v24 }
 0x23e   :  { %1375 = vmatpush1.bf16.msra.mxu0 %v5654_v39  ;;  %1416 = vmatpush1.bf16.msra.mxu1 %v5655_v47 }
 0x23f   :  { %1406 = vmatprep.mubr.bf16.mxu0 %v1291_v50  ;;  %1447 = vmatprep.mubr.bf16.mxu1 %v1291_v50  ;;  %v5669_v50 = vld [vmem:[#allocation88_spill] sm:$0xff] }
 0x240   :  { %1376 = vmatprep.subr.bf16.mxu0 %v5656_v55  ;;  %1417 = vmatprep.subr.bf16.mxu1 %v5657_v63 }
 0x242   :  { %1377 = vmatpush1.bf16.msra.mxu0 %v5658_v13  ;;  %1418 = vmatpush1.bf16.msra.mxu1 %v5659_v5  ;;  %v5670_v5 = vld [vmem:[#allocation89_spill] sm:$0xff] }
 0x243   :  { %1378 = vmatprep.subr.bf16.mxu0 %v5660_v18  ;;  %1419 = vmatprep.subr.bf16.mxu1 %v5661_v38  ;;  %v5671_v18 = vld [vmem:[#allocation90_spill] sm:$0xff]  ;;  %v5672_v38 = vld [vmem:[#allocation91_spill] sm:$0xff] }
 0x246   :  { %1379 = vmatpush1.bf16.msra.mxu0 %v5662_v31  ;;  %1420 = vmatpush1.bf16.msra.mxu1 %v5663_v7  ;;  %v5673_v31 = vld [vmem:[#allocation92_spill] sm:$0xff]  ;;  %v5674_v7 = vld [vmem:[#allocation93_spill] sm:$0xff] }
 0x247   :  { %1380 = vmatprep.subr.bf16.mxu0 %v5664_v14  ;;  %1421 = vmatprep.subr.bf16.mxu1 %v5665_v48  ;;  %v5675_v14 = vld [vmem:[#allocation94_spill] sm:$0xff]  ;;  %v5676_v48 = vld [vmem:[#allocation95_spill] sm:$0xff] }
 0x24a   :  { %1381 = vmatpush1.bf16.msra.mxu0 %v5666_v56  ;;  %1422 = vmatpush1.bf16.msra.mxu1 %v5667_v58  ;;  %v5677_v56 = vld [vmem:[#allocation96_spill] sm:$0xff]  ;;  %v5678_v58 = vld [vmem:[#allocation97_spill] sm:$0xff] }
 0x24b   :  { %1382 = vmatprep.subr.bf16.mxu0 %v5668_v30  ;;  %1423 = vmatprep.subr.bf16.mxu1 %v5669_v50  ;;  %v5679_v30 = vld [vmem:[#allocation98_spill] sm:$0xff]  ;;  %v5680_v50 = vld [vmem:[#allocation99_spill] sm:$0xff] }
 0x24e   :  { %1383 = vmatpush1.bf16.msra.mxu0 %v5670_v5  ;;  %1424 = vmatpush1.bf16.msra.mxu1 %v5671_v18  ;;  %v5681_v5 = vld [vmem:[#allocation100_spill] sm:$0xff]  ;;  %v5682_v18 = vld [vmem:[#allocation101_spill] sm:$0xff] }
 0x24f   :  { %1384 = vmatprep.subr.bf16.mxu0 %v5672_v38  ;;  %1425 = vmatprep.subr.bf16.mxu1 %v5673_v31  ;;  %v5683_v38 = vld [vmem:[#allocation102_spill] sm:$0xff]  ;;  %v5684_v31 = vld [vmem:[#allocation103_spill] sm:$0xff] }
 0x252   :  { %1385 = vmatpush1.bf16.msra.mxu0 %v5674_v7  ;;  %1426 = vmatpush1.bf16.msra.mxu1 %v5675_v14  ;;  %v5685_v7 = vld [vmem:[#allocation104_spill] sm:$0xff]  ;;  %v5686_v14 = vld [vmem:[#allocation105_spill] sm:$0xff] }
 0x253   :  { %1386 = vmatprep.subr.bf16.mxu0 %v5676_v48  ;;  %1427 = vmatprep.subr.bf16.mxu1 %v5677_v56  ;;  %v5687_v48 = vld [vmem:[#allocation106_spill] sm:$0xff]  ;;  %v5688_v56 = vld [vmem:[#allocation107_spill] sm:$0xff] }
 0x256   :  { %1387 = vmatpush1.bf16.msra.mxu0 %v5678_v58  ;;  %1428 = vmatpush1.bf16.msra.mxu1 %v5679_v30  ;;  %v5689_v58 = vld [vmem:[#allocation108_spill] sm:$0xff]  ;;  %v5690_v30 = vld [vmem:[#allocation109_spill] sm:$0xff] }
 0x257   :  { %1388 = vmatprep.subr.bf16.mxu0 %v5680_v50  ;;  %1429 = vmatprep.subr.bf16.mxu1 %v5681_v5  ;;  %v5691_v50 = vld [vmem:[#allocation110_spill] sm:$0xff]  ;;  %v5692_v5 = vld [vmem:[#allocation111_spill] sm:$0xff] }
 0x25a   :  { %1389 = vmatpush1.bf16.msra.mxu0 %v5682_v18  ;;  %1430 = vmatpush1.bf16.msra.mxu1 %v5683_v38  ;;  %v5693_v18 = vld [vmem:[#allocation112_spill] sm:$0xff]  ;;  %v5694_v38 = vld [vmem:[#allocation113_spill] sm:$0xff] }
 0x25b   :  { %1390 = vmatprep.subr.bf16.mxu0 %v5684_v31  ;;  %1431 = vmatprep.subr.bf16.mxu1 %v5685_v7  ;;  %v5695_v31 = vld [vmem:[#allocation114_spill] sm:$0xff]  ;;  %v5696_v7 = vld [vmem:[#allocation115_spill] sm:$0xff] }
 0x25e   :  { %1391 = vmatpush2.bf16.msra.mxu0 %v5686_v14  ;;  %1432 = vmatpush2.bf16.msra.mxu1 %v5687_v48  ;;  %v5697_v14 = vld [vmem:[#allocation116_spill] sm:$0xff]  ;;  %v5698_v48 = vld [vmem:[#allocation117_spill] sm:$0xff] }
 0x25f   :  { %1392 = vmatprep.subr.bf16.mxu0 %v5688_v56  ;;  %1433 = vmatprep.subr.bf16.mxu1 %v5689_v58  ;;  %v5699_v56 = vld [vmem:[#allocation118_spill] sm:$0xff]  ;;  %v5700_v58 = vld [vmem:[#allocation119_spill] sm:$0xff] }
 0x262   :  { %1393 = vmatpush2.bf16.msra.mxu0 %v5690_v30  ;;  %1434 = vmatpush2.bf16.msra.mxu1 %v5691_v50  ;;  %v5701_v30 = vld [vmem:[#allocation120_spill] sm:$0xff]  ;;  %v5702_v50 = vld [vmem:[#allocation121_spill] sm:$0xff] }
 0x263   :  { %1394 = vmatprep.subr.bf16.mxu0 %v5692_v5  ;;  %1435 = vmatprep.subr.bf16.mxu1 %v5693_v18  ;;  %v5703_v5 = vld [vmem:[#allocation122_spill] sm:$0xff]  ;;  %v5704_v18 = vld [vmem:[#allocation123_spill] sm:$0xff] }
 0x266   :  { %1395 = vmatpush2.bf16.msra.mxu0 %v5694_v38  ;;  %1436 = vmatpush2.bf16.msra.mxu1 %v5695_v31  ;;  %v5705_v38 = vld [vmem:[#allocation124_spill] sm:$0xff]  ;;  %v5706_v31 = vld [vmem:[#allocation125_spill] sm:$0xff] }
 0x267   :  { %1396 = vmatprep.subr.bf16.mxu0 %v5696_v7  ;;  %1437 = vmatprep.subr.bf16.mxu1 %v5697_v14 }
 0x26a   :  { %1397 = vmatpush2.bf16.msra.mxu0 %v5698_v48  ;;  %1438 = vmatpush2.bf16.msra.mxu1 %v5699_v56 }
 0x26b   :  { %1398 = vmatprep.subr.bf16.mxu0 %v5700_v58  ;;  %1439 = vmatprep.subr.bf16.mxu1 %v5701_v30 }
 0x26e   :  { %1399 = vmatpush2.bf16.msra.mxu0 %v5702_v50  ;;  %1440 = vmatpush2.bf16.msra.mxu1 %v5703_v5 }
 0x26f   :  { %1400 = vmatprep.subr.bf16.mxu0 %v5704_v18  ;;  %1441 = vmatprep.subr.bf16.mxu1 %v5705_v38 }
 0x272   :  { %1401 = vmatpush2.bf16.msra.mxu0 %v5706_v31  ;;  %1442 = vmatpush2.bf16.msra.mxu1 %v4037_v8 }
 0x273   :  { %1402 = vmatprep.subr.bf16.mxu0 %v4041_v26  ;;  %1443 = vmatprep.subr.bf16.mxu1 %v4043_v0 }
 0x276   :  { %1403 = vmatpush2.bf16.msra.mxu0 %v4059_v9  ;;  %1444 = vmatpush2.bf16.msra.mxu1 %v4061_v46 }
 0x277   :  { %1404 = vmatprep.subr.bf16.mxu0 %v4065_v3  ;;  %1445 = vmatprep.subr.bf16.mxu1 %v4067_v32 }
 0x27a   :  { %1405 = vmatpush2.bf16.msra.mxu0 %v4071_v23  ;;  %1446 = vmatpush2.bf16.msra.mxu1 %v4073_v42 }
 0x27b   :  { %1514 = vmatprep.subr.bf16.mxu0 %v3260_v10  ;;  %1555 = vmatprep.subr.bf16.mxu1 %v3262_v11 }
 0x27d   :  { %1407 = vmatmul.mubr.bf16.vlgmr.msra.gmra.mxu0 %v4232_v24  ;;  %1448 = vmatmul.mubr.bf16.vlgmr.msra.gmra.mxu1 %v4232_v24  ;;  %v5707_v24 = vld [vmem:[#allocation32_spill] sm:$0xff] }
 0x27e   :  { %1515 = vmatpush1.bf16.msra.mxu0 %v3264_v12  ;;  %1556 = vmatpush1.bf16.msra.mxu1 %v3276_v16 }
 0x27f   :  { %1516 = vmatprep.subr.bf16.mxu0 %v3278_v17  ;;  %1557 = vmatprep.subr.bf16.mxu1 %v3285_v19 }
 0x282   :  { %1517 = vmatpush1.bf16.msra.mxu0 %v3288_v20  ;;  %1558 = vmatpush1.bf16.msra.mxu1 %v3294_v21 }
 0x283   :  { %1518 = vmatprep.subr.bf16.mxu0 %v3309_v25  ;;  %1559 = vmatprep.subr.bf16.mxu1 %v3314_v27 }
 0x286   :  { %1519 = vmatpush1.bf16.msra.mxu0 %v3316_v28  ;;  %1560 = vmatpush1.bf16.msra.mxu1 %v3318_v29 }
 0x287   :  { %1520 = vmatprep.subr.bf16.mxu0 %v3333_v33  ;;  %1561 = vmatprep.subr.bf16.mxu1 %v3338_v35 }
 0x28a   :  { %1521 = vmatpush1.bf16.msra.mxu0 %v3340_v36  ;;  %1562 = vmatpush1.bf16.msra.mxu1 %v3342_v37 }
 0x28b   :  { %1522 = vmatprep.subr.bf16.mxu0 %v3357_v41  ;;  %1563 = vmatprep.subr.bf16.mxu1 %v3362_v43 }
 0x28e   :  { %1523 = vmatpush1.bf16.msra.mxu0 %v3364_v44  ;;  %1564 = vmatpush1.bf16.msra.mxu1 %v3366_v45  ;;  %v5746_v44 = vld [vmem:[#allocation135_spill] sm:$0xff] }
 0x28f   :  { %1524 = vmatprep.subr.bf16.mxu0 %v3381_v49  ;;  %1565 = vmatprep.subr.bf16.mxu1 %v3386_v51  ;;  %v5708_v49 = vld [vmem:[#allocation33_spill] sm:$0xff]  ;;  %v5709_v51 = vld [vmem:[#allocation34_spill] sm:$0xff] }
 0x292   :  { %1525 = vmatpush1.bf16.msra.mxu0 %v3388_v52  ;;  %1566 = vmatpush1.bf16.msra.mxu1 %v3390_v53  ;;  %v5710_v52 = vld [vmem:[#allocation35_spill] sm:$0xff]  ;;  %v5711_v53 = vld [vmem:[#allocation36_spill] sm:$0xff] }
 0x293   :  { %1526 = vmatprep.subr.bf16.mxu0 %v3405_v57  ;;  %1567 = vmatprep.subr.bf16.mxu1 %v3410_v59  ;;  %v5712_v57 = vld [vmem:[#allocation37_spill] sm:$0xff]  ;;  %v5713_v59 = vld [vmem:[#allocation38_spill] sm:$0xff] }
 0x296   :  { %1527 = vmatpush1.bf16.msra.mxu0 %v3412_v60  ;;  %1568 = vmatpush1.bf16.msra.mxu1 %v3415_v61  ;;  %v5714_v60 = vld [vmem:[#allocation39_spill] sm:$0xff]  ;;  %v5715_v61 = vld [vmem:[#allocation40_spill] sm:$0xff] }
 0x297   :  { %1528 = vmatprep.subr.bf16.mxu0 %v3429_v2  ;;  %1569 = vmatprep.subr.bf16.mxu1 %v3434_v4  ;;  %v5716_v2 = vld [vmem:[#allocation41_spill] sm:$0xff]  ;;  %v5717_v4 = vld [vmem:[#allocation42_spill] sm:$0xff] }
 0x29a   :  { %1529 = vmatpush1.bf16.msra.mxu0 %v5707_v24  ;;  %1570 = vmatpush1.bf16.msra.mxu1 %v5708_v49  ;;  %v5718_v24 = vld [vmem:[#allocation43_spill] sm:$0xff]  ;;  %v5719_v49 = vld [vmem:[#allocation44_spill] sm:$0xff] }
 0x29b   :  { %1530 = vmatprep.subr.bf16.mxu0 %v5709_v51  ;;  %1571 = vmatprep.subr.bf16.mxu1 %v5710_v52  ;;  %v5720_v51 = vld [vmem:[#allocation45_spill] sm:$0xff]  ;;  %v5721_v52 = vld [vmem:[#allocation46_spill] sm:$0xff] }
 0x29e   :  { %1531 = vmatpush2.bf16.msra.mxu0 %v5711_v53  ;;  %1572 = vmatpush2.bf16.msra.mxu1 %v5712_v57  ;;  %v5722_v53 = vld [vmem:[#allocation47_spill] sm:$0xff]  ;;  %v5723_v57 = vld [vmem:[#allocation48_spill] sm:$0xff] }
 0x29f   :  { %1532 = vmatprep.subr.bf16.mxu0 %v5713_v59  ;;  %1573 = vmatprep.subr.bf16.mxu1 %v5714_v60  ;;  %v5724_v59 = vld [vmem:[#allocation49_spill] sm:$0xff]  ;;  %v5725_v60 = vld [vmem:[#allocation50_spill] sm:$0xff] }
 0x2a2   :  { %1533 = vmatpush2.bf16.msra.mxu0 %v5715_v61  ;;  %1574 = vmatpush2.bf16.msra.mxu1 %v5716_v2  ;;  %v5726_v61 = vld [vmem:[#allocation51_spill] sm:$0xff]  ;;  %v5727_v2 = vld [vmem:[#allocation52_spill] sm:$0xff] }
 0x2a3   :  { %1534 = vmatprep.subr.bf16.mxu0 %v5717_v4  ;;  %1575 = vmatprep.subr.bf16.mxu1 %v5718_v24  ;;  %v5728_v4 = vld [vmem:[#allocation53_spill] sm:$0xff]  ;;  %v5729_v24 = vld [vmem:[#allocation54_spill] sm:$0xff] }
 0x2a6   :  { %1535 = vmatpush2.bf16.msra.mxu0 %v5719_v49  ;;  %1576 = vmatpush2.bf16.msra.mxu1 %v5720_v51  ;;  %v5730_v49 = vld [vmem:[#allocation55_spill] sm:$0xff]  ;;  %v5731_v51 = vld [vmem:[#allocation56_spill] sm:$0xff] }
 0x2a7   :  { %1536 = vmatprep.subr.bf16.mxu0 %v5721_v52  ;;  %1577 = vmatprep.subr.bf16.mxu1 %v5722_v53  ;;  %v5732_v52 = vld [vmem:[#allocation57_spill] sm:$0xff]  ;;  %v5733_v53 = vld [vmem:[#allocation58_spill] sm:$0xff] }
 0x2aa   :  { %1537 = vmatpush2.bf16.msra.mxu0 %v5723_v57  ;;  %1578 = vmatpush2.bf16.msra.mxu1 %v5724_v59  ;;  %v5734_v57 = vld [vmem:[#allocation59_spill] sm:$0xff]  ;;  %v5735_v59 = vld [vmem:[#allocation60_spill] sm:$0xff] }
 0x2ab   :  { %1538 = vmatprep.subr.bf16.mxu0 %v5725_v60  ;;  %1579 = vmatprep.subr.bf16.mxu1 %v5726_v61  ;;  %v5736_v60 = vld [vmem:[#allocation61_spill] sm:$0xff]  ;;  %v5737_v61 = vld [vmem:[#allocation62_spill] sm:$0xff] }
 0x2ae   :  { %1539 = vmatpush2.bf16.msra.mxu0 %v5727_v2  ;;  %1580 = vmatpush2.bf16.msra.mxu1 %v5728_v4  ;;  %v5738_v2 = vld [vmem:[#allocation63_spill] sm:$0xff]  ;;  %v5739_v4 = vld [vmem:[#allocation64_spill] sm:$0xff] }
 0x2af   :  { %1540 = vmatprep.subr.bf16.mxu0 %v5729_v24  ;;  %1581 = vmatprep.subr.bf16.mxu1 %v5730_v49  ;;  %v5740_v24 = vld [vmem:[#allocation65_spill] sm:$0xff]  ;;  %v5741_v49 = vld [vmem:[#allocation66_spill] sm:$0xff] }
 0x2b2   :  { %1541 = vmatpush2.bf16.msra.mxu0 %v5731_v51  ;;  %1582 = vmatpush2.bf16.msra.mxu1 %v5732_v52  ;;  %v5742_v51 = vld [vmem:[#allocation67_spill] sm:$0xff] }
 0x2b3   :  { %1542 = vmatprep.subr.bf16.mxu0 %v5733_v53  ;;  %1583 = vmatprep.subr.bf16.mxu1 %v5734_v57  ;;  %v5743_v52 = vld [vmem:[#allocation71_spill] sm:$0xff]  ;;  %v5744_v53 = vld [vmem:[#allocation136_spill] sm:$0xff]  ;;  %v5745_v57 = vld [vmem:[#allocation74_spill] sm:$0xff] }
 0x2b4   :  { %v281_v45 = vadd.f32 %v5744_v53, %v5743_v52 }
 0x2b6   :  { %1543 = vmatpush2.bf16.msra.mxu0 %v5735_v59  ;;  %1584 = vmatpush2.bf16.msra.mxu1 %v5736_v60  ;;  %v354_v59 = vadd.f32 %v5746_v44, %v5745_v57 }
 0x2b7   :  { %1544 = vmatprep.subr.bf16.mxu0 %v5737_v61  ;;  %1585 = vmatprep.subr.bf16.mxu1 %v5738_v2  ;;  %v5747_v61 = vld [vmem:[#allocation138_spill] sm:$0xff]  ;;  %v5748_v2 = vld [vmem:[#allocation137_spill] sm:$0xff] }
 0x2b8   :  { %v283_v41 = vadd.f32 %v5747_v61, %v5644_v22 }
 0x2ba   :  { %1545 = vmatpush2.bf16.msra.mxu0 %v5739_v4  ;;  %1586 = vmatpush2.bf16.msra.mxu1 %v5740_v24  ;;  %v356_v4 = vadd.f32 %v5748_v2, %v3700_v40 }
 0x2bb   :  { %1596 = vmatprep.subr.bf16.mxu0 %v5741_v49  ;;  %1637 = vmatprep.subr.bf16.mxu1 %v5742_v51 }
 0x2fd   :  { %v1326_v43 = vpop.f32.mrf.mxu0  ;;  %v1367_v60 = vpop.f32.mrf.mxu1 }
 0x2fe   :  { %v1484_v37 = vadd.f32 %v1326_v43, %v281_v45  ;;  %v1486_v24 = vadd.f32 %v1367_v60, %v354_v59 }
 0x2ff   :  { %v1328_v36 = vpop.f32.mrf.mxu0  ;;  %v1369_v49 = vpop.f32.mrf.mxu1 }
 0x300   :  { %v2895_v35 = vmul.f32 -1.442695, %v1484_v37  ;;  %v1485_v51 = vadd.f32 %v1328_v36, %v283_v41  ;;  %v1487_v33 = vadd.f32 %v1369_v49, %v356_v4 }
 0x301   :  { %v1330_v29 = vpop.f32.mrf.mxu0  ;;  %v1371_v53 = vpop.f32.mrf.mxu1 }
 0x302   :  { %2991 = vpow2.f32 %v2895_v35  ;;  %v2896_v52 = vmul.f32 -1.442695, %v1485_v51 }
 0x303   :  { %v1331_v44 = vpop.f32.mrf.mxu0  ;;  %v1372_v57 = vpop.f32.mrf.mxu1 }
 0x304   :  { %2993 = vpow2.f32 %v2896_v52  ;;  %v2897_v44 = vmul.f32 -1.442695, %v1487_v33 }
 0x305   :  { %2995 = vtanh.f32 %v1486_v24 }
 0x30f   :  { %v2992_v28 = vpop.eup %2991 }
 0x310   :  { %v1491_v27 = vadd.f32 1.0, %v2992_v28 }
 0x311   :  { %v2994_v61 = vpop.eup %2993 }
 0x312   :  { %2997 = vrcp.f32 %v1491_v27  ;;  %v1497_v2 = vadd.f32 1.0, %v2994_v61  ;;  %v2996_v43 = vpop.eup %2995 }
 0x314   :  { %2999 = vrcp.f32 %v1497_v2 }
 0x31f   :  { %v2998_v45 = vpop.eup %2997 }
 0x320   :  { %v1508_v59 = vmul.f32 %v2998_v45, %v2996_v43 }
 0x321   :  { %v3000_v37 = vpop.eup %2999 }
 0x322   :  { %v1507_v36 = vmul.f32 %v3000_v37, %v4201_v6 }
 0x324   :  { %v4375_v29 = vadd.f32 %v1508_v59, %v1507_v36 }
 0x33d   :  { %v1408_v35 = vpop.f32.mrf.mxu0  ;;  %v1449_v41 = vpop.f32.mrf.mxu1 }
 0x33e   :  { %v1456_v49 = vadd.f32 %v1408_v35, %v4208_v34  ;;  %v1458_v43 = vadd.f32 %v1449_v41, %v4225_v62 }
 0x33f   :  { %v1410_v51 = vpop.f32.mrf.mxu0  ;;  %v1451_v52 = vpop.f32.mrf.mxu1 }
 0x340   :  { %v2892_v28 = vmul.f32 -1.442695, %v1456_v49  ;;  %v1457_v57 = vadd.f32 %v1410_v51, %v4212_v54  ;;  %v1459_v6 = vadd.f32 %v1451_v52, %v4218_v15 }
 0x341   :  { %v1412_v27 = vpop.f32.mrf.mxu0  ;;  %v1453_v60 = vpop.f32.mrf.mxu1 }
 0x342   :  { %3001 = vpow2.f32 %v2892_v28  ;;  %v2893_v4 = vmul.f32 -1.442695, %v1457_v57  ;;  %v2894_v61 = vmul.f32 -1.442695, %v1459_v6 }
 0x343   :  { %v1413_v24 = vpop.f32.mrf.mxu0  ;;  %v1454_v53 = vpop.f32.mrf.mxu1 }
 0x344   :  { %3003 = vpow2.f32 %v2893_v4 }
 0x345   :  { %3005 = vpow2.f32 %v2897_v44 }
 0x346   :  { %3007 = vpow2.f32 %v2894_v61 }
 0x34f   :  { %v3002_v2 = vpop.eup %3001 }
 0x350   :  { %v1463_v45 = vadd.f32 1.0, %v3002_v2 }
 0x351   :  { %v3004_v59 = vpop.eup %3003 }
 0x352   :  { %3009 = vrcp.f32 %v1463_v45  ;;  %v1469_v37 = vadd.f32 1.0, %v3004_v59  ;;  %v3006_v36 = vpop.eup %3005  ;;  %v5751_v45 = vld [vmem:[#allocation80_spill] sm:$0xff]  ;;  %v5752_v59 = vld [vmem:[#allocation81_spill] sm:$0xff] }
 0x353   :  { %3011 = vtanh.f32 %v1458_v43  ;;  %v3008_v35 = vpop.eup %3007  ;;  %v1504_v28 = vadd.f32 1.0, %v3006_v36  ;;  %v5750_v43 = vld [vmem:[#allocation79_spill] sm:$0xff] }
 0x354   :  { %3013 = vrcp.f32 %v1469_v37  ;;  %v1476_v52 = vadd.f32 1.0, %v3008_v35  ;;  %v5753_v37 = vld [vmem:[#allocation82_spill] sm:$0xff]  ;;  %v5754_v36 = vld [vmem:[#allocation83_spill] sm:$0xff]  ;;  %v5755_v35 = vld [vmem:[#allocation84_spill] sm:$0xff] }
 0x355   :  { %3015 = vtanh.f32 %v4375_v29 }
 0x356   :  { %3017 = vrcp.f32 %v1504_v28  ;;  %v5758_v28 = vld [vmem:[#allocation87_spill] sm:$0xff] }
 0x357   :  { %3019 = vrcp.f32 %v1476_v52  ;;  %v5760_v52 = vld [vmem:[#allocation89_spill] sm:$0xff] }
 0x35f   :  { %v3010_v49 = vpop.eup %3009 }
 0x360   :  { %v3012_v51 = vpop.eup %3011 }
 0x361   :  { %v3014_v57 = vpop.eup %3013  ;;  %v1480_v33 = vmul.f32 %v3012_v51, %v3010_v49  ;;  %v5756_v49 = vld [vmem:[#allocation85_spill] sm:$0xff]  ;;  %v5757_v51 = vld [vmem:[#allocation86_spill] sm:$0xff] }
 0x362   :  { %v1479_v27 = vmul.f32 %v3014_v57, %v4229_v1  ;;  %v3016_v60 = vpop.eup %3015  ;;  %v5749_v1 = vld [vmem:[#allocation78_spill] sm:$0xff]  ;;  %v5759_v57 = vld [vmem:[#allocation88_spill] sm:$0xff] }
 0x363   :  { %v3018_v4 = vpop.eup %3017 }
 0x364   :  { %v4383_v41 = vadd.f32 %v1480_v33, %v1479_v27  ;;  %v3020_v24 = vpop.eup %3019  ;;  %v1511_v6 = vmul.f32 %v3018_v4, %v3016_v60  ;;  %v5761_v33 = vld [vmem:[#allocation90_spill] sm:$0xff]  ;;  %v5762_v27 = vld [vmem:[#allocation91_spill] sm:$0xff]  ;;  %v5763_v60 = vld [vmem:[#allocation92_spill] sm:$0xff] }
 0x365   :  { %v5764_v4 = vld [vmem:[#allocation93_spill] sm:$0xff] }
 0x366   :  { %3021 = vtanh.f32 %v4383_v41  ;;  %v4386_v2 = vpack.c.bf16 %v1511_v6, %v1511_v6  ;;  %v5767_v6 = vld [vmem:[#allocation96_spill] sm:$0xff] }
 0x373   :  { %v3022_v53 = vpop.eup %3021 }
 0x374   :  { %v1483_v44 = vmul.f32 %v3022_v53, %v3020_v24  ;;  %v5765_v24 = vld [vmem:[#allocation94_spill] sm:$0xff]  ;;  %v5766_v53 = vld [vmem:[#allocation95_spill] sm:$0xff] }
 0x376   :  { %v1513_v61 = vpack.c.bf16 %v1483_v44, %v1483_v44  ;;  %v5768_v44 = vld [vmem:[#allocation97_spill] sm:$0xff] }
 0x378   :  { %1546 = vmatprep.mubr.bf16.mxu0 %v1513_v61  ;;  %1587 = vmatprep.mubr.bf16.mxu1 %v1513_v61 }
 0x379   :  { %1547 = vmatmul.mubr.bf16.vlgmr.msra.gmra.mxu0 %v4386_v2  ;;  %1588 = vmatmul.mubr.bf16.vlgmr.msra.gmra.mxu1 %v4386_v2 }
 0x37a   :  { %1597 = vmatpush1.bf16.msra.mxu0 %v5654_v39  ;;  %1638 = vmatpush1.bf16.msra.mxu1 %v5655_v47 }
 0x37b   :  { %1628 = vmatprep.mubr.bf16.mxu0 %v1513_v61  ;;  %1669 = vmatprep.mubr.bf16.mxu1 %v1513_v61  ;;  %v5769_v61 = vld [vmem:[#allocation98_spill] sm:$0xff] }
 0x37c   :  { %1598 = vmatprep.subr.bf16.mxu0 %v5656_v55  ;;  %1639 = vmatprep.subr.bf16.mxu1 %v5657_v63 }
 0x37e   :  { %1599 = vmatpush1.bf16.msra.mxu0 %v5658_v13  ;;  %1640 = vmatpush1.bf16.msra.mxu1 %v5749_v1 }
 0x37f   :  { %1600 = vmatprep.subr.bf16.mxu0 %v5750_v43  ;;  %1641 = vmatprep.subr.bf16.mxu1 %v5751_v45 }
 0x382   :  { %1601 = vmatpush1.bf16.msra.mxu0 %v5752_v59  ;;  %1642 = vmatpush1.bf16.msra.mxu1 %v5753_v37 }
 0x383   :  { %1602 = vmatprep.subr.bf16.mxu0 %v5754_v36  ;;  %1643 = vmatprep.subr.bf16.mxu1 %v5755_v35 }
 0x386   :  { %1603 = vmatpush1.bf16.msra.mxu0 %v5756_v49  ;;  %1644 = vmatpush1.bf16.msra.mxu1 %v5757_v51 }
 0x387   :  { %1604 = vmatprep.subr.bf16.mxu0 %v5758_v28  ;;  %1645 = vmatprep.subr.bf16.mxu1 %v5759_v57  ;;  %v5770_v57 = vld [vmem:[#allocation99_spill] sm:$0xff] }
 0x38a   :  { %1605 = vmatpush1.bf16.msra.mxu0 %v5760_v52  ;;  %1646 = vmatpush1.bf16.msra.mxu1 %v5761_v33  ;;  %v5771_v52 = vld [vmem:[#allocation100_spill] sm:$0xff]  ;;  %v5772_v33 = vld [vmem:[#allocation101_spill] sm:$0xff] }
 0x38b   :  { %1606 = vmatprep.subr.bf16.mxu0 %v5762_v27  ;;  %1647 = vmatprep.subr.bf16.mxu1 %v5763_v60  ;;  %v5773_v27 = vld [vmem:[#allocation102_spill] sm:$0xff]  ;;  %v5774_v60 = vld [vmem:[#allocation103_spill] sm:$0xff] }
 0x38e   :  { %1607 = vmatpush1.bf16.msra.mxu0 %v5764_v4  ;;  %1648 = vmatpush1.bf16.msra.mxu1 %v5765_v24  ;;  %v5775_v4 = vld [vmem:[#allocation104_spill] sm:$0xff]  ;;  %v5776_v24 = vld [vmem:[#allocation105_spill] sm:$0xff] }
 0x38f   :  { %1608 = vmatprep.subr.bf16.mxu0 %v5766_v53  ;;  %1649 = vmatprep.subr.bf16.mxu1 %v5767_v6  ;;  %v5777_v53 = vld [vmem:[#allocation106_spill] sm:$0xff]  ;;  %v5778_v6 = vld [vmem:[#allocation107_spill] sm:$0xff] }
 0x392   :  { %1609 = vmatpush1.bf16.msra.mxu0 %v5768_v44  ;;  %1650 = vmatpush1.bf16.msra.mxu1 %v5769_v61  ;;  %v5779_v44 = vld [vmem:[#allocation108_spill] sm:$0xff]  ;;  %v5780_v61 = vld [vmem:[#allocation109_spill] sm:$0xff] }
 0x393   :  { %1610 = vmatprep.subr.bf16.mxu0 %v5770_v57  ;;  %1651 = vmatprep.subr.bf16.mxu1 %v5771_v52  ;;  %v5781_v57 = vld [vmem:[#allocation110_spill] sm:$0xff]  ;;  %v5782_v52 = vld [vmem:[#allocation111_spill] sm:$0xff] }
 0x396   :  { %1611 = vmatpush1.bf16.msra.mxu0 %v5772_v33  ;;  %1652 = vmatpush1.bf16.msra.mxu1 %v5773_v27  ;;  %v5783_v33 = vld [vmem:[#allocation112_spill] sm:$0xff]  ;;  %v5784_v27 = vld [vmem:[#allocation113_spill] sm:$0xff] }
 0x397   :  { %1612 = vmatprep.subr.bf16.mxu0 %v5774_v60  ;;  %1653 = vmatprep.subr.bf16.mxu1 %v5775_v4  ;;  %v5785_v60 = vld [vmem:[#allocation114_spill] sm:$0xff] }
 0x39a   :  { %1613 = vmatpush2.bf16.msra.mxu0 %v5776_v24  ;;  %1654 = vmatpush2.bf16.msra.mxu1 %v5777_v53 }
 0x39b   :  { %1614 = vmatprep.subr.bf16.mxu0 %v5778_v6  ;;  %1655 = vmatprep.subr.bf16.mxu1 %v5779_v44 }
 0x39e   :  { %1615 = vmatpush2.bf16.msra.mxu0 %v5780_v61  ;;  %1656 = vmatpush2.bf16.msra.mxu1 %v5781_v57 }
 0x39f   :  { %1616 = vmatprep.subr.bf16.mxu0 %v5782_v52  ;;  %1657 = vmatprep.subr.bf16.mxu1 %v5783_v33 }
 0x3a2   :  { %1617 = vmatpush2.bf16.msra.mxu0 %v5784_v27  ;;  %1658 = vmatpush2.bf16.msra.mxu1 %v5785_v60 }
 0x3a3   :  { %1618 = vmatprep.subr.bf16.mxu0 %v5696_v7  ;;  %1659 = vmatprep.subr.bf16.mxu1 %v5697_v14 }
 0x3a6   :  { %1619 = vmatpush2.bf16.msra.mxu0 %v5698_v48  ;;  %1660 = vmatpush2.bf16.msra.mxu1 %v5699_v56 }
 0x3a7   :  { %1620 = vmatprep.subr.bf16.mxu0 %v5700_v58  ;;  %1661 = vmatprep.subr.bf16.mxu1 %v5701_v30 }
 0x3aa   :  { %1621 = vmatpush2.bf16.msra.mxu0 %v5702_v50  ;;  %1662 = vmatpush2.bf16.msra.mxu1 %v5703_v5 }
 0x3ab   :  { %1622 = vmatprep.subr.bf16.mxu0 %v5704_v18  ;;  %1663 = vmatprep.subr.bf16.mxu1 %v5705_v38 }
 0x3ae   :  { %1623 = vmatpush2.bf16.msra.mxu0 %v5706_v31  ;;  %1664 = vmatpush2.bf16.msra.mxu1 %v4037_v8 }
 0x3af   :  { %1624 = vmatprep.subr.bf16.mxu0 %v4041_v26  ;;  %1665 = vmatprep.subr.bf16.mxu1 %v4043_v0 }
 0x3b2   :  { %1625 = vmatpush2.bf16.msra.mxu0 %v4059_v9  ;;  %1666 = vmatpush2.bf16.msra.mxu1 %v4061_v46 }
 0x3b3   :  { %1626 = vmatprep.subr.bf16.mxu0 %v4065_v3  ;;  %1667 = vmatprep.subr.bf16.mxu1 %v4067_v32  ;;  %v5846_v32 = vld [vmem:[#allocation139_spill] sm:$0xff] }
 0x3b6   :  { %1627 = vmatpush2.bf16.msra.mxu0 %v4071_v23  ;;  %1668 = vmatpush2.bf16.msra.mxu1 %v4073_v42  ;;  %v5788_v42 = vld [vmem:[#allocation13_spill] sm:$0xff] }
 0x3b7   :  { %1736 = vmatprep.subr.bf16.mxu0 %v3260_v10  ;;  %1777 = vmatprep.subr.bf16.mxu1 %v3262_v11  ;;  %v5786_v10 = vld [vmem:[#allocation11_spill] sm:$0xff]  ;;  %v5787_v11 = vld [vmem:[#allocation12_spill] sm:$0xff] }
 0x3b9   :  { %1629 = vmatmul.mubr.bf16.vlgmr.msra.gmra.mxu0 %v4386_v2  ;;  %1670 = vmatmul.mubr.bf16.vlgmr.msra.gmra.mxu1 %v4386_v2  ;;  %v5789_v2 = vld [vmem:[#allocation14_spill] sm:$0xff] }
 0x3ba   :  { %1737 = vmatpush1.bf16.msra.mxu0 %v3264_v12  ;;  %1778 = vmatpush1.bf16.msra.mxu1 %v3276_v16  ;;  %v5790_v12 = vld [vmem:[#allocation15_spill] sm:$0xff]  ;;  %v5791_v16 = vld [vmem:[#allocation16_spill] sm:$0xff] }
 0x3bb   :  { %1738 = vmatprep.subr.bf16.mxu0 %v3278_v17  ;;  %1779 = vmatprep.subr.bf16.mxu1 %v3285_v19  ;;  %v5792_v17 = vld [vmem:[#allocation17_spill] sm:$0xff]  ;;  %v5793_v19 = vld [vmem:[#allocation18_spill] sm:$0xff] }
 0x3be   :  { %1739 = vmatpush1.bf16.msra.mxu0 %v3288_v20  ;;  %1780 = vmatpush1.bf16.msra.mxu1 %v3294_v21  ;;  %v5794_v20 = vld [vmem:[#allocation19_spill] sm:$0xff]  ;;  %v5795_v21 = vld [vmem:[#allocation20_spill] sm:$0xff] }
 0x3bf   :  { %1740 = vmatprep.subr.bf16.mxu0 %v3309_v25  ;;  %1781 = vmatprep.subr.bf16.mxu1 %v5786_v10  ;;  %v5796_v25 = vld [vmem:[#allocation21_spill] sm:$0xff]  ;;  %v5797_v10 = vld [vmem:[#allocation22_spill] sm:$0xff] }
 0x3c2   :  { %1741 = vmatpush1.bf16.msra.mxu0 %v5787_v11  ;;  %1782 = vmatpush1.bf16.msra.mxu1 %v5788_v42  ;;  %v5798_v11 = vld [vmem:[#allocation23_spill] sm:$0xff]  ;;  %v5799_v42 = vld [vmem:[#allocation24_spill] sm:$0xff] }
 0x3c3   :  { %1742 = vmatprep.subr.bf16.mxu0 %v5789_v2  ;;  %1783 = vmatprep.subr.bf16.mxu1 %v5790_v12  ;;  %v5800_v2 = vld [vmem:[#allocation25_spill] sm:$0xff]  ;;  %v5801_v12 = vld [vmem:[#allocation26_spill] sm:$0xff] }
 0x3c6   :  { %1743 = vmatpush1.bf16.msra.mxu0 %v5791_v16  ;;  %1784 = vmatpush1.bf16.msra.mxu1 %v5792_v17  ;;  %v5802_v16 = vld [vmem:[#allocation27_spill] sm:$0xff]  ;;  %v5803_v17 = vld [vmem:[#allocation28_spill] sm:$0xff] }
 0x3c7   :  { %1744 = vmatprep.subr.bf16.mxu0 %v5793_v19  ;;  %1785 = vmatprep.subr.bf16.mxu1 %v5794_v20  ;;  %v5804_v19 = vld [vmem:[#allocation29_spill] sm:$0xff]  ;;  %v5805_v20 = vld [vmem:[#allocation30_spill] sm:$0xff] }
 0x3ca   :  { %1745 = vmatpush1.bf16.msra.mxu0 %v5795_v21  ;;  %1786 = vmatpush1.bf16.msra.mxu1 %v5796_v25  ;;  %v5806_v21 = vld [vmem:[#allocation31_spill] sm:$0xff]  ;;  %v5807_v25 = vld [vmem:[#allocation32_spill] sm:$0xff] }
 0x3cb   :  { %1746 = vmatprep.subr.bf16.mxu0 %v5797_v10  ;;  %1787 = vmatprep.subr.bf16.mxu1 %v5798_v11  ;;  %v5808_v10 = vld [vmem:[#allocation33_spill] sm:$0xff]  ;;  %v5809_v11 = vld [vmem:[#allocation34_spill] sm:$0xff] }
 0x3ce   :  { %1747 = vmatpush1.bf16.msra.mxu0 %v5799_v42  ;;  %1788 = vmatpush1.bf16.msra.mxu1 %v5800_v2  ;;  %v5810_v42 = vld [vmem:[#allocation35_spill] sm:$0xff]  ;;  %v5811_v2 = vld [vmem:[#allocation36_spill] sm:$0xff] }
 0x3cf   :  { %1748 = vmatprep.subr.bf16.mxu0 %v5801_v12  ;;  %1789 = vmatprep.subr.bf16.mxu1 %v5802_v16  ;;  %v5812_v12 = vld [vmem:[#allocation37_spill] sm:$0xff]  ;;  %v5813_v16 = vld [vmem:[#allocation38_spill] sm:$0xff] }
 0x3d2   :  { %1749 = vmatpush1.bf16.msra.mxu0 %v5803_v17  ;;  %1790 = vmatpush1.bf16.msra.mxu1 %v5804_v19  ;;  %v5814_v17 = vld [vmem:[#allocation39_spill] sm:$0xff]  ;;  %v5815_v19 = vld [vmem:[#allocation40_spill] sm:$0xff] }
 0x3d3   :  { %1750 = vmatprep.subr.bf16.mxu0 %v5805_v20  ;;  %1791 = vmatprep.subr.bf16.mxu1 %v5806_v21  ;;  %v5816_v20 = vld [vmem:[#allocation41_spill] sm:$0xff]  ;;  %v5817_v21 = vld [vmem:[#allocation42_spill] sm:$0xff] }
 0x3d6   :  { %1751 = vmatpush1.bf16.msra.mxu0 %v5807_v25  ;;  %1792 = vmatpush1.bf16.msra.mxu1 %v5808_v10  ;;  %v5818_v25 = vld [vmem:[#allocation43_spill] sm:$0xff]  ;;  %v5819_v10 = vld [vmem:[#allocation44_spill] sm:$0xff] }
 0x3d7   :  { %1752 = vmatprep.subr.bf16.mxu0 %v5809_v11  ;;  %1793 = vmatprep.subr.bf16.mxu1 %v5810_v42  ;;  %v5820_v11 = vld [vmem:[#allocation45_spill] sm:$0xff]  ;;  %v5821_v42 = vld [vmem:[#allocation46_spill] sm:$0xff] }
 0x3da   :  { %1753 = vmatpush2.bf16.msra.mxu0 %v5811_v2  ;;  %1794 = vmatpush2.bf16.msra.mxu1 %v5812_v12  ;;  %v5822_v2 = vld [vmem:[#allocation47_spill] sm:$0xff]  ;;  %v5823_v12 = vld [vmem:[#allocation48_spill] sm:$0xff] }
 0x3db   :  { %1754 = vmatprep.subr.bf16.mxu0 %v5813_v16  ;;  %1795 = vmatprep.subr.bf16.mxu1 %v5814_v17  ;;  %v5824_v16 = vld [vmem:[#allocation49_spill] sm:$0xff]  ;;  %v5825_v17 = vld [vmem:[#allocation50_spill] sm:$0xff] }
 0x3de   :  { %1755 = vmatpush2.bf16.msra.mxu0 %v5815_v19  ;;  %1796 = vmatpush2.bf16.msra.mxu1 %v5816_v20  ;;  %v5826_v19 = vld [vmem:[#allocation51_spill] sm:$0xff]  ;;  %v5827_v20 = vld [vmem:[#allocation52_spill] sm:$0xff] }
 0x3df   :  { %1756 = vmatprep.subr.bf16.mxu0 %v5817_v21  ;;  %1797 = vmatprep.subr.bf16.mxu1 %v5818_v25  ;;  %v5828_v21 = vld [vmem:[#allocation53_spill] sm:$0xff]  ;;  %v5829_v25 = vld [vmem:[#allocation54_spill] sm:$0xff] }
 0x3e2   :  { %1757 = vmatpush2.bf16.msra.mxu0 %v5819_v10  ;;  %1798 = vmatpush2.bf16.msra.mxu1 %v5820_v11  ;;  %v5830_v10 = vld [vmem:[#allocation55_spill] sm:$0xff]  ;;  %v5831_v11 = vld [vmem:[#allocation56_spill] sm:$0xff] }
 0x3e3   :  { %1758 = vmatprep.subr.bf16.mxu0 %v5821_v42  ;;  %1799 = vmatprep.subr.bf16.mxu1 %v5822_v2  ;;  %v5832_v42 = vld [vmem:[#allocation57_spill] sm:$0xff]  ;;  %v5833_v2 = vld [vmem:[#allocation58_spill] sm:$0xff] }
 0x3e6   :  { %1759 = vmatpush2.bf16.msra.mxu0 %v5823_v12  ;;  %1800 = vmatpush2.bf16.msra.mxu1 %v5824_v16  ;;  %v5834_v12 = vld [vmem:[#allocation59_spill] sm:$0xff]  ;;  %v5835_v16 = vld [vmem:[#allocation60_spill] sm:$0xff] }
 0x3e7   :  { %1760 = vmatprep.subr.bf16.mxu0 %v5825_v17  ;;  %1801 = vmatprep.subr.bf16.mxu1 %v5826_v19  ;;  %v5836_v17 = vld [vmem:[#allocation61_spill] sm:$0xff]  ;;  %v5837_v19 = vld [vmem:[#allocation62_spill] sm:$0xff] }
 0x3ea   :  { %1761 = vmatpush2.bf16.msra.mxu0 %v5827_v20  ;;  %1802 = vmatpush2.bf16.msra.mxu1 %v5828_v21  ;;  %v5838_v20 = vld [vmem:[#allocation63_spill] sm:$0xff]  ;;  %v5839_v21 = vld [vmem:[#allocation64_spill] sm:$0xff] }
 0x3eb   :  { %1762 = vmatprep.subr.bf16.mxu0 %v5829_v25  ;;  %1803 = vmatprep.subr.bf16.mxu1 %v5830_v10  ;;  %v5840_v25 = vld [vmem:[#allocation65_spill] sm:$0xff]  ;;  %v5841_v10 = vld [vmem:[#allocation66_spill] sm:$0xff] }
 0x3ee   :  { %1763 = vmatpush2.bf16.msra.mxu0 %v5831_v11  ;;  %1804 = vmatpush2.bf16.msra.mxu1 %v5832_v42  ;;  %v5842_v11 = vld [vmem:[#allocation67_spill] sm:$0xff] }
 0x3ef   :  { %1764 = vmatprep.subr.bf16.mxu0 %v5833_v2  ;;  %1805 = vmatprep.subr.bf16.mxu1 %v5834_v12  ;;  %v5843_v42 = vld [vmem:[#allocation71_spill] sm:$0xff]  ;;  %v5844_v2 = vld [vmem:[#allocation140_spill] sm:$0xff]  ;;  %v5845_v12 = vld [vmem:[#allocation74_spill] sm:$0xff] }
 0x3f0   :  { %v285_v23 = vadd.f32 %v5844_v2, %v5843_v42 }
 0x3f2   :  { %1765 = vmatpush2.bf16.msra.mxu0 %v5835_v16  ;;  %1806 = vmatpush2.bf16.msra.mxu1 %v5836_v17  ;;  %v358_v16 = vadd.f32 %v5846_v32, %v5845_v12 }
 0x3f3   :  { %1766 = vmatprep.subr.bf16.mxu0 %v5837_v19  ;;  %1807 = vmatprep.subr.bf16.mxu1 %v5838_v20  ;;  %v5847_v19 = vld [vmem:[#allocation142_spill] sm:$0xff]  ;;  %v5848_v20 = vld [vmem:[#allocation141_spill] sm:$0xff] }
 0x3f4   :  { %v287_v46 = vadd.f32 %v5847_v19, %v5644_v22 }
 0x3f6   :  { %1767 = vmatpush2.bf16.msra.mxu0 %v5839_v21  ;;  %1808 = vmatpush2.bf16.msra.mxu1 %v5840_v25  ;;  %v360_v21 = vadd.f32 %v5848_v20, %v3700_v40 }
 0x3f7   :  { %1818 = vmatprep.subr.bf16.mxu0 %v5841_v10  ;;  %1859 = vmatprep.subr.bf16.mxu1 %v5842_v11 }
 0x439   :  { %v1548_v3 = vpop.f32.mrf.mxu0  ;;  %v1589_v17 = vpop.f32.mrf.mxu1 }
 0x43a   :  { %v1706_v9 = vadd.f32 %v1548_v3, %v285_v23  ;;  %v1708_v25 = vadd.f32 %v1589_v17, %v358_v16 }
 0x43b   :  { %v1550_v0 = vpop.f32.mrf.mxu0  ;;  %v1591_v10 = vpop.f32.mrf.mxu1 }
 0x43c   :  { %v2901_v26 = vmul.f32 -1.442695, %v1706_v9  ;;  %v1707_v11 = vadd.f32 %v1550_v0, %v287_v46  ;;  %v1709_v8 = vadd.f32 %v1591_v10, %v360_v21 }
 0x43d   :  { %v1552_v31 = vpop.f32.mrf.mxu0  ;;  %v1593_v2 = vpop.f32.mrf.mxu1 }
 0x43e   :  { %3023 = vpow2.f32 %v2901_v26  ;;  %v2902_v42 = vmul.f32 -1.442695, %v1707_v11 }
 0x43f   :  { %v1553_v32 = vpop.f32.mrf.mxu0  ;;  %v1594_v12 = vpop.f32.mrf.mxu1 }
 0x440   :  { %3025 = vpow2.f32 %v2902_v42  ;;  %v2903_v32 = vmul.f32 -1.442695, %v1709_v8 }
 0x441   :  { %3027 = vtanh.f32 %v1708_v25 }
 0x44b   :  { %v3024_v38 = vpop.eup %3023 }
 0x44c   :  { %v1713_v18 = vadd.f32 1.0, %v3024_v38 }
 0x44d   :  { %v3026_v19 = vpop.eup %3025 }
 0x44e   :  { %3029 = vrcp.f32 %v1713_v18  ;;  %v1719_v20 = vadd.f32 1.0, %v3026_v19  ;;  %v3028_v16 = vpop.eup %3027 }
 0x450   :  { %3031 = vrcp.f32 %v1719_v20 }
 0x45b   :  { %v3030_v17 = vpop.eup %3029 }
 0x45c   :  { %v1730_v3 = vmul.f32 %v3030_v17, %v3028_v16 }
 0x45d   :  { %v3032_v23 = vpop.eup %3031 }
 0x45e   :  { %v1729_v10 = vmul.f32 %v3032_v23, %v4375_v29 }
 0x460   :  { %v4529_v21 = vadd.f32 %v1730_v3, %v1729_v10 }
 0x479   :  { %v1630_v26 = vpop.f32.mrf.mxu0  ;;  %v1671_v11 = vpop.f32.mrf.mxu1 }
 0x47a   :  { %v1678_v12 = vadd.f32 %v1630_v26, %v4208_v34  ;;  %v1680_v16 = vadd.f32 %v1671_v11, %v4225_v62 }
 0x47b   :  { %v1632_v0 = vpop.f32.mrf.mxu0  ;;  %v1673_v42 = vpop.f32.mrf.mxu1 }
 0x47c   :  { %v2898_v9 = vmul.f32 -1.442695, %v1678_v12  ;;  %v1679_v25 = vadd.f32 %v1632_v0, %v4212_v54  ;;  %v1681_v29 = vadd.f32 %v1673_v42, %v4218_v15 }
 0x47d   :  { %v1634_v46 = vpop.f32.mrf.mxu0  ;;  %v1675_v18 = vpop.f32.mrf.mxu1 }
 0x47e   :  { %3033 = vpow2.f32 %v2898_v9  ;;  %v2899_v38 = vmul.f32 -1.442695, %v1679_v25  ;;  %v2900_v19 = vmul.f32 -1.442695, %v1681_v29 }
 0x47f   :  { %v1635_v31 = vpop.f32.mrf.mxu0  ;;  %v1676_v2 = vpop.f32.mrf.mxu1 }
 0x480   :  { %3035 = vpow2.f32 %v2899_v38 }
 0x481   :  { %3037 = vpow2.f32 %v2903_v32 }
 0x482   :  { %3039 = vpow2.f32 %v2900_v19 }
 0x48b   :  { %v3034_v20 = vpop.eup %3033 }
 0x48c   :  { %v1685_v17 = vadd.f32 1.0, %v3034_v20 }
 0x48d   :  { %v3036_v3 = vpop.eup %3035 }
 0x48e   :  { %3041 = vrcp.f32 %v1685_v17  ;;  %v1691_v23 = vadd.f32 1.0, %v3036_v3  ;;  %v3038_v10 = vpop.eup %3037  ;;  %v5851_v17 = vld [vmem:[#allocation90_spill] sm:$0xff]  ;;  %v5852_v3 = vld [vmem:[#allocation91_spill] sm:$0xff] }
 0x48f   :  { %3043 = vtanh.f32 %v1680_v16  ;;  %v3040_v26 = vpop.eup %3039  ;;  %v1726_v9 = vadd.f32 1.0, %v3038_v10  ;;  %v5850_v16 = vld [vmem:[#allocation89_spill] sm:$0xff] }
 0x490   :  { %3045 = vrcp.f32 %v1691_v23  ;;  %v1698_v42 = vadd.f32 1.0, %v3040_v26  ;;  %v5853_v23 = vld [vmem:[#allocation92_spill] sm:$0xff]  ;;  %v5854_v10 = vld [vmem:[#allocation93_spill] sm:$0xff]  ;;  %v5855_v26 = vld [vmem:[#allocation94_spill] sm:$0xff] }
 0x491   :  { %3047 = vtanh.f32 %v4529_v21 }
 0x492   :  { %3049 = vrcp.f32 %v1726_v9  ;;  %v5858_v9 = vld [vmem:[#allocation97_spill] sm:$0xff] }
 0x493   :  { %3051 = vrcp.f32 %v1698_v42  ;;  %v5860_v42 = vld [vmem:[#allocation99_spill] sm:$0xff] }
 0x49b   :  { %v3042_v12 = vpop.eup %3041 }
 0x49c   :  { %v3044_v0 = vpop.eup %3043 }
 0x49d   :  { %v3046_v25 = vpop.eup %3045  ;;  %v1702_v8 = vmul.f32 %v3044_v0, %v3042_v12  ;;  %v5856_v12 = vld [vmem:[#allocation95_spill] sm:$0xff]  ;;  %v5857_v0 = vld [vmem:[#allocation96_spill] sm:$0xff] }
 0x49e   :  { %v1701_v46 = vmul.f32 %v3046_v25, %v4383_v41  ;;  %v3048_v18 = vpop.eup %3047  ;;  %v5849_v41 = vld [vmem:[#allocation88_spill] sm:$0xff]  ;;  %v5859_v25 = vld [vmem:[#allocation98_spill] sm:$0xff] }
 0x49f   :  { %v3050_v38 = vpop.eup %3049 }
 0x4a0   :  { %v4537_v11 = vadd.f32 %v1702_v8, %v1701_v46  ;;  %v3052_v31 = vpop.eup %3051  ;;  %v1733_v29 = vmul.f32 %v3050_v38, %v3048_v18  ;;  %v5861_v8 = vld [vmem:[#allocation100_spill] sm:$0xff]  ;;  %v5862_v46 = vld [vmem:[#allocation101_spill] sm:$0xff]  ;;  %v5863_v18 = vld [vmem:[#allocation102_spill] sm:$0xff] }
 0x4a1   :  { %v5864_v38 = vld [vmem:[#allocation103_spill] sm:$0xff] }
 0x4a2   :  { %3053 = vtanh.f32 %v4537_v11  ;;  %v4540_v20 = vpack.c.bf16 %v1733_v29, %v1733_v29  ;;  %v5867_v29 = vld [vmem:[#allocation125_spill] sm:$0xff] }
 0x4af   :  { %v3054_v2 = vpop.eup %3053 }
 0x4b0   :  { %v1705_v32 = vmul.f32 %v3054_v2, %v3052_v31  ;;  %v5865_v31 = vld [vmem:[#allocation123_spill] sm:$0xff]  ;;  %v5866_v2 = vld [vmem:[#allocation124_spill] sm:$0xff] }
 0x4b2   :  { %v1735_v19 = vpack.c.bf16 %v1705_v32, %v1705_v32  ;;  %v5868_v32 = vld [vmem:[#allocation126_spill] sm:$0xff] }
 0x4b4   :  { %1768 = vmatprep.mubr.bf16.mxu0 %v1735_v19  ;;  %1809 = vmatprep.mubr.bf16.mxu1 %v1735_v19 }
 0x4b5   :  { %1769 = vmatmul.mubr.bf16.vlgmr.msra.gmra.mxu0 %v4540_v20  ;;  %1810 = vmatmul.mubr.bf16.vlgmr.msra.gmra.mxu1 %v4540_v20 }
 0x4b6   :  { %1819 = vmatpush1.bf16.msra.mxu0 %v5654_v39  ;;  %1860 = vmatpush1.bf16.msra.mxu1 %v5655_v47 }
 0x4b7   :  { %1850 = vmatprep.mubr.bf16.mxu0 %v1735_v19  ;;  %1891 = vmatprep.mubr.bf16.mxu1 %v1735_v19  ;;  %v5869_v19 = vld [vmem:[#allocation127_spill] sm:$0xff] }
 0x4b8   :  { %1820 = vmatprep.subr.bf16.mxu0 %v5656_v55  ;;  %1861 = vmatprep.subr.bf16.mxu1 %v5657_v63 }
 0x4ba   :  { %1821 = vmatpush1.bf16.msra.mxu0 %v5658_v13  ;;  %1862 = vmatpush1.bf16.msra.mxu1 %v5749_v1 }
 0x4bb   :  { %1822 = vmatprep.subr.bf16.mxu0 %v5750_v43  ;;  %1863 = vmatprep.subr.bf16.mxu1 %v5751_v45 }
 0x4be   :  { %1823 = vmatpush1.bf16.msra.mxu0 %v5752_v59  ;;  %1864 = vmatpush1.bf16.msra.mxu1 %v5753_v37 }
 0x4bf   :  { %1824 = vmatprep.subr.bf16.mxu0 %v5754_v36  ;;  %1865 = vmatprep.subr.bf16.mxu1 %v5755_v35 }
 0x4c2   :  { %1825 = vmatpush1.bf16.msra.mxu0 %v5756_v49  ;;  %1866 = vmatpush1.bf16.msra.mxu1 %v5757_v51 }
 0x4c3   :  { %1826 = vmatprep.subr.bf16.mxu0 %v5758_v28  ;;  %1867 = vmatprep.subr.bf16.mxu1 %v5849_v41 }
 0x4c6   :  { %1827 = vmatpush1.bf16.msra.mxu0 %v5850_v16  ;;  %1868 = vmatpush1.bf16.msra.mxu1 %v5851_v17 }
 0x4c7   :  { %1828 = vmatprep.subr.bf16.mxu0 %v5852_v3  ;;  %1869 = vmatprep.subr.bf16.mxu1 %v5853_v23 }
 0x4ca   :  { %1829 = vmatpush1.bf16.msra.mxu0 %v5854_v10  ;;  %1870 = vmatpush1.bf16.msra.mxu1 %v5855_v26 }
 0x4cb   :  { %1830 = vmatprep.subr.bf16.mxu0 %v5856_v12  ;;  %1871 = vmatprep.subr.bf16.mxu1 %v5857_v0 }
 0x4ce   :  { %1831 = vmatpush1.bf16.msra.mxu0 %v5858_v9  ;;  %1872 = vmatpush1.bf16.msra.mxu1 %v5859_v25 }
 0x4cf   :  { %1832 = vmatprep.subr.bf16.mxu0 %v5860_v42  ;;  %1873 = vmatprep.subr.bf16.mxu1 %v5861_v8 }
 0x4d2   :  { %1833 = vmatpush1.bf16.msra.mxu0 %v5862_v46  ;;  %1874 = vmatpush1.bf16.msra.mxu1 %v5863_v18 }
 0x4d3   :  { %1834 = vmatprep.subr.bf16.mxu0 %v5864_v38  ;;  %1875 = vmatprep.subr.bf16.mxu1 %v5775_v4 }
 0x4d6   :  { %1835 = vmatpush2.bf16.msra.mxu0 %v5776_v24  ;;  %1876 = vmatpush2.bf16.msra.mxu1 %v5777_v53 }
 0x4d7   :  { %1836 = vmatprep.subr.bf16.mxu0 %v5778_v6  ;;  %1877 = vmatprep.subr.bf16.mxu1 %v5779_v44 }
 0x4da   :  { %1837 = vmatpush2.bf16.msra.mxu0 %v5780_v61  ;;  %1878 = vmatpush2.bf16.msra.mxu1 %v5781_v57 }
 0x4db   :  { %1838 = vmatprep.subr.bf16.mxu0 %v5782_v52  ;;  %1879 = vmatprep.subr.bf16.mxu1 %v5783_v33 }
 0x4de   :  { %1839 = vmatpush2.bf16.msra.mxu0 %v5784_v27  ;;  %1880 = vmatpush2.bf16.msra.mxu1 %v5785_v60 }
 0x4df   :  { %1840 = vmatprep.subr.bf16.mxu0 %v5696_v7  ;;  %1881 = vmatprep.subr.bf16.mxu1 %v5697_v14  ;;  %v5946_v14 = vld [vmem:[#allocation143_spill] sm:$0xff] }
 0x4e2   :  { %1841 = vmatpush2.bf16.msra.mxu0 %v5698_v48  ;;  %1882 = vmatpush2.bf16.msra.mxu1 %v5699_v56  ;;  %v5870_v48 = vld [vmem:[#allocation128_spill] sm:$0xff]  ;;  %v5871_v56 = vld [vmem:[#allocation129_spill] sm:$0xff] }
 0x4e3   :  { %1842 = vmatprep.subr.bf16.mxu0 %v5700_v58  ;;  %1883 = vmatprep.subr.bf16.mxu1 %v5701_v30  ;;  %v5872_v58 = vld [vmem:[#allocation130_spill] sm:$0xff]  ;;  %v5873_v30 = vld [vmem:[#allocation131_spill] sm:$0xff] }
 0x4e6   :  { %1843 = vmatpush2.bf16.msra.mxu0 %v5702_v50  ;;  %1884 = vmatpush2.bf16.msra.mxu1 %v5703_v5  ;;  %v5874_v50 = vld [vmem:[#allocation132_spill] sm:$0xff]  ;;  %v5875_v5 = vld [vmem:[#allocation133_spill] sm:$0xff] }
 0x4e7   :  { %1844 = vmatprep.subr.bf16.mxu0 %v5865_v31  ;;  %1885 = vmatprep.subr.bf16.mxu1 %v5866_v2  ;;  %v5876_v31 = vld [vmem:[#allocation134_spill] sm:$0xff] }
 0x4e8   :  { %v5877_v2 = vld [vmem:[#allocation2_spill] sm:$0xff] }
 0x4ea   :  { %1845 = vmatpush2.bf16.msra.mxu0 %v5867_v29  ;;  %1886 = vmatpush2.bf16.msra.mxu1 %v5868_v32  ;;  %v5878_v29 = vld [vmem:[#allocation3_spill] sm:$0xff] }
 0x4eb   :  { %1846 = vmatprep.subr.bf16.mxu0 %v5869_v19  ;;  %1887 = vmatprep.subr.bf16.mxu1 %v5870_v48  ;;  %v5879_v48 = vld [vmem:[#allocation4_spill] sm:$0xff]  ;;  %v5888_v19 = vld [vmem:[#allocation13_spill] sm:$0xff] }
 0x4ee   :  { %1847 = vmatpush2.bf16.msra.mxu0 %v5871_v56  ;;  %1888 = vmatpush2.bf16.msra.mxu1 %v5872_v58  ;;  %v5880_v56 = vld [vmem:[#allocation5_spill] sm:$0xff]  ;;  %v5881_v58 = vld [vmem:[#allocation6_spill] sm:$0xff] }
 0x4ef   :  { %1848 = vmatprep.subr.bf16.mxu0 %v5873_v30  ;;  %1889 = vmatprep.subr.bf16.mxu1 %v5874_v50  ;;  %v5882_v30 = vld [vmem:[#allocation7_spill] sm:$0xff]  ;;  %v5883_v50 = vld [vmem:[#allocation8_spill] sm:$0xff] }
 0x4f2   :  { %1849 = vmatpush2.bf16.msra.mxu0 %v5875_v5  ;;  %1890 = vmatpush2.bf16.msra.mxu1 %v5876_v31  ;;  %v5884_v5 = vld [vmem:[#allocation9_spill] sm:$0xff]  ;;  %v5885_v31 = vld [vmem:[#allocation10_spill] sm:$0xff] }
 0x4f3   :  { %1958 = vmatprep.subr.bf16.mxu0 %v5877_v2  ;;  %1999 = vmatprep.subr.bf16.mxu1 %v5878_v29  ;;  %v5886_v2 = vld [vmem:[#allocation11_spill] sm:$0xff]  ;;  %v5887_v29 = vld [vmem:[#allocation12_spill] sm:$0xff] }
 0x4f5   :  { %1851 = vmatmul.mubr.bf16.vlgmr.msra.gmra.mxu0 %v4540_v20  ;;  %1892 = vmatmul.mubr.bf16.vlgmr.msra.gmra.mxu1 %v4540_v20  ;;  %v5889_v20 = vld [vmem:[#allocation14_spill] sm:$0xff] }
 0x4f6   :  { %1959 = vmatpush1.bf16.msra.mxu0 %v5879_v48  ;;  %2000 = vmatpush1.bf16.msra.mxu1 %v5880_v56  ;;  %v5890_v48 = vld [vmem:[#allocation15_spill] sm:$0xff]  ;;  %v5891_v56 = vld [vmem:[#allocation16_spill] sm:$0xff] }
 0x4f7   :  { %1960 = vmatprep.subr.bf16.mxu0 %v5881_v58  ;;  %2001 = vmatprep.subr.bf16.mxu1 %v5882_v30  ;;  %v5892_v58 = vld [vmem:[#allocation17_spill] sm:$0xff]  ;;  %v5893_v30 = vld [vmem:[#allocation18_spill] sm:$0xff] }
 0x4fa   :  { %1961 = vmatpush1.bf16.msra.mxu0 %v5883_v50  ;;  %2002 = vmatpush1.bf16.msra.mxu1 %v5884_v5  ;;  %v5894_v50 = vld [vmem:[#allocation19_spill] sm:$0xff]  ;;  %v5895_v5 = vld [vmem:[#allocation20_spill] sm:$0xff] }
 0x4fb   :  { %1962 = vmatprep.subr.bf16.mxu0 %v5885_v31  ;;  %2003 = vmatprep.subr.bf16.mxu1 %v5886_v2  ;;  %v5896_v31 = vld [vmem:[#allocation21_spill] sm:$0xff]  ;;  %v5897_v2 = vld [vmem:[#allocation22_spill] sm:$0xff] }
 0x4fe   :  { %1963 = vmatpush1.bf16.msra.mxu0 %v5887_v29  ;;  %2004 = vmatpush1.bf16.msra.mxu1 %v5888_v19  ;;  %v5898_v29 = vld [vmem:[#allocation23_spill] sm:$0xff]  ;;  %v5899_v19 = vld [vmem:[#allocation24_spill] sm:$0xff] }
 0x4ff   :  { %1964 = vmatprep.subr.bf16.mxu0 %v5889_v20  ;;  %2005 = vmatprep.subr.bf16.mxu1 %v5890_v48  ;;  %v5900_v20 = vld [vmem:[#allocation25_spill] sm:$0xff]  ;;  %v5901_v48 = vld [vmem:[#allocation26_spill] sm:$0xff] }
 0x502   :  { %1965 = vmatpush1.bf16.msra.mxu0 %v5891_v56  ;;  %2006 = vmatpush1.bf16.msra.mxu1 %v5892_v58  ;;  %v5902_v56 = vld [vmem:[#allocation27_spill] sm:$0xff]  ;;  %v5903_v58 = vld [vmem:[#allocation28_spill] sm:$0xff] }
 0x503   :  { %1966 = vmatprep.subr.bf16.mxu0 %v5893_v30  ;;  %2007 = vmatprep.subr.bf16.mxu1 %v5894_v50  ;;  %v5904_v30 = vld [vmem:[#allocation29_spill] sm:$0xff]  ;;  %v5905_v50 = vld [vmem:[#allocation30_spill] sm:$0xff] }
 0x506   :  { %1967 = vmatpush1.bf16.msra.mxu0 %v5895_v5  ;;  %2008 = vmatpush1.bf16.msra.mxu1 %v5896_v31  ;;  %v5906_v5 = vld [vmem:[#allocation31_spill] sm:$0xff]  ;;  %v5907_v31 = vld [vmem:[#allocation32_spill] sm:$0xff] }
 0x507   :  { %1968 = vmatprep.subr.bf16.mxu0 %v5897_v2  ;;  %2009 = vmatprep.subr.bf16.mxu1 %v5898_v29  ;;  %v5908_v2 = vld [vmem:[#allocation33_spill] sm:$0xff]  ;;  %v5909_v29 = vld [vmem:[#allocation34_spill] sm:$0xff] }
 0x50a   :  { %1969 = vmatpush1.bf16.msra.mxu0 %v5899_v19  ;;  %2010 = vmatpush1.bf16.msra.mxu1 %v5900_v20  ;;  %v5910_v19 = vld [vmem:[#allocation35_spill] sm:$0xff]  ;;  %v5911_v20 = vld [vmem:[#allocation36_spill] sm:$0xff] }
 0x50b   :  { %1970 = vmatprep.subr.bf16.mxu0 %v5901_v48  ;;  %2011 = vmatprep.subr.bf16.mxu1 %v5902_v56  ;;  %v5912_v48 = vld [vmem:[#allocation37_spill] sm:$0xff]  ;;  %v5913_v56 = vld [vmem:[#allocation38_spill] sm:$0xff] }
 0x50e   :  { %1971 = vmatpush1.bf16.msra.mxu0 %v5903_v58  ;;  %2012 = vmatpush1.bf16.msra.mxu1 %v5904_v30  ;;  %v5914_v58 = vld [vmem:[#allocation39_spill] sm:$0xff]  ;;  %v5915_v30 = vld [vmem:[#allocation40_spill] sm:$0xff] }
 0x50f   :  { %1972 = vmatprep.subr.bf16.mxu0 %v5905_v50  ;;  %2013 = vmatprep.subr.bf16.mxu1 %v5906_v5  ;;  %v5916_v50 = vld [vmem:[#allocation41_spill] sm:$0xff]  ;;  %v5917_v5 = vld [vmem:[#allocation42_spill] sm:$0xff] }
 0x512   :  { %1973 = vmatpush1.bf16.msra.mxu0 %v5907_v31  ;;  %2014 = vmatpush1.bf16.msra.mxu1 %v5908_v2  ;;  %v5918_v31 = vld [vmem:[#allocation43_spill] sm:$0xff]  ;;  %v5919_v2 = vld [vmem:[#allocation44_spill] sm:$0xff] }
 0x513   :  { %1974 = vmatprep.subr.bf16.mxu0 %v5909_v29  ;;  %2015 = vmatprep.subr.bf16.mxu1 %v5910_v19  ;;  %v5920_v29 = vld [vmem:[#allocation45_spill] sm:$0xff]  ;;  %v5921_v19 = vld [vmem:[#allocation46_spill] sm:$0xff] }
 0x516   :  { %1975 = vmatpush2.bf16.msra.mxu0 %v5911_v20  ;;  %2016 = vmatpush2.bf16.msra.mxu1 %v5912_v48  ;;  %v5922_v20 = vld [vmem:[#allocation47_spill] sm:$0xff]  ;;  %v5923_v48 = vld [vmem:[#allocation48_spill] sm:$0xff] }
 0x517   :  { %1976 = vmatprep.subr.bf16.mxu0 %v5913_v56  ;;  %2017 = vmatprep.subr.bf16.mxu1 %v5914_v58  ;;  %v5924_v56 = vld [vmem:[#allocation49_spill] sm:$0xff]  ;;  %v5925_v58 = vld [vmem:[#allocation50_spill] sm:$0xff] }
 0x51a   :  { %1977 = vmatpush2.bf16.msra.mxu0 %v5915_v30  ;;  %2018 = vmatpush2.bf16.msra.mxu1 %v5916_v50  ;;  %v5926_v30 = vld [vmem:[#allocation51_spill] sm:$0xff]  ;;  %v5927_v50 = vld [vmem:[#allocation52_spill] sm:$0xff] }
 0x51b   :  { %1978 = vmatprep.subr.bf16.mxu0 %v5917_v5  ;;  %2019 = vmatprep.subr.bf16.mxu1 %v5918_v31  ;;  %v5928_v5 = vld [vmem:[#allocation53_spill] sm:$0xff]  ;;  %v5929_v31 = vld [vmem:[#allocation54_spill] sm:$0xff] }
 0x51e   :  { %1979 = vmatpush2.bf16.msra.mxu0 %v5919_v2  ;;  %2020 = vmatpush2.bf16.msra.mxu1 %v5920_v29  ;;  %v5930_v2 = vld [vmem:[#allocation55_spill] sm:$0xff]  ;;  %v5931_v29 = vld [vmem:[#allocation56_spill] sm:$0xff] }
 0x51f   :  { %1980 = vmatprep.subr.bf16.mxu0 %v5921_v19  ;;  %2021 = vmatprep.subr.bf16.mxu1 %v5922_v20  ;;  %v5932_v19 = vld [vmem:[#allocation57_spill] sm:$0xff]  ;;  %v5933_v20 = vld [vmem:[#allocation58_spill] sm:$0xff] }
 0x522   :  { %1981 = vmatpush2.bf16.msra.mxu0 %v5923_v48  ;;  %2022 = vmatpush2.bf16.msra.mxu1 %v5924_v56  ;;  %v5934_v48 = vld [vmem:[#allocation59_spill] sm:$0xff]  ;;  %v5935_v56 = vld [vmem:[#allocation60_spill] sm:$0xff] }
 0x523   :  { %1982 = vmatprep.subr.bf16.mxu0 %v5925_v58  ;;  %2023 = vmatprep.subr.bf16.mxu1 %v5926_v30  ;;  %v5936_v58 = vld [vmem:[#allocation61_spill] sm:$0xff]  ;;  %v5937_v30 = vld [vmem:[#allocation62_spill] sm:$0xff] }
 0x526   :  { %1983 = vmatpush2.bf16.msra.mxu0 %v5927_v50  ;;  %2024 = vmatpush2.bf16.msra.mxu1 %v5928_v5  ;;  %v5938_v50 = vld [vmem:[#allocation63_spill] sm:$0xff]  ;;  %v5939_v5 = vld [vmem:[#allocation64_spill] sm:$0xff] }
 0x527   :  { %1984 = vmatprep.subr.bf16.mxu0 %v5929_v31  ;;  %2025 = vmatprep.subr.bf16.mxu1 %v5930_v2  ;;  %v5940_v31 = vld [vmem:[#allocation65_spill] sm:$0xff]  ;;  %v5941_v2 = vld [vmem:[#allocation66_spill] sm:$0xff] }
 0x52a   :  { %1985 = vmatpush2.bf16.msra.mxu0 %v5931_v29  ;;  %2026 = vmatpush2.bf16.msra.mxu1 %v5932_v19  ;;  %v5942_v29 = vld [vmem:[#allocation67_spill] sm:$0xff] }
 0x52b   :  { %1986 = vmatprep.subr.bf16.mxu0 %v5933_v20  ;;  %2027 = vmatprep.subr.bf16.mxu1 %v5934_v48  ;;  %v5943_v19 = vld [vmem:[#allocation71_spill] sm:$0xff]  ;;  %v5944_v20 = vld [vmem:[#allocation144_spill] sm:$0xff]  ;;  %v5945_v48 = vld [vmem:[#allocation74_spill] sm:$0xff] }
 0x52c   :  { %v291_v32 = vadd.f32 %v5944_v20, %v5943_v19 }
 0x52e   :  { %1987 = vmatpush2.bf16.msra.mxu0 %v5935_v56  ;;  %2028 = vmatpush2.bf16.msra.mxu1 %v5936_v58  ;;  %v364_v56 = vadd.f32 %v5946_v14, %v5945_v48 }
 0x52f   :  { %1988 = vmatprep.subr.bf16.mxu0 %v5937_v30  ;;  %2029 = vmatprep.subr.bf16.mxu1 %v5938_v50  ;;  %v5947_v30 = vld [vmem:[#allocation146_spill] sm:$0xff]  ;;  %v5948_v50 = vld [vmem:[#allocation145_spill] sm:$0xff] }
 0x530   :  { %v293_v60 = vadd.f32 %v5947_v30, %v5644_v22 }
 0x532   :  { %1989 = vmatpush2.bf16.msra.mxu0 %v5939_v5  ;;  %2030 = vmatpush2.bf16.msra.mxu1 %v5940_v31  ;;  %v366_v5 = vadd.f32 %v5948_v50, %v3700_v40 }
 0x533   :  { %2040 = vmatprep.subr.bf16.mxu0 %v5941_v2  ;;  %2081 = vmatprep.subr.bf16.mxu1 %v5942_v29 }
 0x575   :  { %v1770_v7 = vpop.f32.mrf.mxu0  ;;  %v1811_v58 = vpop.f32.mrf.mxu1 }
 0x576   :  { %v1928_v27 = vadd.f32 %v1770_v7, %v291_v32  ;;  %v1930_v31 = vadd.f32 %v1811_v58, %v364_v56 }
 0x577   :  { %v1772_v33 = vpop.f32.mrf.mxu0  ;;  %v1813_v2 = vpop.f32.mrf.mxu1 }
 0x578   :  { %v2907_v52 = vmul.f32 -1.442695, %v1928_v27  ;;  %v1929_v29 = vadd.f32 %v1772_v33, %v293_v60  ;;  %v1931_v57 = vadd.f32 %v1813_v2, %v366_v5 }
 0x579   :  { %v1774_v61 = vpop.f32.mrf.mxu0  ;;  %v1815_v20 = vpop.f32.mrf.mxu1 }
 0x57a   :  { %3055 = vpow2.f32 %v2907_v52  ;;  %v2908_v19 = vmul.f32 -1.442695, %v1929_v29 }
 0x57b   :  { %v1775_v14 = vpop.f32.mrf.mxu0  ;;  %v1816_v48 = vpop.f32.mrf.mxu1 }
 0x57c   :  { %3057 = vpow2.f32 %v2908_v19  ;;  %v2909_v14 = vmul.f32 -1.442695, %v1931_v57 }
 0x57d   :  { %3059 = vtanh.f32 %v1930_v31 }
 0x587   :  { %v3056_v44 = vpop.eup %3055 }
 0x588   :  { %v1935_v6 = vadd.f32 1.0, %v3056_v44 }
 0x589   :  { %v3058_v30 = vpop.eup %3057 }
 0x58a   :  { %3061 = vrcp.f32 %v1935_v6  ;;  %v1941_v50 = vadd.f32 1.0, %v3058_v30  ;;  %v3060_v7 = vpop.eup %3059 }
 0x58c   :  { %3063 = vrcp.f32 %v1941_v50 }
 0x597   :  { %v3062_v56 = vpop.eup %3061 }
 0x598   :  { %v1952_v58 = vmul.f32 %v3062_v56, %v3060_v7 }
 0x599   :  { %v3064_v27 = vpop.eup %3063 }
 0x59a   :  { %v1951_v5 = vmul.f32 %v3064_v27, %v4529_v21 }
 0x59c   :  { %v4683_v33 = vadd.f32 %v1952_v58, %v1951_v5 }
 0x5b5   :  { %v1852_v52 = vpop.f32.mrf.mxu0  ;;  %v1893_v60 = vpop.f32.mrf.mxu1 }
 0x5b6   :  { %v1900_v48 = vadd.f32 %v1852_v52, %v4208_v34  ;;  %v1902_v7 = vadd.f32 %v1893_v60, %v4225_v62 }
 0x5b7   :  { %v1854_v61 = vpop.f32.mrf.mxu0  ;;  %v1895_v2 = vpop.f32.mrf.mxu1 }
 0x5b8   :  { %v2904_v44 = vmul.f32 -1.442695, %v1900_v48  ;;  %v1901_v31 = vadd.f32 %v1854_v61, %v4212_v54  ;;  %v1903_v21 = vadd.f32 %v1895_v2, %v4218_v15 }
 0x5b9   :  { %v1856_v6 = vpop.f32.mrf.mxu0  ;;  %v1897_v29 = vpop.f32.mrf.mxu1 }
 0x5ba   :  { %3065 = vpow2.f32 %v2904_v44  ;;  %v2905_v32 = vmul.f32 -1.442695, %v1901_v31  ;;  %v2906_v30 = vmul.f32 -1.442695, %v1903_v21 }
 0x5bb   :  { %v1857_v19 = vpop.f32.mrf.mxu0  ;;  %v1898_v20 = vpop.f32.mrf.mxu1 }
 0x5bc   :  { %3067 = vpow2.f32 %v2905_v32 }
 0x5bd   :  { %3069 = vpow2.f32 %v2909_v14 }
 0x5be   :  { %3071 = vpow2.f32 %v2906_v30 }
 0x5c7   :  { %v3066_v50 = vpop.eup %3065 }
 0x5c8   :  { %v1907_v56 = vadd.f32 1.0, %v3066_v50 }
 0x5c9   :  { %v3068_v58 = vpop.eup %3067 }
 0x5ca   :  { %3073 = vrcp.f32 %v1907_v56  ;;  %v1913_v27 = vadd.f32 1.0, %v3068_v58  ;;  %v3070_v5 = vpop.eup %3069  ;;  %v5951_v56 = vld [vmem:[#allocation109_spill] sm:$0xff]  ;;  %v5952_v58 = vld [vmem:[#allocation110_spill] sm:$0xff] }
 0x5cb   :  { %3075 = vtanh.f32 %v1902_v7  ;;  %v3072_v52 = vpop.eup %3071  ;;  %v1948_v44 = vadd.f32 1.0, %v3070_v5  ;;  %v5950_v7 = vld [vmem:[#allocation108_spill] sm:$0xff] }
 0x5cc   :  { %3077 = vrcp.f32 %v1913_v27  ;;  %v1920_v2 = vadd.f32 1.0, %v3072_v52  ;;  %v5953_v27 = vld [vmem:[#allocation111_spill] sm:$0xff]  ;;  %v5954_v5 = vld [vmem:[#allocation112_spill] sm:$0xff]  ;;  %v5955_v52 = vld [vmem:[#allocation113_spill] sm:$0xff] }
 0x5cd   :  { %3079 = vtanh.f32 %v4683_v33 }
 0x5ce   :  { %3081 = vrcp.f32 %v1948_v44  ;;  %v5958_v44 = vld [vmem:[#allocation116_spill] sm:$0xff] }
 0x5cf   :  { %3083 = vrcp.f32 %v1920_v2  ;;  %v5960_v2 = vld [vmem:[#allocation118_spill] sm:$0xff] }
 0x5d7   :  { %v3074_v48 = vpop.eup %3073 }
 0x5d8   :  { %v3076_v61 = vpop.eup %3075 }
 0x5d9   :  { %v3078_v31 = vpop.eup %3077  ;;  %v1924_v57 = vmul.f32 %v3076_v61, %v3074_v48  ;;  %v5956_v48 = vld [vmem:[#allocation114_spill] sm:$0xff]  ;;  %v5957_v61 = vld [vmem:[#allocation115_spill] sm:$0xff] }
 0x5da   :  { %v1923_v6 = vmul.f32 %v3078_v31, %v4537_v11  ;;  %v3080_v29 = vpop.eup %3079  ;;  %v5949_v11 = vld [vmem:[#allocation107_spill] sm:$0xff]  ;;  %v5959_v31 = vld [vmem:[#allocation117_spill] sm:$0xff] }
 0x5db   :  { %v3082_v32 = vpop.eup %3081 }
 0x5dc   :  { %v4691_v60 = vadd.f32 %v1924_v57, %v1923_v6  ;;  %v3084_v19 = vpop.eup %3083  ;;  %v1955_v21 = vmul.f32 %v3082_v32, %v3080_v29  ;;  %v5961_v57 = vld [vmem:[#allocation119_spill] sm:$0xff]  ;;  %v5962_v6 = vld [vmem:[#allocation120_spill] sm:$0xff]  ;;  %v5963_v29 = vld [vmem:[#allocation121_spill] sm:$0xff] }
 0x5dd   :  { %v5964_v32 = vld [vmem:[#allocation122_spill] sm:$0xff] }
 0x5de   :  { %3085 = vtanh.f32 %v4691_v60  ;;  %v4694_v50 = vpack.c.bf16 %v1955_v21, %v1955_v21  ;;  %v5967_v21 = vld [vmem:[#allocation125_spill] sm:$0xff] }
 0x5eb   :  { %v3086_v20 = vpop.eup %3085 }
 0x5ec   :  { %v1927_v14 = vmul.f32 %v3086_v20, %v3084_v19  ;;  %v5965_v19 = vld [vmem:[#allocation123_spill] sm:$0xff]  ;;  %v5966_v20 = vld [vmem:[#allocation124_spill] sm:$0xff] }
 0x5ee   :  { %v1957_v30 = vpack.c.bf16 %v1927_v14, %v1927_v14  ;;  %v5968_v14 = vld [vmem:[#allocation126_spill] sm:$0xff] }
 0x5f0   :  { %1990 = vmatprep.mubr.bf16.mxu0 %v1957_v30  ;;  %2031 = vmatprep.mubr.bf16.mxu1 %v1957_v30 }
 0x5f1   :  { %1991 = vmatmul.mubr.bf16.vlgmr.msra.gmra.mxu0 %v4694_v50  ;;  %2032 = vmatmul.mubr.bf16.vlgmr.msra.gmra.mxu1 %v4694_v50 }
 0x5f2   :  { %2041 = vmatpush1.bf16.msra.mxu0 %v5654_v39  ;;  %2082 = vmatpush1.bf16.msra.mxu1 %v5655_v47 }
 0x5f3   :  { %2072 = vmatprep.mubr.bf16.mxu0 %v1957_v30  ;;  %2113 = vmatprep.mubr.bf16.mxu1 %v1957_v30  ;;  %v5969_v30 = vld [vmem:[#allocation127_spill] sm:$0xff] }
 0x5f4   :  { %2042 = vmatprep.subr.bf16.mxu0 %v5656_v55  ;;  %2083 = vmatprep.subr.bf16.mxu1 %v5657_v63 }
 0x5f6   :  { %2043 = vmatpush1.bf16.msra.mxu0 %v5658_v13  ;;  %2084 = vmatpush1.bf16.msra.mxu1 %v5749_v1 }
 0x5f7   :  { %2044 = vmatprep.subr.bf16.mxu0 %v5750_v43  ;;  %2085 = vmatprep.subr.bf16.mxu1 %v5751_v45 }
 0x5fa   :  { %2045 = vmatpush1.bf16.msra.mxu0 %v5752_v59  ;;  %2086 = vmatpush1.bf16.msra.mxu1 %v5753_v37 }
 0x5fb   :  { %2046 = vmatprep.subr.bf16.mxu0 %v5754_v36  ;;  %2087 = vmatprep.subr.bf16.mxu1 %v5755_v35 }
 0x5fe   :  { %2047 = vmatpush1.bf16.msra.mxu0 %v5756_v49  ;;  %2088 = vmatpush1.bf16.msra.mxu1 %v5757_v51 }
 0x5ff   :  { %2048 = vmatprep.subr.bf16.mxu0 %v5758_v28  ;;  %2089 = vmatprep.subr.bf16.mxu1 %v5849_v41 }
 0x602   :  { %2049 = vmatpush1.bf16.msra.mxu0 %v5850_v16  ;;  %2090 = vmatpush1.bf16.msra.mxu1 %v5851_v17 }
 0x603   :  { %2050 = vmatprep.subr.bf16.mxu0 %v5852_v3  ;;  %2091 = vmatprep.subr.bf16.mxu1 %v5853_v23 }
 0x606   :  { %2051 = vmatpush1.bf16.msra.mxu0 %v5854_v10  ;;  %2092 = vmatpush1.bf16.msra.mxu1 %v5855_v26 }
 0x607   :  { %2052 = vmatprep.subr.bf16.mxu0 %v5856_v12  ;;  %2093 = vmatprep.subr.bf16.mxu1 %v5857_v0 }
 0x60a   :  { %2053 = vmatpush1.bf16.msra.mxu0 %v5858_v9  ;;  %2094 = vmatpush1.bf16.msra.mxu1 %v5859_v25 }
 0x60b   :  { %2054 = vmatprep.subr.bf16.mxu0 %v5860_v42  ;;  %2095 = vmatprep.subr.bf16.mxu1 %v5861_v8 }
 0x60e   :  { %2055 = vmatpush1.bf16.msra.mxu0 %v5862_v46  ;;  %2096 = vmatpush1.bf16.msra.mxu1 %v5863_v18 }
 0x60f   :  { %2056 = vmatprep.subr.bf16.mxu0 %v5864_v38  ;;  %2097 = vmatprep.subr.bf16.mxu1 %v5775_v4 }
 0x612   :  { %2057 = vmatpush2.bf16.msra.mxu0 %v5776_v24  ;;  %2098 = vmatpush2.bf16.msra.mxu1 %v5777_v53 }
 0x613   :  { %2058 = vmatprep.subr.bf16.mxu0 %v5949_v11  ;;  %2099 = vmatprep.subr.bf16.mxu1 %v5950_v7 }
 0x616   :  { %2059 = vmatpush2.bf16.msra.mxu0 %v5951_v56  ;;  %2100 = vmatpush2.bf16.msra.mxu1 %v5952_v58 }
 0x617   :  { %2060 = vmatprep.subr.bf16.mxu0 %v5953_v27  ;;  %2101 = vmatprep.subr.bf16.mxu1 %v5954_v5 }
 0x61a   :  { %2061 = vmatpush2.bf16.msra.mxu0 %v5955_v52  ;;  %2102 = vmatpush2.bf16.msra.mxu1 %v5956_v48 }
 0x61b   :  { %2062 = vmatprep.subr.bf16.mxu0 %v5957_v61  ;;  %2103 = vmatprep.subr.bf16.mxu1 %v5958_v44  ;;  %v6046_v44 = vld [vmem:[#allocation147_spill] sm:$0xff] }
 0x61e   :  { %2063 = vmatpush2.bf16.msra.mxu0 %v5959_v31  ;;  %2104 = vmatpush2.bf16.msra.mxu1 %v5960_v2  ;;  %v5970_v31 = vld [vmem:[#allocation128_spill] sm:$0xff]  ;;  %v5971_v2 = vld [vmem:[#allocation129_spill] sm:$0xff] }
 0x61f   :  { %2064 = vmatprep.subr.bf16.mxu0 %v5961_v57  ;;  %2105 = vmatprep.subr.bf16.mxu1 %v5962_v6  ;;  %v5972_v57 = vld [vmem:[#allocation130_spill] sm:$0xff]  ;;  %v5973_v6 = vld [vmem:[#allocation131_spill] sm:$0xff] }
 0x622   :  { %2065 = vmatpush2.bf16.msra.mxu0 %v5963_v29  ;;  %2106 = vmatpush2.bf16.msra.mxu1 %v5964_v32  ;;  %v5974_v29 = vld [vmem:[#allocation132_spill] sm:$0xff]  ;;  %v5975_v32 = vld [vmem:[#allocation133_spill] sm:$0xff] }
 0x623   :  { %2066 = vmatprep.subr.bf16.mxu0 %v5965_v19  ;;  %2107 = vmatprep.subr.bf16.mxu1 %v5966_v20  ;;  %v5976_v19 = vld [vmem:[#allocation134_spill] sm:$0xff] }
 0x624   :  { %v5977_v20 = vld [vmem:[#allocation2_spill] sm:$0xff] }
 0x626   :  { %2067 = vmatpush2.bf16.msra.mxu0 %v5967_v21  ;;  %2108 = vmatpush2.bf16.msra.mxu1 %v5968_v14  ;;  %v5978_v21 = vld [vmem:[#allocation3_spill] sm:$0xff] }
 0x627   :  { %2068 = vmatprep.subr.bf16.mxu0 %v5969_v30  ;;  %2109 = vmatprep.subr.bf16.mxu1 %v5970_v31  ;;  %v5979_v31 = vld [vmem:[#allocation4_spill] sm:$0xff]  ;;  %v5988_v30 = vld [vmem:[#allocation13_spill] sm:$0xff] }
 0x62a   :  { %2069 = vmatpush2.bf16.msra.mxu0 %v5971_v2  ;;  %2110 = vmatpush2.bf16.msra.mxu1 %v5972_v57  ;;  %v5980_v2 = vld [vmem:[#allocation5_spill] sm:$0xff]  ;;  %v5981_v57 = vld [vmem:[#allocation6_spill] sm:$0xff] }
 0x62b   :  { %2070 = vmatprep.subr.bf16.mxu0 %v5973_v6  ;;  %2111 = vmatprep.subr.bf16.mxu1 %v5974_v29  ;;  %v5982_v6 = vld [vmem:[#allocation7_spill] sm:$0xff]  ;;  %v5983_v29 = vld [vmem:[#allocation8_spill] sm:$0xff] }
 0x62e   :  { %2071 = vmatpush2.bf16.msra.mxu0 %v5975_v32  ;;  %2112 = vmatpush2.bf16.msra.mxu1 %v5976_v19  ;;  %v5984_v32 = vld [vmem:[#allocation9_spill] sm:$0xff]  ;;  %v5985_v19 = vld [vmem:[#allocation10_spill] sm:$0xff] }
 0x62f   :  { %2180 = vmatprep.subr.bf16.mxu0 %v5977_v20  ;;  %2221 = vmatprep.subr.bf16.mxu1 %v5978_v21  ;;  %v5986_v20 = vld [vmem:[#allocation11_spill] sm:$0xff]  ;;  %v5987_v21 = vld [vmem:[#allocation12_spill] sm:$0xff] }
 0x631   :  { %2073 = vmatmul.mubr.bf16.vlgmr.msra.gmra.mxu0 %v4694_v50  ;;  %2114 = vmatmul.mubr.bf16.vlgmr.msra.gmra.mxu1 %v4694_v50  ;;  %v5989_v50 = vld [vmem:[#allocation14_spill] sm:$0xff] }
 0x632   :  { %2181 = vmatpush1.bf16.msra.mxu0 %v5979_v31  ;;  %2222 = vmatpush1.bf16.msra.mxu1 %v5980_v2  ;;  %v5990_v31 = vld [vmem:[#allocation15_spill] sm:$0xff]  ;;  %v5991_v2 = vld [vmem:[#allocation16_spill] sm:$0xff] }
 0x633   :  { %2182 = vmatprep.subr.bf16.mxu0 %v5981_v57  ;;  %2223 = vmatprep.subr.bf16.mxu1 %v5982_v6  ;;  %v5992_v57 = vld [vmem:[#allocation17_spill] sm:$0xff]  ;;  %v5993_v6 = vld [vmem:[#allocation18_spill] sm:$0xff] }
 0x636   :  { %2183 = vmatpush1.bf16.msra.mxu0 %v5983_v29  ;;  %2224 = vmatpush1.bf16.msra.mxu1 %v5984_v32  ;;  %v5994_v29 = vld [vmem:[#allocation19_spill] sm:$0xff]  ;;  %v5995_v32 = vld [vmem:[#allocation20_spill] sm:$0xff] }
 0x637   :  { %2184 = vmatprep.subr.bf16.mxu0 %v5985_v19  ;;  %2225 = vmatprep.subr.bf16.mxu1 %v5986_v20  ;;  %v5996_v19 = vld [vmem:[#allocation21_spill] sm:$0xff]  ;;  %v5997_v20 = vld [vmem:[#allocation22_spill] sm:$0xff] }
 0x63a   :  { %2185 = vmatpush1.bf16.msra.mxu0 %v5987_v21  ;;  %2226 = vmatpush1.bf16.msra.mxu1 %v5988_v30  ;;  %v5998_v21 = vld [vmem:[#allocation23_spill] sm:$0xff]  ;;  %v5999_v30 = vld [vmem:[#allocation24_spill] sm:$0xff] }
 0x63b   :  { %2186 = vmatprep.subr.bf16.mxu0 %v5989_v50  ;;  %2227 = vmatprep.subr.bf16.mxu1 %v5990_v31  ;;  %v6000_v50 = vld [vmem:[#allocation25_spill] sm:$0xff]  ;;  %v6001_v31 = vld [vmem:[#allocation26_spill] sm:$0xff] }
 0x63e   :  { %2187 = vmatpush1.bf16.msra.mxu0 %v5991_v2  ;;  %2228 = vmatpush1.bf16.msra.mxu1 %v5992_v57  ;;  %v6002_v2 = vld [vmem:[#allocation27_spill] sm:$0xff]  ;;  %v6003_v57 = vld [vmem:[#allocation28_spill] sm:$0xff] }
 0x63f   :  { %2188 = vmatprep.subr.bf16.mxu0 %v5993_v6  ;;  %2229 = vmatprep.subr.bf16.mxu1 %v5994_v29  ;;  %v6004_v6 = vld [vmem:[#allocation29_spill] sm:$0xff]  ;;  %v6005_v29 = vld [vmem:[#allocation30_spill] sm:$0xff] }
 0x642   :  { %2189 = vmatpush1.bf16.msra.mxu0 %v5995_v32  ;;  %2230 = vmatpush1.bf16.msra.mxu1 %v5996_v19  ;;  %v6006_v32 = vld [vmem:[#allocation31_spill] sm:$0xff]  ;;  %v6007_v19 = vld [vmem:[#allocation32_spill] sm:$0xff] }
 0x643   :  { %2190 = vmatprep.subr.bf16.mxu0 %v5997_v20  ;;  %2231 = vmatprep.subr.bf16.mxu1 %v5998_v21  ;;  %v6008_v20 = vld [vmem:[#allocation33_spill] sm:$0xff]  ;;  %v6009_v21 = vld [vmem:[#allocation34_spill] sm:$0xff] }
 0x646   :  { %2191 = vmatpush1.bf16.msra.mxu0 %v5999_v30  ;;  %2232 = vmatpush1.bf16.msra.mxu1 %v6000_v50  ;;  %v6010_v30 = vld [vmem:[#allocation35_spill] sm:$0xff]  ;;  %v6011_v50 = vld [vmem:[#allocation36_spill] sm:$0xff] }
 0x647   :  { %2192 = vmatprep.subr.bf16.mxu0 %v6001_v31  ;;  %2233 = vmatprep.subr.bf16.mxu1 %v6002_v2  ;;  %v6012_v31 = vld [vmem:[#allocation37_spill] sm:$0xff]  ;;  %v6013_v2 = vld [vmem:[#allocation38_spill] sm:$0xff] }
 0x64a   :  { %2193 = vmatpush1.bf16.msra.mxu0 %v6003_v57  ;;  %2234 = vmatpush1.bf16.msra.mxu1 %v6004_v6  ;;  %v6014_v57 = vld [vmem:[#allocation39_spill] sm:$0xff]  ;;  %v6015_v6 = vld [vmem:[#allocation40_spill] sm:$0xff] }
 0x64b   :  { %2194 = vmatprep.subr.bf16.mxu0 %v6005_v29  ;;  %2235 = vmatprep.subr.bf16.mxu1 %v6006_v32  ;;  %v6016_v29 = vld [vmem:[#allocation41_spill] sm:$0xff]  ;;  %v6017_v32 = vld [vmem:[#allocation42_spill] sm:$0xff] }
 0x64e   :  { %2195 = vmatpush1.bf16.msra.mxu0 %v6007_v19  ;;  %2236 = vmatpush1.bf16.msra.mxu1 %v6008_v20  ;;  %v6018_v19 = vld [vmem:[#allocation43_spill] sm:$0xff]  ;;  %v6019_v20 = vld [vmem:[#allocation44_spill] sm:$0xff] }
 0x64f   :  { %2196 = vmatprep.subr.bf16.mxu0 %v6009_v21  ;;  %2237 = vmatprep.subr.bf16.mxu1 %v6010_v30  ;;  %v6020_v21 = vld [vmem:[#allocation45_spill] sm:$0xff]  ;;  %v6021_v30 = vld [vmem:[#allocation46_spill] sm:$0xff] }
 0x652   :  { %2197 = vmatpush2.bf16.msra.mxu0 %v6011_v50  ;;  %2238 = vmatpush2.bf16.msra.mxu1 %v6012_v31  ;;  %v6022_v50 = vld [vmem:[#allocation47_spill] sm:$0xff]  ;;  %v6023_v31 = vld [vmem:[#allocation48_spill] sm:$0xff] }
 0x653   :  { %2198 = vmatprep.subr.bf16.mxu0 %v6013_v2  ;;  %2239 = vmatprep.subr.bf16.mxu1 %v6014_v57  ;;  %v6024_v2 = vld [vmem:[#allocation49_spill] sm:$0xff]  ;;  %v6025_v57 = vld [vmem:[#allocation50_spill] sm:$0xff] }
 0x656   :  { %2199 = vmatpush2.bf16.msra.mxu0 %v6015_v6  ;;  %2240 = vmatpush2.bf16.msra.mxu1 %v6016_v29  ;;  %v6026_v6 = vld [vmem:[#allocation51_spill] sm:$0xff]  ;;  %v6027_v29 = vld [vmem:[#allocation52_spill] sm:$0xff] }
 0x657   :  { %2200 = vmatprep.subr.bf16.mxu0 %v6017_v32  ;;  %2241 = vmatprep.subr.bf16.mxu1 %v6018_v19  ;;  %v6028_v32 = vld [vmem:[#allocation53_spill] sm:$0xff]  ;;  %v6029_v19 = vld [vmem:[#allocation54_spill] sm:$0xff] }
 0x65a   :  { %2201 = vmatpush2.bf16.msra.mxu0 %v6019_v20  ;;  %2242 = vmatpush2.bf16.msra.mxu1 %v6020_v21  ;;  %v6030_v20 = vld [vmem:[#allocation55_spill] sm:$0xff]  ;;  %v6031_v21 = vld [vmem:[#allocation56_spill] sm:$0xff] }
 0x65b   :  { %2202 = vmatprep.subr.bf16.mxu0 %v6021_v30  ;;  %2243 = vmatprep.subr.bf16.mxu1 %v6022_v50  ;;  %v6032_v30 = vld [vmem:[#allocation57_spill] sm:$0xff]  ;;  %v6033_v50 = vld [vmem:[#allocation58_spill] sm:$0xff] }
 0x65e   :  { %2203 = vmatpush2.bf16.msra.mxu0 %v6023_v31  ;;  %2244 = vmatpush2.bf16.msra.mxu1 %v6024_v2  ;;  %v6034_v31 = vld [vmem:[#allocation59_spill] sm:$0xff]  ;;  %v6035_v2 = vld [vmem:[#allocation60_spill] sm:$0xff] }
 0x65f   :  { %2204 = vmatprep.subr.bf16.mxu0 %v6025_v57  ;;  %2245 = vmatprep.subr.bf16.mxu1 %v6026_v6  ;;  %v6036_v57 = vld [vmem:[#allocation61_spill] sm:$0xff]  ;;  %v6037_v6 = vld [vmem:[#allocation62_spill] sm:$0xff] }
 0x662   :  { %2205 = vmatpush2.bf16.msra.mxu0 %v6027_v29  ;;  %2246 = vmatpush2.bf16.msra.mxu1 %v6028_v32  ;;  %v6038_v29 = vld [vmem:[#allocation63_spill] sm:$0xff]  ;;  %v6039_v32 = vld [vmem:[#allocation64_spill] sm:$0xff] }
 0x663   :  { %2206 = vmatprep.subr.bf16.mxu0 %v6029_v19  ;;  %2247 = vmatprep.subr.bf16.mxu1 %v6030_v20  ;;  %v6040_v19 = vld [vmem:[#allocation65_spill] sm:$0xff]  ;;  %v6041_v20 = vld [vmem:[#allocation66_spill] sm:$0xff] }
 0x666   :  { %2207 = vmatpush2.bf16.msra.mxu0 %v6031_v21  ;;  %2248 = vmatpush2.bf16.msra.mxu1 %v6032_v30  ;;  %v6042_v21 = vld [vmem:[#allocation67_spill] sm:$0xff] }
 0x667   :  { %2208 = vmatprep.subr.bf16.mxu0 %v6033_v50  ;;  %2249 = vmatprep.subr.bf16.mxu1 %v6034_v31  ;;  %v6043_v30 = vld [vmem:[#allocation71_spill] sm:$0xff]  ;;  %v6044_v50 = vld [vmem:[#allocation148_spill] sm:$0xff]  ;;  %v6045_v31 = vld [vmem:[#allocation74_spill] sm:$0xff] }
 0x668   :  { %v295_v14 = vadd.f32 %v6044_v50, %v6043_v30 }
 0x66a   :  { %2209 = vmatpush2.bf16.msra.mxu0 %v6035_v2  ;;  %2250 = vmatpush2.bf16.msra.mxu1 %v6036_v57  ;;  %v368_v2 = vadd.f32 %v6046_v44, %v6045_v31 }
 0x66b   :  { %2210 = vmatprep.subr.bf16.mxu0 %v6037_v6  ;;  %2251 = vmatprep.subr.bf16.mxu1 %v6038_v29  ;;  %v6047_v6 = vld [vmem:[#allocation150_spill] sm:$0xff]  ;;  %v6048_v29 = vld [vmem:[#allocation149_spill] sm:$0xff] }
 0x66c   :  { %v297_v48 = vadd.f32 %v6047_v6, %v5644_v22 }
 0x66e   :  { %2211 = vmatpush2.bf16.msra.mxu0 %v6039_v32  ;;  %2252 = vmatpush2.bf16.msra.mxu1 %v6040_v19  ;;  %v370_v32 = vadd.f32 %v6048_v29, %v3700_v40 }
 0x66f   :  { %2262 = vmatprep.subr.bf16.mxu0 %v6041_v20  ;;  %2303 = vmatprep.subr.bf16.mxu1 %v6042_v21 }
 0x6b1   :  { %v1992_v61 = vpop.f32.mrf.mxu0  ;;  %v2033_v57 = vpop.f32.mrf.mxu1 }
 0x6b2   :  { %v2150_v52 = vadd.f32 %v1992_v61, %v295_v14  ;;  %v2152_v19 = vadd.f32 %v2033_v57, %v368_v2 }
 0x6b3   :  { %v1994_v5 = vpop.f32.mrf.mxu0  ;;  %v2035_v20 = vpop.f32.mrf.mxu1 }
 0x6b4   :  { %v2913_v27 = vmul.f32 -1.442695, %v2150_v52  ;;  %v2151_v21 = vadd.f32 %v1994_v5, %v297_v48  ;;  %v2153_v58 = vadd.f32 %v2035_v20, %v370_v32 }
 0x6b5   :  { %v1996_v56 = vpop.f32.mrf.mxu0  ;;  %v2037_v50 = vpop.f32.mrf.mxu1 }
 0x6b6   :  { %3087 = vpow2.f32 %v2913_v27  ;;  %v2914_v30 = vmul.f32 -1.442695, %v2151_v21 }
 0x6b7   :  { %v1997_v44 = vpop.f32.mrf.mxu0  ;;  %v2038_v31 = vpop.f32.mrf.mxu1 }
 0x6b8   :  { %3089 = vpow2.f32 %v2914_v30  ;;  %v2915_v44 = vmul.f32 -1.442695, %v2153_v58 }
 0x6b9   :  { %3091 = vtanh.f32 %v2152_v19 }
 0x6c3   :  { %v3088_v7 = vpop.eup %3087 }
 0x6c4   :  { %v2157_v11 = vadd.f32 1.0, %v3088_v7 }
 0x6c5   :  { %v3090_v6 = vpop.eup %3089 }
 0x6c6   :  { %3093 = vrcp.f32 %v2157_v11  ;;  %v2163_v29 = vadd.f32 1.0, %v3090_v6  ;;  %v3092_v61 = vpop.eup %3091 }
 0x6c8   :  { %3095 = vrcp.f32 %v2163_v29 }
 0x6d3   :  { %v3094_v2 = vpop.eup %3093 }
 0x6d4   :  { %v2174_v57 = vmul.f32 %v3094_v2, %v3092_v61 }
 0x6d5   :  { %v3096_v52 = vpop.eup %3095 }
 0x6d6   :  { %v2173_v5 = vmul.f32 %v3096_v52, %v4683_v33 }
 0x6d8   :  { %v4837_v56 = vadd.f32 %v2174_v57, %v2173_v5 }
 0x6f1   :  { %v2074_v27 = vpop.f32.mrf.mxu0  ;;  %v2115_v48 = vpop.f32.mrf.mxu1 }
 0x6f2   :  { %v2122_v31 = vadd.f32 %v2074_v27, %v4208_v34  ;;  %v2124_v61 = vadd.f32 %v2115_v48, %v4225_v62 }
 0x6f3   :  { %v2076_v32 = vpop.f32.mrf.mxu0  ;;  %v2117_v20 = vpop.f32.mrf.mxu1 }
 0x6f4   :  { %v2910_v7 = vmul.f32 -1.442695, %v2122_v31  ;;  %v2123_v19 = vadd.f32 %v2076_v32, %v4212_v54  ;;  %v2125_v33 = vadd.f32 %v2117_v20, %v4218_v15 }
 0x6f5   :  { %v2078_v11 = vpop.f32.mrf.mxu0  ;;  %v2119_v21 = vpop.f32.mrf.mxu1 }
 0x6f6   :  { %3097 = vpow2.f32 %v2910_v7  ;;  %v2911_v14 = vmul.f32 -1.442695, %v2123_v19  ;;  %v2912_v6 = vmul.f32 -1.442695, %v2125_v33 }
 0x6f7   :  { %v2079_v30 = vpop.f32.mrf.mxu0  ;;  %v2120_v50 = vpop.f32.mrf.mxu1 }
 0x6f8   :  { %3099 = vpow2.f32 %v2911_v14 }
 0x6f9   :  { %3101 = vpow2.f32 %v2915_v44 }
 0x6fa   :  { %3103 = vpow2.f32 %v2912_v6 }
 0x703   :  { %v3098_v29 = vpop.eup %3097 }
 0x704   :  { %v2129_v2 = vadd.f32 1.0, %v3098_v29 }
 0x705   :  { %v3100_v57 = vpop.eup %3099 }
 0x706   :  { %3105 = vrcp.f32 %v2129_v2  ;;  %v2135_v52 = vadd.f32 1.0, %v3100_v57  ;;  %v3102_v5 = vpop.eup %3101  ;;  %v6051_v2 = vld [vmem:[#allocation109_spill] sm:$0xff]  ;;  %v6052_v57 = vld [vmem:[#allocation110_spill] sm:$0xff] }
 0x707   :  { %3107 = vtanh.f32 %v2124_v61  ;;  %v3104_v27 = vpop.eup %3103  ;;  %v2170_v7 = vadd.f32 1.0, %v3102_v5  ;;  %v6050_v61 = vld [vmem:[#allocation108_spill] sm:$0xff] }
 0x708   :  { %3109 = vrcp.f32 %v2135_v52  ;;  %v2142_v20 = vadd.f32 1.0, %v3104_v27  ;;  %v6053_v52 = vld [vmem:[#allocation111_spill] sm:$0xff]  ;;  %v6054_v5 = vld [vmem:[#allocation112_spill] sm:$0xff]  ;;  %v6055_v27 = vld [vmem:[#allocation113_spill] sm:$0xff] }
 0x709   :  { %3111 = vtanh.f32 %v4837_v56 }
 0x70a   :  { %3113 = vrcp.f32 %v2170_v7  ;;  %v6058_v7 = vld [vmem:[#allocation116_spill] sm:$0xff] }
 0x70b   :  { %3115 = vrcp.f32 %v2142_v20  ;;  %v6060_v20 = vld [vmem:[#allocation118_spill] sm:$0xff] }
 0x713   :  { %v3106_v31 = vpop.eup %3105 }
 0x714   :  { %v3108_v32 = vpop.eup %3107 }
 0x715   :  { %v3110_v19 = vpop.eup %3109  ;;  %v2146_v58 = vmul.f32 %v3108_v32, %v3106_v31  ;;  %v6056_v31 = vld [vmem:[#allocation114_spill] sm:$0xff]  ;;  %v6057_v32 = vld [vmem:[#allocation115_spill] sm:$0xff] }
 0x716   :  { %v2145_v11 = vmul.f32 %v3110_v19, %v4691_v60  ;;  %v3112_v21 = vpop.eup %3111  ;;  %v6049_v60 = vld [vmem:[#allocation107_spill] sm:$0xff]  ;;  %v6059_v19 = vld [vmem:[#allocation117_spill] sm:$0xff] }
 0x717   :  { %v3114_v14 = vpop.eup %3113 }
 0x718   :  { %v4845_v48 = vadd.f32 %v2146_v58, %v2145_v11  ;;  %v3116_v30 = vpop.eup %3115  ;;  %v2177_v33 = vmul.f32 %v3114_v14, %v3112_v21  ;;  %v6061_v58 = vld [vmem:[#allocation119_spill] sm:$0xff]  ;;  %v6062_v11 = vld [vmem:[#allocation120_spill] sm:$0xff]  ;;  %v6063_v21 = vld [vmem:[#allocation121_spill] sm:$0xff] }
 0x719   :  { %v6064_v14 = vld [vmem:[#allocation122_spill] sm:$0xff] }
 0x71a   :  { %3117 = vtanh.f32 %v4845_v48  ;;  %v4848_v29 = vpack.c.bf16 %v2177_v33, %v2177_v33  ;;  %v6067_v33 = vld [vmem:[#allocation125_spill] sm:$0xff] }
 0x727   :  { %v3118_v50 = vpop.eup %3117 }
 0x728   :  { %v2149_v44 = vmul.f32 %v3118_v50, %v3116_v30  ;;  %v6065_v30 = vld [vmem:[#allocation123_spill] sm:$0xff]  ;;  %v6066_v50 = vld [vmem:[#allocation124_spill] sm:$0xff] }
 0x72a   :  { %v2179_v6 = vpack.c.bf16 %v2149_v44, %v2149_v44  ;;  %v6068_v44 = vld [vmem:[#allocation126_spill] sm:$0xff] }
 0x72c   :  { %2212 = vmatprep.mubr.bf16.mxu0 %v2179_v6  ;;  %2253 = vmatprep.mubr.bf16.mxu1 %v2179_v6 }
 0x72d   :  { %2213 = vmatmul.mubr.bf16.vlgmr.msra.gmra.mxu0 %v4848_v29  ;;  %2254 = vmatmul.mubr.bf16.vlgmr.msra.gmra.mxu1 %v4848_v29 }
 0x72e   :  { %2263 = vmatpush1.bf16.msra.mxu0 %v5654_v39  ;;  %2304 = vmatpush1.bf16.msra.mxu1 %v5655_v47 }
 0x72f   :  { %2294 = vmatprep.mubr.bf16.mxu0 %v2179_v6  ;;  %2335 = vmatprep.mubr.bf16.mxu1 %v2179_v6  ;;  %v6069_v6 = vld [vmem:[#allocation127_spill] sm:$0xff] }
 0x730   :  { %2264 = vmatprep.subr.bf16.mxu0 %v5656_v55  ;;  %2305 = vmatprep.subr.bf16.mxu1 %v5657_v63 }
 0x732   :  { %2265 = vmatpush1.bf16.msra.mxu0 %v5658_v13  ;;  %2306 = vmatpush1.bf16.msra.mxu1 %v5749_v1 }
 0x733   :  { %2266 = vmatprep.subr.bf16.mxu0 %v5750_v43  ;;  %2307 = vmatprep.subr.bf16.mxu1 %v5751_v45 }
 0x736   :  { %2267 = vmatpush1.bf16.msra.mxu0 %v5752_v59  ;;  %2308 = vmatpush1.bf16.msra.mxu1 %v5753_v37 }
 0x737   :  { %2268 = vmatprep.subr.bf16.mxu0 %v5754_v36  ;;  %2309 = vmatprep.subr.bf16.mxu1 %v5755_v35 }
 0x73a   :  { %2269 = vmatpush1.bf16.msra.mxu0 %v5756_v49  ;;  %2310 = vmatpush1.bf16.msra.mxu1 %v5757_v51 }
 0x73b   :  { %2270 = vmatprep.subr.bf16.mxu0 %v5758_v28  ;;  %2311 = vmatprep.subr.bf16.mxu1 %v5849_v41 }
 0x73e   :  { %2271 = vmatpush1.bf16.msra.mxu0 %v5850_v16  ;;  %2312 = vmatpush1.bf16.msra.mxu1 %v5851_v17 }
 0x73f   :  { %2272 = vmatprep.subr.bf16.mxu0 %v5852_v3  ;;  %2313 = vmatprep.subr.bf16.mxu1 %v5853_v23 }
 0x742   :  { %2273 = vmatpush1.bf16.msra.mxu0 %v5854_v10  ;;  %2314 = vmatpush1.bf16.msra.mxu1 %v5855_v26 }
 0x743   :  { %2274 = vmatprep.subr.bf16.mxu0 %v5856_v12  ;;  %2315 = vmatprep.subr.bf16.mxu1 %v5857_v0 }
 0x746   :  { %2275 = vmatpush1.bf16.msra.mxu0 %v5858_v9  ;;  %2316 = vmatpush1.bf16.msra.mxu1 %v5859_v25 }
 0x747   :  { %2276 = vmatprep.subr.bf16.mxu0 %v5860_v42  ;;  %2317 = vmatprep.subr.bf16.mxu1 %v5861_v8 }
 0x74a   :  { %2277 = vmatpush1.bf16.msra.mxu0 %v5862_v46  ;;  %2318 = vmatpush1.bf16.msra.mxu1 %v5863_v18 }
 0x74b   :  { %2278 = vmatprep.subr.bf16.mxu0 %v5864_v38  ;;  %2319 = vmatprep.subr.bf16.mxu1 %v5775_v4 }
 0x74e   :  { %2279 = vmatpush2.bf16.msra.mxu0 %v5776_v24  ;;  %2320 = vmatpush2.bf16.msra.mxu1 %v5777_v53 }
 0x74f   :  { %2280 = vmatprep.subr.bf16.mxu0 %v6049_v60  ;;  %2321 = vmatprep.subr.bf16.mxu1 %v6050_v61 }
 0x752   :  { %2281 = vmatpush2.bf16.msra.mxu0 %v6051_v2  ;;  %2322 = vmatpush2.bf16.msra.mxu1 %v6052_v57 }
 0x753   :  { %2282 = vmatprep.subr.bf16.mxu0 %v6053_v52  ;;  %2323 = vmatprep.subr.bf16.mxu1 %v6054_v5 }
 0x756   :  { %2283 = vmatpush2.bf16.msra.mxu0 %v6055_v27  ;;  %2324 = vmatpush2.bf16.msra.mxu1 %v6056_v31 }
 0x757   :  { %2284 = vmatprep.subr.bf16.mxu0 %v6057_v32  ;;  %2325 = vmatprep.subr.bf16.mxu1 %v6058_v7  ;;  %v6146_v7 = vld [vmem:[#allocation151_spill] sm:$0xff] }
 0x75a   :  { %2285 = vmatpush2.bf16.msra.mxu0 %v6059_v19  ;;  %2326 = vmatpush2.bf16.msra.mxu1 %v6060_v20  ;;  %v6070_v19 = vld [vmem:[#allocation128_spill] sm:$0xff]  ;;  %v6071_v20 = vld [vmem:[#allocation129_spill] sm:$0xff] }
 0x75b   :  { %2286 = vmatprep.subr.bf16.mxu0 %v6061_v58  ;;  %2327 = vmatprep.subr.bf16.mxu1 %v6062_v11  ;;  %v6072_v58 = vld [vmem:[#allocation130_spill] sm:$0xff]  ;;  %v6073_v11 = vld [vmem:[#allocation131_spill] sm:$0xff] }
 0x75e   :  { %2287 = vmatpush2.bf16.msra.mxu0 %v6063_v21  ;;  %2328 = vmatpush2.bf16.msra.mxu1 %v6064_v14  ;;  %v6074_v21 = vld [vmem:[#allocation132_spill] sm:$0xff]  ;;  %v6075_v14 = vld [vmem:[#allocation133_spill] sm:$0xff] }
 0x75f   :  { %2288 = vmatprep.subr.bf16.mxu0 %v6065_v30  ;;  %2329 = vmatprep.subr.bf16.mxu1 %v6066_v50  ;;  %v6076_v30 = vld [vmem:[#allocation134_spill] sm:$0xff] }
 0x760   :  { %v6077_v50 = vld [vmem:[#allocation2_spill] sm:$0xff] }
 0x762   :  { %2289 = vmatpush2.bf16.msra.mxu0 %v6067_v33  ;;  %2330 = vmatpush2.bf16.msra.mxu1 %v6068_v44  ;;  %v6078_v33 = vld [vmem:[#allocation3_spill] sm:$0xff] }
 0x763   :  { %2290 = vmatprep.subr.bf16.mxu0 %v6069_v6  ;;  %2331 = vmatprep.subr.bf16.mxu1 %v6070_v19  ;;  %v6079_v19 = vld [vmem:[#allocation4_spill] sm:$0xff]  ;;  %v6088_v6 = vld [vmem:[#allocation13_spill] sm:$0xff] }
 0x766   :  { %2291 = vmatpush2.bf16.msra.mxu0 %v6071_v20  ;;  %2332 = vmatpush2.bf16.msra.mxu1 %v6072_v58  ;;  %v6080_v20 = vld [vmem:[#allocation5_spill] sm:$0xff]  ;;  %v6081_v58 = vld [vmem:[#allocation6_spill] sm:$0xff] }
 0x767   :  { %2292 = vmatprep.subr.bf16.mxu0 %v6073_v11  ;;  %2333 = vmatprep.subr.bf16.mxu1 %v6074_v21  ;;  %v6082_v11 = vld [vmem:[#allocation7_spill] sm:$0xff]  ;;  %v6083_v21 = vld [vmem:[#allocation8_spill] sm:$0xff] }
 0x76a   :  { %2293 = vmatpush2.bf16.msra.mxu0 %v6075_v14  ;;  %2334 = vmatpush2.bf16.msra.mxu1 %v6076_v30  ;;  %v6084_v14 = vld [vmem:[#allocation9_spill] sm:$0xff]  ;;  %v6085_v30 = vld [vmem:[#allocation10_spill] sm:$0xff] }
 0x76b   :  { %2402 = vmatprep.subr.bf16.mxu0 %v6077_v50  ;;  %2443 = vmatprep.subr.bf16.mxu1 %v6078_v33  ;;  %v6086_v50 = vld [vmem:[#allocation11_spill] sm:$0xff]  ;;  %v6087_v33 = vld [vmem:[#allocation12_spill] sm:$0xff] }
 0x76d   :  { %2295 = vmatmul.mubr.bf16.vlgmr.msra.gmra.mxu0 %v4848_v29  ;;  %2336 = vmatmul.mubr.bf16.vlgmr.msra.gmra.mxu1 %v4848_v29  ;;  %v6089_v29 = vld [vmem:[#allocation14_spill] sm:$0xff] }
 0x76e   :  { %2403 = vmatpush1.bf16.msra.mxu0 %v6079_v19  ;;  %2444 = vmatpush1.bf16.msra.mxu1 %v6080_v20  ;;  %v6090_v19 = vld [vmem:[#allocation15_spill] sm:$0xff]  ;;  %v6091_v20 = vld [vmem:[#allocation16_spill] sm:$0xff] }
 0x76f   :  { %2404 = vmatprep.subr.bf16.mxu0 %v6081_v58  ;;  %2445 = vmatprep.subr.bf16.mxu1 %v6082_v11  ;;  %v6092_v58 = vld [vmem:[#allocation17_spill] sm:$0xff]  ;;  %v6093_v11 = vld [vmem:[#allocation18_spill] sm:$0xff] }
 0x772   :  { %2405 = vmatpush1.bf16.msra.mxu0 %v6083_v21  ;;  %2446 = vmatpush1.bf16.msra.mxu1 %v6084_v14  ;;  %v6094_v21 = vld [vmem:[#allocation19_spill] sm:$0xff]  ;;  %v6095_v14 = vld [vmem:[#allocation20_spill] sm:$0xff] }
 0x773   :  { %2406 = vmatprep.subr.bf16.mxu0 %v6085_v30  ;;  %2447 = vmatprep.subr.bf16.mxu1 %v6086_v50  ;;  %v6096_v30 = vld [vmem:[#allocation21_spill] sm:$0xff]  ;;  %v6097_v50 = vld [vmem:[#allocation22_spill] sm:$0xff] }
 0x776   :  { %2407 = vmatpush1.bf16.msra.mxu0 %v6087_v33  ;;  %2448 = vmatpush1.bf16.msra.mxu1 %v6088_v6  ;;  %v6098_v33 = vld [vmem:[#allocation23_spill] sm:$0xff]  ;;  %v6099_v6 = vld [vmem:[#allocation24_spill] sm:$0xff] }
 0x777   :  { %2408 = vmatprep.subr.bf16.mxu0 %v6089_v29  ;;  %2449 = vmatprep.subr.bf16.mxu1 %v6090_v19  ;;  %v6100_v29 = vld [vmem:[#allocation25_spill] sm:$0xff]  ;;  %v6101_v19 = vld [vmem:[#allocation26_spill] sm:$0xff] }
 0x77a   :  { %2409 = vmatpush1.bf16.msra.mxu0 %v6091_v20  ;;  %2450 = vmatpush1.bf16.msra.mxu1 %v6092_v58  ;;  %v6102_v20 = vld [vmem:[#allocation27_spill] sm:$0xff]  ;;  %v6103_v58 = vld [vmem:[#allocation28_spill] sm:$0xff] }
 0x77b   :  { %2410 = vmatprep.subr.bf16.mxu0 %v6093_v11  ;;  %2451 = vmatprep.subr.bf16.mxu1 %v6094_v21  ;;  %v6104_v11 = vld [vmem:[#allocation29_spill] sm:$0xff]  ;;  %v6105_v21 = vld [vmem:[#allocation30_spill] sm:$0xff] }
 0x77e   :  { %2411 = vmatpush1.bf16.msra.mxu0 %v6095_v14  ;;  %2452 = vmatpush1.bf16.msra.mxu1 %v6096_v30  ;;  %v6106_v14 = vld [vmem:[#allocation31_spill] sm:$0xff]  ;;  %v6107_v30 = vld [vmem:[#allocation32_spill] sm:$0xff] }
 0x77f   :  { %2412 = vmatprep.subr.bf16.mxu0 %v6097_v50  ;;  %2453 = vmatprep.subr.bf16.mxu1 %v6098_v33  ;;  %v6108_v50 = vld [vmem:[#allocation33_spill] sm:$0xff]  ;;  %v6109_v33 = vld [vmem:[#allocation34_spill] sm:$0xff] }
 0x782   :  { %2413 = vmatpush1.bf16.msra.mxu0 %v6099_v6  ;;  %2454 = vmatpush1.bf16.msra.mxu1 %v6100_v29  ;;  %v6110_v6 = vld [vmem:[#allocation35_spill] sm:$0xff]  ;;  %v6111_v29 = vld [vmem:[#allocation36_spill] sm:$0xff] }
 0x783   :  { %2414 = vmatprep.subr.bf16.mxu0 %v6101_v19  ;;  %2455 = vmatprep.subr.bf16.mxu1 %v6102_v20  ;;  %v6112_v19 = vld [vmem:[#allocation37_spill] sm:$0xff]  ;;  %v6113_v20 = vld [vmem:[#allocation38_spill] sm:$0xff] }
 0x786   :  { %2415 = vmatpush1.bf16.msra.mxu0 %v6103_v58  ;;  %2456 = vmatpush1.bf16.msra.mxu1 %v6104_v11  ;;  %v6114_v58 = vld [vmem:[#allocation39_spill] sm:$0xff]  ;;  %v6115_v11 = vld [vmem:[#allocation40_spill] sm:$0xff] }
 0x787   :  { %2416 = vmatprep.subr.bf16.mxu0 %v6105_v21  ;;  %2457 = vmatprep.subr.bf16.mxu1 %v6106_v14  ;;  %v6116_v21 = vld [vmem:[#allocation41_spill] sm:$0xff]  ;;  %v6117_v14 = vld [vmem:[#allocation42_spill] sm:$0xff] }
 0x78a   :  { %2417 = vmatpush1.bf16.msra.mxu0 %v6107_v30  ;;  %2458 = vmatpush1.bf16.msra.mxu1 %v6108_v50  ;;  %v6118_v30 = vld [vmem:[#allocation43_spill] sm:$0xff]  ;;  %v6119_v50 = vld [vmem:[#allocation44_spill] sm:$0xff] }
 0x78b   :  { %2418 = vmatprep.subr.bf16.mxu0 %v6109_v33  ;;  %2459 = vmatprep.subr.bf16.mxu1 %v6110_v6  ;;  %v6120_v33 = vld [vmem:[#allocation45_spill] sm:$0xff]  ;;  %v6121_v6 = vld [vmem:[#allocation46_spill] sm:$0xff] }
 0x78e   :  { %2419 = vmatpush2.bf16.msra.mxu0 %v6111_v29  ;;  %2460 = vmatpush2.bf16.msra.mxu1 %v6112_v19  ;;  %v6122_v29 = vld [vmem:[#allocation47_spill] sm:$0xff]  ;;  %v6123_v19 = vld [vmem:[#allocation48_spill] sm:$0xff] }
 0x78f   :  { %2420 = vmatprep.subr.bf16.mxu0 %v6113_v20  ;;  %2461 = vmatprep.subr.bf16.mxu1 %v6114_v58  ;;  %v6124_v20 = vld [vmem:[#allocation49_spill] sm:$0xff]  ;;  %v6125_v58 = vld [vmem:[#allocation50_spill] sm:$0xff] }
 0x792   :  { %2421 = vmatpush2.bf16.msra.mxu0 %v6115_v11  ;;  %2462 = vmatpush2.bf16.msra.mxu1 %v6116_v21  ;;  %v6126_v11 = vld [vmem:[#allocation51_spill] sm:$0xff]  ;;  %v6127_v21 = vld [vmem:[#allocation52_spill] sm:$0xff] }
 0x793   :  { %2422 = vmatprep.subr.bf16.mxu0 %v6117_v14  ;;  %2463 = vmatprep.subr.bf16.mxu1 %v6118_v30  ;;  %v6128_v14 = vld [vmem:[#allocation53_spill] sm:$0xff]  ;;  %v6129_v30 = vld [vmem:[#allocation54_spill] sm:$0xff] }
 0x796   :  { %2423 = vmatpush2.bf16.msra.mxu0 %v6119_v50  ;;  %2464 = vmatpush2.bf16.msra.mxu1 %v6120_v33  ;;  %v6130_v50 = vld [vmem:[#allocation55_spill] sm:$0xff]  ;;  %v6131_v33 = vld [vmem:[#allocation56_spill] sm:$0xff] }
 0x797   :  { %2424 = vmatprep.subr.bf16.mxu0 %v6121_v6  ;;  %2465 = vmatprep.subr.bf16.mxu1 %v6122_v29  ;;  %v6132_v6 = vld [vmem:[#allocation57_spill] sm:$0xff]  ;;  %v6133_v29 = vld [vmem:[#allocation58_spill] sm:$0xff] }
 0x79a   :  { %2425 = vmatpush2.bf16.msra.mxu0 %v6123_v19  ;;  %2466 = vmatpush2.bf16.msra.mxu1 %v6124_v20  ;;  %v6134_v19 = vld [vmem:[#allocation59_spill] sm:$0xff]  ;;  %v6135_v20 = vld [vmem:[#allocation60_spill] sm:$0xff] }
 0x79b   :  { %2426 = vmatprep.subr.bf16.mxu0 %v6125_v58  ;;  %2467 = vmatprep.subr.bf16.mxu1 %v6126_v11  ;;  %v6136_v58 = vld [vmem:[#allocation61_spill] sm:$0xff]  ;;  %v6137_v11 = vld [vmem:[#allocation62_spill] sm:$0xff] }
 0x79e   :  { %2427 = vmatpush2.bf16.msra.mxu0 %v6127_v21  ;;  %2468 = vmatpush2.bf16.msra.mxu1 %v6128_v14  ;;  %v6138_v21 = vld [vmem:[#allocation63_spill] sm:$0xff]  ;;  %v6139_v14 = vld [vmem:[#allocation64_spill] sm:$0xff] }
 0x79f   :  { %2428 = vmatprep.subr.bf16.mxu0 %v6129_v30  ;;  %2469 = vmatprep.subr.bf16.mxu1 %v6130_v50  ;;  %v6140_v30 = vld [vmem:[#allocation65_spill] sm:$0xff]  ;;  %v6141_v50 = vld [vmem:[#allocation66_spill] sm:$0xff] }
 0x7a2   :  { %2429 = vmatpush2.bf16.msra.mxu0 %v6131_v33  ;;  %2470 = vmatpush2.bf16.msra.mxu1 %v6132_v6  ;;  %v6142_v33 = vld [vmem:[#allocation67_spill] sm:$0xff] }
 0x7a3   :  { %2430 = vmatprep.subr.bf16.mxu0 %v6133_v29  ;;  %2471 = vmatprep.subr.bf16.mxu1 %v6134_v19  ;;  %v6143_v6 = vld [vmem:[#allocation71_spill] sm:$0xff]  ;;  %v6144_v29 = vld [vmem:[#allocation152_spill] sm:$0xff]  ;;  %v6145_v19 = vld [vmem:[#allocation74_spill] sm:$0xff] }
 0x7a4   :  { %v301_v44 = vadd.f32 %v6144_v29, %v6143_v6 }
 0x7a6   :  { %2431 = vmatpush2.bf16.msra.mxu0 %v6135_v20  ;;  %2472 = vmatpush2.bf16.msra.mxu1 %v6136_v58  ;;  %v374_v20 = vadd.f32 %v6146_v7, %v6145_v19 }
 0x7a7   :  { %2432 = vmatprep.subr.bf16.mxu0 %v6137_v11  ;;  %2473 = vmatprep.subr.bf16.mxu1 %v6138_v21  ;;  %v6147_v11 = vld [vmem:[#allocation154_spill] sm:$0xff]  ;;  %v6148_v21 = vld [vmem:[#allocation153_spill] sm:$0xff] }
 0x7a8   :  { %v303_v31 = vadd.f32 %v6147_v11, %v5644_v22  ;;  %v6179_v22 = vld [vmem:[#allocation66_spill] sm:$0xff] }
 0x7aa   :  { %2433 = vmatpush2.bf16.msra.mxu0 %v6139_v14  ;;  %2474 = vmatpush2.bf16.msra.mxu1 %v6140_v30  ;;  %v376_v14 = vadd.f32 %v6148_v21, %v3700_v40  ;;  %v6178_v40 = vld [vmem:[#allocation134_spill] sm:$0xff] }
 0x7ab   :  { %2484 = vmatprep.subr.bf16.mxu0 %v6141_v50  ;;  %2525 = vmatprep.subr.bf16.mxu1 %v6142_v33 }
 0x7ed   :  { %v2214_v32 = vpop.f32.mrf.mxu0  ;;  %v2255_v58 = vpop.f32.mrf.mxu1 }
 0x7ee   :  { %v2372_v27 = vadd.f32 %v2214_v32, %v301_v44  ;;  %v2374_v30 = vadd.f32 %v2255_v58, %v374_v20 }
 0x7ef   :  { %v2216_v5 = vpop.f32.mrf.mxu0  ;;  %v2257_v50 = vpop.f32.mrf.mxu1 }
 0x7f0   :  { %v2919_v52 = vmul.f32 -1.442695, %v2372_v27  ;;  %v2373_v33 = vadd.f32 %v2216_v5, %v303_v31  ;;  %v2375_v57 = vadd.f32 %v2257_v50, %v376_v14 }
 0x7f1   :  { %v2218_v2 = vpop.f32.mrf.mxu0  ;;  %v2259_v29 = vpop.f32.mrf.mxu1 }
 0x7f2   :  { %3119 = vpow2.f32 %v2919_v52  ;;  %v2920_v6 = vmul.f32 -1.442695, %v2373_v33 }
 0x7f3   :  { %v2219_v7 = vpop.f32.mrf.mxu0  ;;  %v2260_v19 = vpop.f32.mrf.mxu1 }
 0x7f4   :  { %3121 = vpow2.f32 %v2920_v6  ;;  %v2921_v7 = vmul.f32 -1.442695, %v2375_v57 }
 0x7f5   :  { %3123 = vtanh.f32 %v2374_v30 }
 0x7ff   :  { %v3120_v61 = vpop.eup %3119 }
 0x800   :  { %v2379_v60 = vadd.f32 1.0, %v3120_v61 }
 0x801   :  { %v3122_v11 = vpop.eup %3121 }
 0x802   :  { %3125 = vrcp.f32 %v2379_v60  ;;  %v2385_v21 = vadd.f32 1.0, %v3122_v11  ;;  %v3124_v32 = vpop.eup %3123 }
 0x804   :  { %3127 = vrcp.f32 %v2385_v21 }
 0x80f   :  { %v3126_v44 = vpop.eup %3125 }
 0x810   :  { %v2396_v20 = vmul.f32 %v3126_v44, %v3124_v32 }
 0x811   :  { %v3128_v27 = vpop.eup %3127 }
 0x812   :  { %v2395_v5 = vmul.f32 %v3128_v27, %v4837_v56 }
 0x814   :  { %v4991_v2 = vadd.f32 %v2396_v20, %v2395_v5 }
 0x816   :  { %6149 = vst [vmem:[#allocation68_spill] sm:$0xff] %v4991_v2 }
 0x82d   :  { %v2296_v52 = vpop.f32.mrf.mxu0  ;;  %v2337_v31 = vpop.f32.mrf.mxu1 }
 0x82e   :  { %v2344_v50 = vadd.f32 %v2296_v52, %v4208_v34  ;;  %v2346_v32 = vadd.f32 %v2337_v31, %v4225_v62  ;;  %v6173_v62 = vld [vmem:[#allocation129_spill] sm:$0xff]  ;;  %v6176_v34 = vld [vmem:[#allocation132_spill] sm:$0xff] }
 0x82f   :  { %v2298_v33 = vpop.f32.mrf.mxu0  ;;  %v2339_v6 = vpop.f32.mrf.mxu1 }
 0x830   :  { %v2916_v61 = vmul.f32 -1.442695, %v2344_v50  ;;  %v2345_v19 = vadd.f32 %v2298_v33, %v4212_v54  ;;  %v2347_v56 = vadd.f32 %v2339_v6, %v4218_v15  ;;  %v6174_v15 = vld [vmem:[#allocation130_spill] sm:$0xff]  ;;  %v6175_v54 = vld [vmem:[#allocation131_spill] sm:$0xff] }
 0x831   :  { %v2300_v60 = vpop.f32.mrf.mxu0  ;;  %v2341_v58 = vpop.f32.mrf.mxu1 }
 0x832   :  { %3129 = vpow2.f32 %v2916_v61  ;;  %v2917_v14 = vmul.f32 -1.442695, %v2345_v19  ;;  %v2918_v11 = vmul.f32 -1.442695, %v2347_v56 }
 0x833   :  { %v2301_v30 = vpop.f32.mrf.mxu0  ;;  %v2342_v29 = vpop.f32.mrf.mxu1 }
 0x834   :  { %3131 = vpow2.f32 %v2917_v14 }
 0x835   :  { %3133 = vpow2.f32 %v2921_v7 }
 0x836   :  { %3135 = vpow2.f32 %v2918_v11 }
 0x83f   :  { %v3130_v21 = vpop.eup %3129 }
 0x840   :  { %v2351_v44 = vadd.f32 1.0, %v3130_v21 }
 0x841   :  { %v3132_v20 = vpop.eup %3131 }
 0x842   :  { %3137 = vrcp.f32 %v2351_v44  ;;  %v2357_v27 = vadd.f32 1.0, %v3132_v20  ;;  %v3134_v5 = vpop.eup %3133  ;;  %v6153_v44 = vld [vmem:[#allocation109_spill] sm:$0xff]  ;;  %v6154_v20 = vld [vmem:[#allocation110_spill] sm:$0xff] }
 0x843   :  { %3139 = vtanh.f32 %v2346_v32  ;;  %v3136_v52 = vpop.eup %3135  ;;  %v2392_v61 = vadd.f32 1.0, %v3134_v5  ;;  %v6152_v32 = vld [vmem:[#allocation108_spill] sm:$0xff] }
 0x844   :  { %3141 = vrcp.f32 %v2357_v27  ;;  %v2364_v6 = vadd.f32 1.0, %v3136_v52  ;;  %v6155_v27 = vld [vmem:[#allocation111_spill] sm:$0xff]  ;;  %v6156_v5 = vld [vmem:[#allocation112_spill] sm:$0xff]  ;;  %v6157_v52 = vld [vmem:[#allocation113_spill] sm:$0xff] }
 0x845   :  { %3143 = vtanh.f32 %v4991_v2  ;;  %v6177_v2 = vld [vmem:[#allocation133_spill] sm:$0xff] }
 0x846   :  { %3145 = vrcp.f32 %v2392_v61  ;;  %v6160_v61 = vld [vmem:[#allocation116_spill] sm:$0xff] }
 0x847   :  { %3147 = vrcp.f32 %v2364_v6  ;;  %v6162_v6 = vld [vmem:[#allocation118_spill] sm:$0xff] }
 0x84f   :  { %v3138_v50 = vpop.eup %3137 }
 0x850   :  { %v3140_v33 = vpop.eup %3139 }
 0x851   :  { %v3142_v19 = vpop.eup %3141  ;;  %v2368_v57 = vmul.f32 %v3140_v33, %v3138_v50  ;;  %v6158_v50 = vld [vmem:[#allocation114_spill] sm:$0xff]  ;;  %v6159_v33 = vld [vmem:[#allocation115_spill] sm:$0xff] }
 0x852   :  { %v2367_v60 = vmul.f32 %v3142_v19, %v4845_v48  ;;  %v3144_v58 = vpop.eup %3143  ;;  %v6151_v48 = vld [vmem:[#allocation107_spill] sm:$0xff]  ;;  %v6161_v19 = vld [vmem:[#allocation117_spill] sm:$0xff] }
 0x853   :  { %v3146_v14 = vpop.eup %3145 }
 0x854   :  { %v4999_v31 = vadd.f32 %v2368_v57, %v2367_v60  ;;  %v3148_v30 = vpop.eup %3147  ;;  %v2399_v56 = vmul.f32 %v3146_v14, %v3144_v58  ;;  %v6163_v57 = vld [vmem:[#allocation119_spill] sm:$0xff]  ;;  %v6164_v60 = vld [vmem:[#allocation120_spill] sm:$0xff]  ;;  %v6165_v58 = vld [vmem:[#allocation121_spill] sm:$0xff] }
 0x855   :  { %v6166_v14 = vld [vmem:[#allocation122_spill] sm:$0xff] }
 0x856   :  { %6150 = vst [vmem:[#allocation69_spill] sm:$0xff] %v4999_v31  ;;  %3149 = vtanh.f32 %v4999_v31  ;;  %v5002_v21 = vpack.c.bf16 %v2399_v56, %v2399_v56  ;;  %v6169_v56 = vld [vmem:[#allocation125_spill] sm:$0xff]  ;;  %v6172_v31 = vld [vmem:[#allocation128_spill] sm:$0xff] }
 0x863   :  { %v3150_v29 = vpop.eup %3149 }
 0x864   :  { %v2371_v7 = vmul.f32 %v3150_v29, %v3148_v30  ;;  %v6167_v30 = vld [vmem:[#allocation123_spill] sm:$0xff]  ;;  %v6168_v29 = vld [vmem:[#allocation124_spill] sm:$0xff] }
 0x866   :  { %v2401_v11 = vpack.c.bf16 %v2371_v7, %v2371_v7  ;;  %v6170_v7 = vld [vmem:[#allocation126_spill] sm:$0xff] }
 0x868   :  { %2434 = vmatprep.mubr.bf16.mxu0 %v2401_v11  ;;  %2475 = vmatprep.mubr.bf16.mxu1 %v2401_v11 }
 0x869   :  { %2435 = vmatmul.mubr.bf16.vlgmr.msra.gmra.mxu0 %v5002_v21  ;;  %2476 = vmatmul.mubr.bf16.vlgmr.msra.gmra.mxu1 %v5002_v21 }
 0x86a   :  { %2485 = vmatpush1.bf16.msra.mxu0 %v5654_v39  ;;  %2526 = vmatpush1.bf16.msra.mxu1 %v5655_v47 }
 0x86b   :  { %2516 = vmatprep.mubr.bf16.mxu0 %v2401_v11  ;;  %2557 = vmatprep.mubr.bf16.mxu1 %v2401_v11  ;;  %v6171_v11 = vld [vmem:[#allocation127_spill] sm:$0xff] }
 0x86c   :  { %2486 = vmatprep.subr.bf16.mxu0 %v5656_v55  ;;  %2527 = vmatprep.subr.bf16.mxu1 %v5657_v63 }
 0x86e   :  { %2487 = vmatpush1.bf16.msra.mxu0 %v5658_v13  ;;  %2528 = vmatpush1.bf16.msra.mxu1 %v5749_v1 }
 0x86f   :  { %2488 = vmatprep.subr.bf16.mxu0 %v5750_v43  ;;  %2529 = vmatprep.subr.bf16.mxu1 %v5751_v45 }
 0x872   :  { %2489 = vmatpush1.bf16.msra.mxu0 %v5752_v59  ;;  %2530 = vmatpush1.bf16.msra.mxu1 %v5753_v37 }
 0x873   :  { %2490 = vmatprep.subr.bf16.mxu0 %v5754_v36  ;;  %2531 = vmatprep.subr.bf16.mxu1 %v5755_v35 }
 0x876   :  { %2491 = vmatpush1.bf16.msra.mxu0 %v5756_v49  ;;  %2532 = vmatpush1.bf16.msra.mxu1 %v5757_v51 }
 0x877   :  { %2492 = vmatprep.subr.bf16.mxu0 %v5758_v28  ;;  %2533 = vmatprep.subr.bf16.mxu1 %v5849_v41 }
 0x87a   :  { %2493 = vmatpush1.bf16.msra.mxu0 %v5850_v16  ;;  %2534 = vmatpush1.bf16.msra.mxu1 %v5851_v17 }
 0x87b   :  { %2494 = vmatprep.subr.bf16.mxu0 %v5852_v3  ;;  %2535 = vmatprep.subr.bf16.mxu1 %v5853_v23 }
 0x87e   :  { %2495 = vmatpush1.bf16.msra.mxu0 %v5854_v10  ;;  %2536 = vmatpush1.bf16.msra.mxu1 %v5855_v26 }
 0x87f   :  { %2496 = vmatprep.subr.bf16.mxu0 %v5856_v12  ;;  %2537 = vmatprep.subr.bf16.mxu1 %v5857_v0 }
 0x882   :  { %2497 = vmatpush1.bf16.msra.mxu0 %v5858_v9  ;;  %2538 = vmatpush1.bf16.msra.mxu1 %v5859_v25 }
 0x883   :  { %2498 = vmatprep.subr.bf16.mxu0 %v5860_v42  ;;  %2539 = vmatprep.subr.bf16.mxu1 %v5861_v8 }
 0x886   :  { %2499 = vmatpush1.bf16.msra.mxu0 %v5862_v46  ;;  %2540 = vmatpush1.bf16.msra.mxu1 %v5863_v18 }
 0x887   :  { %2500 = vmatprep.subr.bf16.mxu0 %v5864_v38  ;;  %2541 = vmatprep.subr.bf16.mxu1 %v5775_v4 }
 0x88a   :  { %2501 = vmatpush2.bf16.msra.mxu0 %v5776_v24  ;;  %2542 = vmatpush2.bf16.msra.mxu1 %v5777_v53 }
 0x88b   :  { %2502 = vmatprep.subr.bf16.mxu0 %v6151_v48  ;;  %2543 = vmatprep.subr.bf16.mxu1 %v6152_v32 }
 0x88e   :  { %2503 = vmatpush2.bf16.msra.mxu0 %v6153_v44  ;;  %2544 = vmatpush2.bf16.msra.mxu1 %v6154_v20 }
 0x88f   :  { %2504 = vmatprep.subr.bf16.mxu0 %v6155_v27  ;;  %2545 = vmatprep.subr.bf16.mxu1 %v6156_v5 }
 0x892   :  { %2505 = vmatpush2.bf16.msra.mxu0 %v6157_v52  ;;  %2546 = vmatpush2.bf16.msra.mxu1 %v6158_v50 }
 0x893   :  { %2506 = vmatprep.subr.bf16.mxu0 %v6159_v33  ;;  %2547 = vmatprep.subr.bf16.mxu1 %v6160_v61 }
 0x896   :  { %2507 = vmatpush2.bf16.msra.mxu0 %v6161_v19  ;;  %2548 = vmatpush2.bf16.msra.mxu1 %v6162_v6 }
 0x897   :  { %2508 = vmatprep.subr.bf16.mxu0 %v6163_v57  ;;  %2549 = vmatprep.subr.bf16.mxu1 %v6164_v60 }
 0x89a   :  { %2509 = vmatpush2.bf16.msra.mxu0 %v6165_v58  ;;  %2550 = vmatpush2.bf16.msra.mxu1 %v6166_v14 }
 0x89b   :  { %2510 = vmatprep.subr.bf16.mxu0 %v6167_v30  ;;  %2551 = vmatprep.subr.bf16.mxu1 %v6168_v29 }
 0x89e   :  { %2511 = vmatpush2.bf16.msra.mxu0 %v6169_v56  ;;  %2552 = vmatpush2.bf16.msra.mxu1 %v6170_v7  ;;  %v6180_v56 = vld [vmem:[#allocation67_spill] sm:$0xff] }
 0x89f   :  { %2512 = vmatprep.subr.bf16.mxu0 %v6171_v11  ;;  %2553 = vmatprep.subr.bf16.mxu1 %v6172_v31 }
 0x8a2   :  { %2513 = vmatpush2.bf16.msra.mxu0 %v6173_v62  ;;  %2554 = vmatpush2.bf16.msra.mxu1 %v6174_v15 }
 0x8a3   :  { %2514 = vmatprep.subr.bf16.mxu0 %v6175_v54  ;;  %2555 = vmatprep.subr.bf16.mxu1 %v6176_v34 }
 0x8a6   :  { %2515 = vmatpush2.bf16.msra.mxu0 %v6177_v2  ;;  %2556 = vmatpush2.bf16.msra.mxu1 %v6178_v40 }
 0x8a7   :  { %2624 = vmatprep.subr.bf16.mxu0 %v6179_v22  ;;  %2665 = vmatprep.subr.bf16.mxu1 %v6180_v56  ;;  %v6181_v22 = vld [vmem:[#allocation125_spill] sm:$0xff] }
 0x8a9   :  { %2517 = vmatmul.mubr.bf16.vlgmr.msra.gmra.mxu0 %v5002_v21  ;;  %2558 = vmatmul.mubr.bf16.vlgmr.msra.gmra.mxu1 %v5002_v21 }
 0x8aa   :  { %2625 = vmatpush1.bf16.msra.mxu0 %v5654_v39  ;;  %2666 = vmatpush1.bf16.msra.mxu1 %v5655_v47  ;;  %v6182_v39 = vld [vmem:[#allocation71_spill] sm:$0xff]  ;;  %v6183_v47 = vld [vmem:[#allocation156_spill] sm:$0xff] }
 0x8ab   :  { %2626 = vmatprep.subr.bf16.mxu0 %v5656_v55  ;;  %2667 = vmatprep.subr.bf16.mxu1 %v5657_v63  ;;  %v305_v55 = vadd.f32 %v6183_v47, %v6182_v39  ;;  %v6184_v63 = vld [vmem:[#allocation74_spill] sm:$0xff] }
 0x8ae   :  { %2627 = vmatpush1.bf16.msra.mxu0 %v5658_v13  ;;  %2668 = vmatpush1.bf16.msra.mxu1 %v5749_v1  ;;  %v6185_v13 = vld [vmem:[#allocation155_spill] sm:$0xff] }
 0x8af   :  { %2628 = vmatprep.subr.bf16.mxu0 %v5750_v43  ;;  %2669 = vmatprep.subr.bf16.mxu1 %v5751_v45  ;;  %v378_v1 = vadd.f32 %v6185_v13, %v6184_v63 }
 0x8b2   :  { %2629 = vmatpush1.bf16.msra.mxu0 %v5752_v59  ;;  %2670 = vmatpush1.bf16.msra.mxu1 %v5753_v37  ;;  %v6186_v59 = vld [vmem:[#allocation72_spill] sm:$0xff] }
 0x8b3   :  { %2630 = vmatprep.subr.bf16.mxu0 %v5754_v36  ;;  %2671 = vmatprep.subr.bf16.mxu1 %v5755_v35 }
 0x8b6   :  { %2631 = vmatpush1.bf16.msra.mxu0 %v5756_v49  ;;  %2672 = vmatpush1.bf16.msra.mxu1 %v5757_v51 }
 0x8b7   :  { %2632 = vmatprep.subr.bf16.mxu0 %v5758_v28  ;;  %2673 = vmatprep.subr.bf16.mxu1 %v5849_v41  ;;  %v6189_v41 = vld [vmem:[#allocation157_spill] sm:$0xff] }
 0x8ba   :  { %2633 = vmatpush1.bf16.msra.mxu0 %v5850_v16  ;;  %2674 = vmatpush1.bf16.msra.mxu1 %v5851_v17 }
 0x8bb   :  { %2634 = vmatprep.subr.bf16.mxu0 %v5852_v3  ;;  %2675 = vmatprep.subr.bf16.mxu1 %v5853_v23 }
 0x8be   :  { %2635 = vmatpush1.bf16.msra.mxu0 %v5854_v10  ;;  %2676 = vmatpush1.bf16.msra.mxu1 %v5855_v26 }
 0x8bf   :  { %2636 = vmatprep.subr.bf16.mxu0 %v5856_v12  ;;  %2677 = vmatprep.subr.bf16.mxu1 %v5857_v0 }
 0x8c2   :  { %2637 = vmatpush1.bf16.msra.mxu0 %v5858_v9  ;;  %2678 = vmatpush1.bf16.msra.mxu1 %v5859_v25 }
 0x8c3   :  { %2638 = vmatprep.subr.bf16.mxu0 %v5860_v42  ;;  %2679 = vmatprep.subr.bf16.mxu1 %v5861_v8 }
 0x8c6   :  { %2639 = vmatpush1.bf16.msra.mxu0 %v5862_v46  ;;  %2680 = vmatpush1.bf16.msra.mxu1 %v5863_v18  ;;  %v6190_v18 = vld [vmem:[#allocation68_spill] sm:$0xff] }
 0x8c7   :  { %2640 = vmatprep.subr.bf16.mxu0 %v5864_v38  ;;  %2681 = vmatprep.subr.bf16.mxu1 %v5775_v4 }
 0x8ca   :  { %2641 = vmatpush2.bf16.msra.mxu0 %v5776_v24  ;;  %2682 = vmatpush2.bf16.msra.mxu1 %v5777_v53  ;;  %v6188_v53 = vld [vmem:[#allocation73_spill] sm:$0xff] }
 0x8cb   :  { %2642 = vmatprep.subr.bf16.mxu0 %v6151_v48  ;;  %2683 = vmatprep.subr.bf16.mxu1 %v6152_v32  ;;  %v380_v16 = vadd.f32 %v6189_v41, %v6188_v53 }
 0x8ce   :  { %2643 = vmatpush2.bf16.msra.mxu0 %v6153_v44  ;;  %2684 = vmatpush2.bf16.msra.mxu1 %v6154_v20  ;;  %v6191_v20 = vld [vmem:[#allocation70_spill] sm:$0xff] }
 0x8cf   :  { %2644 = vmatprep.subr.bf16.mxu0 %v6155_v27  ;;  %2685 = vmatprep.subr.bf16.mxu1 %v6156_v5 }
 0x8d2   :  { %2645 = vmatpush2.bf16.msra.mxu0 %v6157_v52  ;;  %2686 = vmatpush2.bf16.msra.mxu1 %v6158_v50 }
 0x8d3   :  { %2646 = vmatprep.subr.bf16.mxu0 %v6159_v33  ;;  %2687 = vmatprep.subr.bf16.mxu1 %v6160_v61  ;;  %v6192_v33 = vld [vmem:[#allocation159_spill] sm:$0xff] }
 0x8d6   :  { %2647 = vmatpush2.bf16.msra.mxu0 %v6161_v19  ;;  %2688 = vmatpush2.bf16.msra.mxu1 %v6162_v6 }
 0x8d7   :  { %2648 = vmatprep.subr.bf16.mxu0 %v6163_v57  ;;  %2689 = vmatprep.subr.bf16.mxu1 %v6164_v60 }
 0x8da   :  { %2649 = vmatpush2.bf16.msra.mxu0 %v6165_v58  ;;  %2690 = vmatpush2.bf16.msra.mxu1 %v6166_v14  ;;  %v6193_v14 = vld [vmem:[#allocation160_spill] sm:$0xff] }
 0x8db   :  { %2650 = vmatprep.subr.bf16.mxu0 %v6167_v30  ;;  %2691 = vmatprep.subr.bf16.mxu1 %v6168_v29 }
 0x8de   :  { %2651 = vmatpush2.bf16.msra.mxu0 %v6181_v22  ;;  %2692 = vmatpush2.bf16.msra.mxu1 %v6170_v7  ;;  %v6194_v7 = vld [vmem:[#allocation161_spill] sm:$0xff] }
 0x8df   :  { %2652 = vmatprep.subr.bf16.mxu0 %v6171_v11  ;;  %2693 = vmatprep.subr.bf16.mxu1 %v6172_v31 }
 0x8e2   :  { %2653 = vmatpush2.bf16.msra.mxu0 %v6173_v62  ;;  %2694 = vmatpush2.bf16.msra.mxu1 %v6174_v15  ;;  %v6187_v62 = vld [vmem:[#allocation158_spill] sm:$0xff] }
 0x8e3   :  { %2654 = vmatprep.subr.bf16.mxu0 %v6175_v54  ;;  %2695 = vmatprep.subr.bf16.mxu1 %v6176_v34  ;;  %v307_v37 = vadd.f32 %v6187_v62, %v6186_v59  ;;  %v6195_v59 = vld [vmem:[#allocation69_spill] sm:$0xff] }
 0x8e6   :  { %2655 = vmatpush2.bf16.msra.mxu0 %v6177_v2  ;;  %2696 = vmatpush2.bf16.msra.mxu1 %v6178_v40 }
 0x929   :  { %v2436_v43 = vpop.f32.mrf.mxu0  ;;  %v2477_v45 = vpop.f32.mrf.mxu1 }
 0x92a   :  { %v2594_v15 = vadd.f32 %v2436_v43, %v305_v55  ;;  %v2596_v36 = vadd.f32 %v2477_v45, %v378_v1 }
 0x92b   :  { %v2438_v54 = vpop.f32.mrf.mxu0  ;;  %v2479_v35 = vpop.f32.mrf.mxu1 }
 0x92c   :  { %v2925_v34 = vmul.f32 -1.442695, %v2594_v15  ;;  %v2595_v49 = vadd.f32 %v2438_v54, %v307_v37  ;;  %v2597_v17 = vadd.f32 %v2479_v35, %v380_v16 }
 0x92d   :  { %v2440_v51 = vpop.f32.mrf.mxu0  ;;  %v2481_v28 = vpop.f32.mrf.mxu1 }
 0x92e   :  { %3151 = vpow2.f32 %v2925_v34  ;;  %v2926_v40 = vmul.f32 -1.442695, %v2595_v49  ;;  %v2927_v3 = vmul.f32 -1.442695, %v2597_v17 }
 0x92f   :  { %v2441_v4 = vpop.f32.mrf.mxu0  ;;  %v2482_v24 = vpop.f32.mrf.mxu1 }
 0x930   :  { %3153 = vpow2.f32 %v2926_v40 }
 0x931   :  { %3155 = vtanh.f32 %v2596_v36 }
 0x932   :  { %3157 = vpow2.f32 %v2927_v3 }
 0x93b   :  { %v3152_v23 = vpop.eup %3151 }
 0x93c   :  { %v2601_v10 = vadd.f32 1.0, %v3152_v23 }
 0x93d   :  { %v3154_v26 = vpop.eup %3153 }
 0x93e   :  { %3159 = vrcp.f32 %v2601_v10  ;;  %v2607_v12 = vadd.f32 1.0, %v3154_v26  ;;  %v3156_v0 = vpop.eup %3155 }
 0x93f   :  { %v3158_v9 = vpop.eup %3157 }
 0x940   :  { %3161 = vrcp.f32 %v2607_v12  ;;  %v2614_v46 = vadd.f32 1.0, %v3158_v9 }
 0x942   :  { %3163 = vrcp.f32 %v2614_v46 }
 0x94b   :  { %v3160_v25 = vpop.eup %3159 }
 0x94c   :  { %v2618_v42 = vmul.f32 %v3160_v25, %v3156_v0 }
 0x94d   :  { %v3162_v8 = vpop.eup %3161 }
 0x94e   :  { %v2617_v38 = vmul.f32 %v3162_v8, %v6190_v18 }
 0x94f   :  { %v3164_v31 = vpop.eup %3163 }
 0x950   :  { %v2619_v2 = vadd.f32 %v2618_v42, %v2617_v38 }
 0x952   :  { %3165 = vtanh.f32 %v2619_v2 }
 0x95f   :  { %v3166_v21 = vpop.eup %3165 }
 0x960   :  { %v2621_v48 = vmul.f32 %v3166_v21, %v3164_v31 }
 0x962   :  { %v2622_v34 = vpack.c.bf16 %v2621_v48, %v2621_v48 }
 0x969   :  { %v2518_v32 = vpop.f32.mrf.mxu0  ;;  %v2559_v44 = vpop.f32.mrf.mxu1 }
 0x96a   :  { %v2566_v27 = vadd.f32 %v2518_v32, %v6191_v20  ;;  %v2568_v11 = vadd.f32 %v2559_v44, %v6194_v7 }
 0x96b   :  { %v2520_v5 = vpop.f32.mrf.mxu0  ;;  %v2561_v52 = vpop.f32.mrf.mxu1 }
 0x96c   :  { %v2922_v50 = vmul.f32 -1.442695, %v2566_v27  ;;  %v2567_v61 = vadd.f32 %v2520_v5, %v6192_v33  ;;  %v2569_v30 = vadd.f32 %v2561_v52, %v6193_v14 }
 0x96d   :  { %v2522_v19 = vpop.f32.mrf.mxu0  ;;  %v2563_v6 = vpop.f32.mrf.mxu1 }
 0x96e   :  { %3167 = vpow2.f32 %v2922_v50  ;;  %v2923_v57 = vmul.f32 -1.442695, %v2567_v61  ;;  %v2924_v29 = vmul.f32 -1.442695, %v2569_v30 }
 0x96f   :  { %v2523_v60 = vpop.f32.mrf.mxu0  ;;  %v2564_v58 = vpop.f32.mrf.mxu1 }
 0x970   :  { %3169 = vpow2.f32 %v2923_v57 }
 0x971   :  { %3171 = vpow2.f32 %v2924_v29 }
 0x97b   :  { %v3168_v56 = vpop.eup %3167 }
 0x97c   :  { %v2573_v22 = vadd.f32 1.0, %v3168_v56 }
 0x97d   :  { %v3170_v39 = vpop.eup %3169 }
 0x97e   :  { %3173 = vrcp.f32 %v2573_v22  ;;  %v2579_v47 = vadd.f32 1.0, %v3170_v39  ;;  %v3172_v55 = vpop.eup %3171 }
 0x97f   :  { %3175 = vtanh.f32 %v2568_v11  ;;  %v2586_v43 = vadd.f32 1.0, %v3172_v55 }
 0x980   :  { %3177 = vrcp.f32 %v2579_v47 }
 0x981   :  { %3179 = vrcp.f32 %v2586_v43 }
 0x98b   :  { %v3174_v63 = vpop.eup %3173 }
 0x98c   :  { %v3176_v13 = vpop.eup %3175 }
 0x98d   :  { %v3178_v1 = vpop.eup %3177  ;;  %v2590_v45 = vmul.f32 %v3176_v13, %v3174_v63 }
 0x98e   :  { %v2589_v62 = vmul.f32 %v3178_v1, %v6195_v59  ;;  %v3180_v15 = vpop.eup %3179 }
 0x990   :  { %v2591_v37 = vadd.f32 %v2590_v45, %v2589_v62 }
 0x992   :  { %3181 = vtanh.f32 %v2591_v37 }
 0x99f   :  { %v3182_v36 = vpop.eup %3181 }
 0x9a0   :  { %v2593_v54 = vmul.f32 %v3182_v36, %v3180_v15 }
 0x9a2   :  { %v2623_v35 = vpack.c.bf16 %v2593_v54, %v2593_v54 }
 0x9a4   :  { %2656 = vmatprep.mubr.bf16.mxu0 %v2623_v35  ;;  %2697 = vmatprep.mubr.bf16.mxu1 %v2623_v35 }
 0x9a5   :  { %2657 = vmatmul.mubr.bf16.vlgmr.msra.gmra.mxu0 %v2622_v34  ;;  %2698 = vmatmul.mubr.bf16.vlgmr.msra.gmra.mxu1 %v2622_v34 }
 0xa65   :  { %v2658_v49 = vpop.f32.mrf.mxu0  ;;  %v2699_v51 = vpop.f32.mrf.mxu1 }
 0xa66   :  { %v2706_v28 = vadd.f32 %v2658_v49, %v6191_v20  ;;  %v2708_v0 = vadd.f32 %v2699_v51, %v6194_v7 }
 0xa67   :  { %v2660_v40 = vpop.f32.mrf.mxu0  ;;  %v2701_v4 = vpop.f32.mrf.mxu1 }
 0xa68   :  { %v2928_v24 = vmul.f32 -1.442695, %v2706_v28  ;;  %v2707_v53 = vadd.f32 %v2660_v40, %v6192_v33  ;;  %v2709_v10 = vadd.f32 %v2701_v4, %v6193_v14 }
 0xa69   :  { %v2662_v41 = vpop.f32.mrf.mxu0  ;;  %v2703_v16 = vpop.f32.mrf.mxu1 }
 0xa6a   :  { %3183 = vpow2.f32 %v2928_v24  ;;  %v2929_v17 = vmul.f32 -1.442695, %v2707_v53  ;;  %v2930_v26 = vmul.f32 -1.442695, %v2709_v10 }
 0xa6b   :  { %v2663_v3 = vpop.f32.mrf.mxu0  ;;  %v2704_v23 = vpop.f32.mrf.mxu1 }
 0xa6c   :  { %3185 = vpow2.f32 %v2929_v17 }
 0xa6d   :  { %3187 = vpow2.f32 %v2930_v26 }
 0xa77   :  { %v3184_v12 = vpop.eup %3183 }
 0xa78   :  { %v2713_v9 = vadd.f32 1.0, %v3184_v12 }
 0xa79   :  { %v3186_v25 = vpop.eup %3185 }
 0xa7a   :  { %3189 = vrcp.f32 %v2713_v9  ;;  %v2719_v42 = vadd.f32 1.0, %v3186_v25  ;;  %v3188_v8 = vpop.eup %3187 }
 0xa7b   :  { %3191 = vtanh.f32 %v2708_v0  ;;  %v2726_v2 = vadd.f32 1.0, %v3188_v8 }
 0xa7c   :  { %3193 = vrcp.f32 %v2719_v42 }
 0xa7d   :  { %3195 = vrcp.f32 %v2726_v2 }
 0xa87   :  { %v3190_v46 = vpop.eup %3189 }
 0xa88   :  { %v3192_v18 = vpop.eup %3191 }
 0xa89   :  { %v3194_v38 = vpop.eup %3193  ;;  %v2730_v31 = vmul.f32 %v3192_v18, %v3190_v46 }
 0xa8a   :  { %v2729_v21 = vmul.f32 %v3194_v38, %v2591_v37  ;;  %v3196_v32 = vpop.eup %3195 }
 0xa8c   :  { %v2731_v48 = vadd.f32 %v2730_v31, %v2729_v21 }
 0xa8e   :  { %3197 = vtanh.f32 %v2731_v48 }
 0xa9b   :  { %v3198_v44 = vpop.eup %3197 }
 0xa9c   :  { %v2733_v20 = vmul.f32 %v3198_v44, %v3196_v32 }
 0xa9e   :  { %2734 = vst [vmem:[%s5160_s5] sm:$0xff] %v2733_v20 }

</bundles_post_ra>
